<compile_context>
chip_gen: v7x
topology: tpu7x:2x2x1
jax: 0.10.0
libtpu: 0.0.40
codegen_flags: <defaults>
</compile_context>

<pallas_src>
import jax
import jax.numpy as jnp
from jax import lax
from jax.experimental import pallas as pl
from jax.experimental.pallas import tpu as pltpu

# Small synthetic config (real CLIP-L/14: L=77, D=768, 12 heads, 12 layers).
# D / F / head_dim chosen as multiples of 128 so every vreg lane is used.
B = 2            # batch (number of text prompts)
L = 8            # max_length (sublane multiple; real L=77 would be padded to 80/128)
D = 256          # hidden size / embed_dim   (lane multiple of 128)
H = 2            # attention heads
HD = D // H      # head dim = 128 -> per-head slices are lane-dense, K=128 on the MXU
F = 4 * D        # MLP intermediate = 1024
N_LAYERS = 2
VOCAB = 64
EPS = 1e-5
NEG = -1e9


def _layer_norm(x, g, b):
    mean = jnp.mean(x, axis=-1, keepdims=True)
    var = jnp.mean((x - mean) ** 2, axis=-1, keepdims=True)
    return (x - mean) * lax.rsqrt(var + EPS) * g + b


# ----------------------------------------------------------------------------
# Fused kernel: all encoder layers + final LayerNorm + masked mean pooling.
# grid = (batch, layer); activation lives in VMEM scratch across the layer axis.
# ----------------------------------------------------------------------------
def clip_encoder_kernel(x_ref, mask_ref,
                        ln1_g_ref, ln1_b_ref, wqkv_ref, bqkv_ref,
                        wo_ref, bo_ref, ln2_g_ref, ln2_b_ref,
                        w1_ref, b1_ref, w2_ref, b2_ref,
                        lnf_g_ref, lnf_b_ref,
                        out_ref, x_vmem):
    layer = pl.program_id(1)

    # Load the embedded tokens into the resident activation buffer once per batch row.
    @pl.when(layer == 0)
    def _():
        x_vmem[...] = x_ref[0]

    mask = mask_ref[0]                                             # (1, L)

    # Combined causal + key-padding additive bias, hoisted out of the head loop.
    row = lax.broadcasted_iota(jnp.int32, (L, L), 0)
    col = lax.broadcasted_iota(jnp.int32, (L, L), 1)
    bias = jnp.where(col <= row, 0.0, NEG).astype(jnp.float32) + (1.0 - mask) * NEG

    x = x_vmem[...]                                                # (L, D) f32

    # ---- self-attention block (pre-LN, causal + padding mask) ----
    h = _layer_norm(x, ln1_g_ref[0], ln1_b_ref[0])
    qkv = jnp.dot(h.astype(jnp.bfloat16), wqkv_ref[0],
                  preferred_element_type=jnp.float32) + bqkv_ref[0]      # (L, 3D)

    scale = HD ** -0.5
    ctx_heads = []
    for hi in range(H):            # H=2; each slice is 128 lanes -> full-depth MXU matmuls
        q = qkv[:, hi * HD:(hi + 1) * HD].astype(jnp.bfloat16)
        k = qkv[:, D + hi * HD: D + (hi + 1) * HD].astype(jnp.bfloat16)
        v = qkv[:, 2 * D + hi * HD: 2 * D + (hi + 1) * HD].astype(jnp.bfloat16)
        s = jnp.einsum('qd,kd->qk', q, k,
                       preferred_element_type=jnp.float32) * scale + bias
        s = s - jnp.max(s, axis=-1, keepdims=True)
        p = jnp.exp(s)
        p = p * pl.reciprocal(jnp.sum(p, axis=-1, keepdims=True), approx=True)
        ctx_heads.append(jnp.dot(p.astype(jnp.bfloat16), v,
                                 preferred_element_type=jnp.float32))    # (L, HD)
    ctx = jnp.concatenate(ctx_heads, axis=-1)                            # (L, D)
    attn = jnp.dot(ctx.astype(jnp.bfloat16), wo_ref[0],
                   preferred_element_type=jnp.float32) + bo_ref[0]
    x = x + attn

    # ---- MLP block (quick-GELU, as in CLIP) ----
    h2 = _layer_norm(x, ln2_g_ref[0], ln2_b_ref[0])
    f = jnp.dot(h2.astype(jnp.bfloat16), w1_ref[0],
                preferred_element_type=jnp.float32) + b1_ref[0]
    f = f * jax.nn.sigmoid(1.702 * f)
    m = jnp.dot(f.astype(jnp.bfloat16), w2_ref[0],
                preferred_element_type=jnp.float32) + b2_ref[0]
    x = x + m
    x_vmem[...] = x

    # ---- fused tail: final LayerNorm + attention-mask-weighted mean pooling ----
    @pl.when(layer == pl.num_programs(1) - 1)
    def _():
        hf = _layer_norm(x, lnf_g_ref[...], lnf_b_ref[...])              # (L, D)
        num = jnp.dot(mask, hf, preferred_element_type=jnp.float32)      # (1, D) masked sum
        den = jnp.sum(mask)
        out_ref[0] = num / den      # once per sequence -> exact divide is free


# ----------------------------------------------------------------------------
# Wrapper: stack per-layer weights, build the fused pallas_call.
# ----------------------------------------------------------------------------
def _stack_layer_params(params):
    ls = params["layers"]

    def stack(name, dtype=jnp.float32):
        return jnp.stack([lp[name] for lp in ls]).astype(dtype)

    wqkv = jnp.stack([jnp.concatenate([lp["wq"], lp["wk"], lp["wv"]], axis=1) for lp in ls])
    bqkv = jnp.stack([jnp.concatenate([lp["bq"], lp["bk"], lp["bv"]], axis=1) for lp in ls])
    return {
        "ln1_g": stack("ln1_g"), "ln1_b": stack("ln1_b"),
        "wqkv": wqkv.astype(jnp.bfloat16), "bqkv": bqkv,
        "wo": stack("wo", jnp.bfloat16), "bo": stack("bo"),
        "ln2_g": stack("ln2_g"), "ln2_b": stack("ln2_b"),
        "w1": stack("w1", jnp.bfloat16), "b1": stack("b1"),
        "w2": stack("w2", jnp.bfloat16), "b2": stack("b2"),
    }


def clip_text_encode(input_ids, attention_mask, params):
    # TODO(synk): CLIPTokenizer (string -> ids) and HF pretrained-weight loading have no
    # Pallas equivalent; token ids + attention mask are the inputs, weights are synthetic.
    x = (params["tok_emb"][input_ids] + params["pos_emb"][None]).astype(jnp.float32)
    mask = attention_mask.astype(jnp.float32)[:, None, :]                # (B, 1, L)
    stk = _stack_layer_params(params)

    def bmap(b, l):   # per-batch blocks (constant across the layer axis -> stays resident)
        return (b, 0, 0)

    def lmap(b, l):   # per-layer stacked weights
        return (l, 0, 0)

    weight_args = [stk["ln1_g"], stk["ln1_b"], stk["wqkv"], stk["bqkv"],
                   stk["wo"], stk["bo"], stk["ln2_g"], stk["ln2_b"],
                   stk["w1"], stk["b1"], stk["w2"], stk["b2"],
                   params["ln_f_g"], params["ln_f_b"]]

    in_specs = [
        pl.BlockSpec((1, L, D), bmap),          # embedded tokens
        pl.BlockSpec((1, 1, L), bmap),          # attention mask
        pl.BlockSpec((1, 1, D), lmap),          # ln1_g
        pl.BlockSpec((1, 1, D), lmap),          # ln1_b
        pl.BlockSpec((1, D, 3 * D), lmap),      # wqkv (bf16)
        pl.BlockSpec((1, 1, 3 * D), lmap),      # bqkv
        pl.BlockSpec((1, D, D), lmap),          # wo   (bf16)
        pl.BlockSpec((1, 1, D), lmap),          # bo
        pl.BlockSpec((1, 1, D), lmap),          # ln2_g
        pl.BlockSpec((1, 1, D), lmap),          # ln2_b
        pl.BlockSpec((1, D, F), lmap),          # w1   (bf16)
        pl.BlockSpec((1, 1, F), lmap),          # b1
        pl.BlockSpec((1, F, D), lmap),          # w2   (bf16)
        pl.BlockSpec((1, 1, D), lmap),          # b2
        pl.BlockSpec((1, D), lambda b, l: (0, 0)),   # ln_f_g
        pl.BlockSpec((1, D), lambda b, l: (0, 0)),   # ln_f_b
    ]

    pooled = pl.pallas_call(
        clip_encoder_kernel,
        out_shape=jax.ShapeDtypeStruct((B, 1, D), jnp.float32),
        grid_spec=pltpu.PrefetchScalarGridSpec(
            num_scalar_prefetch=0,
            grid=(B, N_LAYERS),
            in_specs=in_specs,
            out_specs=pl.BlockSpec((1, 1, D), bmap),
            scratch_shapes=[pltpu.VMEM((L, D), jnp.float32)],   # resident activation
        ),
        compiler_params=pltpu.CompilerParams(
            dimension_semantics=("parallel", "arbitrary")),
    )(x, mask, *weight_args)
    return pooled[:, 0, :]


# ----------------------------------------------------------------------------
# Parameters.
# ----------------------------------------------------------------------------
def init_params(key):
    def nrm(k, shape, scale=0.02):
        return (scale * jax.random.normal(k, shape)).astype(jnp.float32)

    params = {"layers": []}
    key, k_tok, k_pos = jax.random.split(key, 3)
    params["tok_emb"] = nrm(k_tok, (VOCAB, D))
    params["pos_emb"] = nrm(k_pos, (L, D))
    for _ in range(N_LAYERS):
        key, *ks = jax.random.split(key, 13)
        params["layers"].append({
            "ln1_g": jnp.ones((1, D), jnp.float32),
            "ln1_b": jnp.zeros((1, D), jnp.float32),
            "wq": nrm(ks[0], (D, D)), "bq": nrm(ks[1], (1, D)),
            "wk": nrm(ks[2], (D, D)), "bk": nrm(ks[3], (1, D)),
            "wv": nrm(ks[4], (D, D)), "bv": nrm(ks[5], (1, D)),
            "wo": nrm(ks[6], (D, D)), "bo": nrm(ks[7], (1, D)),
            "ln2_g": jnp.ones((1, D), jnp.float32),
            "ln2_b": jnp.zeros((1, D), jnp.float32),
            "w1": nrm(ks[8], (D, F)), "b1": nrm(ks[9], (1, F)),
            "w2": nrm(ks[10], (F, D)), "b2": nrm(ks[11], (1, D)),
        })
    params["ln_f_g"] = jnp.ones((1, D), jnp.float32)
    params["ln_f_b"] = jnp.zeros((1, D), jnp.float32)
    return params


# Plain-JAX reference (mirrors the kernel's bf16 matmul inputs / f32 accumulation).
def reference(input_ids, attention_mask, params):
    bf16 = jnp.bfloat16

    def mm(a, b):
        return jnp.dot(a.astype(bf16), b.astype(bf16), preferred_element_type=jnp.float32)

    x = params["tok_emb"][input_ids] + params["pos_emb"][None]
    mask = attention_mask.astype(jnp.float32)
    row = jnp.arange(L)[:, None]
    col = jnp.arange(L)[None, :]
    causal = jnp.where(col <= row, 0.0, NEG).astype(jnp.float32)
    bias = causal[None] + (1.0 - mask)[:, None, :] * NEG                 # (B, L, L)
    scale = HD ** -0.5
    for p in params["layers"]:
        h = _layer_norm(x, p["ln1_g"], p["ln1_b"])
        wqkv = jnp.concatenate([p["wq"], p["wk"], p["wv"]], axis=1)
        bqkv = jnp.concatenate([p["bq"], p["bk"], p["bv"]], axis=1)
        qkv = mm(h, wqkv) + bqkv                                         # (B, L, 3D)
        ctx_heads = []
        for hi in range(H):
            q = qkv[..., hi * HD:(hi + 1) * HD].astype(bf16)
            k = qkv[..., D + hi * HD: D + (hi + 1) * HD].astype(bf16)
            v = qkv[..., 2 * D + hi * HD: 2 * D + (hi + 1) * HD].astype(bf16)
            s = jnp.einsum('bqd,bkd->bqk', q, k,
                           preferred_element_type=jnp.float32) * scale + bias
            pr = jax.nn.softmax(s, axis=-1)
            ctx_heads.append(jnp.einsum('bqk,bkd->bqd', pr.astype(bf16), v,
                                        preferred_element_type=jnp.float32))
        ctx = jnp.concatenate(ctx_heads, axis=-1)
        x = x + mm(ctx, p["wo"]) + p["bo"]
        h2 = _layer_norm(x, p["ln2_g"], p["ln2_b"])
        f = mm(h2, p["w1"]) + p["b1"]
        f = f * jax.nn.sigmoid(1.702 * f)
        x = x + mm(f, p["w2"]) + p["b2"]
    h = _layer_norm(x, params["ln_f_g"], params["ln_f_b"])
    num = jnp.sum(h * mask[:, :, None], axis=1)
    den = jnp.sum(mask, axis=1, keepdims=True)
    return num / den


if __name__ == "__main__":
    key = jax.random.PRNGKey(0)
    k_params, k_ids = jax.random.split(key)
    params = init_params(k_params)

    # Deterministic synthetic "tokenized prompts": ids + padding attention mask.
    input_ids = jax.random.randint(k_ids, (B, L), 0, VOCAB, dtype=jnp.int32)
    lengths = jnp.array([5, L], dtype=jnp.int32)
    attention_mask = (jnp.arange(L)[None, :] < lengths[:, None]).astype(jnp.float32)

    out = clip_text_encode(input_ids, attention_mask, params)
    out = jax.block_until_ready(out)
    assert out.shape == (B, D), out.shape

    ref = reference(input_ids, attention_mask, params)
    max_err = float(jnp.max(jnp.abs(out - ref)))
    # tolerance covers the approx EUP reciprocal in the in-kernel softmax and
    # f32-accumulation-order differences; structural bugs exceed this by orders of magnitude.
    assert max_err < 1e-2, f"mismatch vs reference: {max_err}"

    print("KERNEL_OK")
</pallas_src>

<mosaic_0001>
module attributes {stable_mosaic.version = 11 : i64} {
  func.func @clip_encoder_kernel(%arg0: i32, %arg1: i32, %arg2: memref<1x8x256xf32, #tpu.memory_space<vmem>>, %arg3: memref<1x1x8xf32, #tpu.memory_space<vmem>>, %arg4: memref<1x1x256xf32, #tpu.memory_space<vmem>>, %arg5: memref<1x1x256xf32, #tpu.memory_space<vmem>>, %arg6: memref<1x256x768xbf16, #tpu.memory_space<vmem>>, %arg7: memref<1x1x768xf32, #tpu.memory_space<vmem>>, %arg8: memref<1x256x256xbf16, #tpu.memory_space<vmem>>, %arg9: memref<1x1x256xf32, #tpu.memory_space<vmem>>, %arg10: memref<1x1x256xf32, #tpu.memory_space<vmem>>, %arg11: memref<1x1x256xf32, #tpu.memory_space<vmem>>, %arg12: memref<1x256x1024xbf16, #tpu.memory_space<vmem>>, %arg13: memref<1x1x1024xf32, #tpu.memory_space<vmem>>, %arg14: memref<1x1024x256xbf16, #tpu.memory_space<vmem>>, %arg15: memref<1x1x256xf32, #tpu.memory_space<vmem>>, %arg16: memref<1x256xf32, #tpu.memory_space<vmem>>, %arg17: memref<1x256xf32, #tpu.memory_space<vmem>>, %arg18: memref<1x1x256xf32, #tpu.memory_space<vmem>>, %arg19: memref<8x256xf32, #tpu.memory_space<vmem>>) attributes {dimension_semantics = [#tpu.dimension_semantics<parallel>, #tpu.dimension_semantics<arbitrary>], iteration_bounds = array<i64: 2, 2>, scalar_prefetch = 0 : i64, scratch_operands = 1 : i64, tpu.core_type = #tpu.core_type<tc>, window_params = [{transform_indices = @transform_0, window_bounds = array<i64: 1, 8, 256>}, {transform_indices = @transform_1, window_bounds = array<i64: 1, 1, 8>}, {transform_indices = @transform_2, window_bounds = array<i64: 1, 1, 256>}, {transform_indices = @transform_3, window_bounds = array<i64: 1, 1, 256>}, {transform_indices = @transform_4, window_bounds = array<i64: 1, 256, 768>}, {transform_indices = @transform_5, window_bounds = array<i64: 1, 1, 768>}, {transform_indices = @transform_6, window_bounds = array<i64: 1, 256, 256>}, {transform_indices = @transform_7, window_bounds = array<i64: 1, 1, 256>}, {transform_indices = @transform_8, window_bounds = array<i64: 1, 1, 256>}, {transform_indices = @transform_9, window_bounds = array<i64: 1, 1, 256>}, {transform_indices = @transform_10, window_bounds = array<i64: 1, 256, 1024>}, {transform_indices = @transform_11, window_bounds = array<i64: 1, 1, 1024>}, {transform_indices = @transform_12, window_bounds = array<i64: 1, 1024, 256>}, {transform_indices = @transform_13, window_bounds = array<i64: 1, 1, 256>}, {pipeline_mode = #tpu.pipeline_mode<synchronous>, transform_indices = @transform_14, window_bounds = array<i64: 1, 256>}, {pipeline_mode = #tpu.pipeline_mode<synchronous>, transform_indices = @transform_15, window_bounds = array<i64: 1, 256>}, {transform_indices = @transform_16, window_bounds = array<i64: 1, 1, 256>}]} {
    %c0_i32 = arith.constant 0 : i32
    %0 = arith.cmpi eq, %arg1, %c0_i32 : i32
    %1 = arith.extui %0 : i1 to i32
    %c0_i32_0 = arith.constant 0 : i32
    %2 = arith.cmpi ne, %1, %c0_i32_0 : i32
    scf.if %2 {
      %c0_73 = arith.constant 0 : index
      %c0_74 = arith.constant 0 : index
      %c0_75 = arith.constant 0 : index
      %161 = vector.load %arg2[%c0_73, %c0_74, %c0_75] : memref<1x8x256xf32, #tpu.memory_space<vmem>>, vector<1x8x256xf32>
      %162 = vector.shape_cast %161 : vector<1x8x256xf32> to vector<8x256xf32>
      %c0_76 = arith.constant 0 : index
      %c0_77 = arith.constant 0 : index
      %163 = vector.load %arg19[%c0_76, %c0_77] : memref<8x256xf32, #tpu.memory_space<vmem>>, vector<8x256xf32>
      tpu.vector_store %arg19[%c0_76, %c0_77], %162 {strides = array<i32>} : memref<8x256xf32, #tpu.memory_space<vmem>>, vector<8x256xf32>,
    } else {
    }
    %c0 = arith.constant 0 : index
    %c0_1 = arith.constant 0 : index
    %c0_2 = arith.constant 0 : index
    %3 = vector.load %arg3[%c0, %c0_1, %c0_2] : memref<1x1x8xf32, #tpu.memory_space<vmem>>, vector<1x1x8xf32>
    %4 = vector.shape_cast %3 : vector<1x1x8xf32> to vector<1x8xf32>
    %5 = tpu.iota {dimensions = array<i32: 0>} : vector<8x8xi32>
    %6 = tpu.iota {dimensions = array<i32: 1>} : vector<8x8xi32>
    %7 = arith.cmpi sle, %6, %5 : vector<8x8xi32>
    %cst = arith.constant 0.000000e+00 : f32
    %cst_3 = arith.constant -1.000000e+09 : f32
    %8 = vector.broadcast %cst : f32 to vector<8x8xf32>
    %9 = vector.broadcast %cst_3 : f32 to vector<8x8xf32>
    %10 = arith.select %7, %8, %9 : vector<8x8xi1>, vector<8x8xf32>
    %cst_4 = arith.constant 1.000000e+00 : f32
    %11 = vector.broadcast %cst_4 : f32 to vector<1x8xf32>
    %12 = arith.subf %11, %4 : vector<1x8xf32>
    %cst_5 = arith.constant -1.000000e+09 : f32
    %13 = vector.broadcast %cst_5 : f32 to vector<1x8xf32>
    %14 = arith.mulf %12, %13 : vector<1x8xf32>
    %15 = vector.broadcast %14 : vector<1x8xf32> to vector<8x8xf32>
    %16 = arith.addf %10, %15 : vector<8x8xf32>
    %c0_6 = arith.constant 0 : index
    %c0_7 = arith.constant 0 : index
    %17 = vector.load %arg19[%c0_6, %c0_7] : memref<8x256xf32, #tpu.memory_space<vmem>>, vector<8x256xf32>
    %c0_8 = arith.constant 0 : index
    %c0_9 = arith.constant 0 : index
    %c0_10 = arith.constant 0 : index
    %18 = vector.load %arg4[%c0_8, %c0_9, %c0_10] : memref<1x1x256xf32, #tpu.memory_space<vmem>>, vector<1x1x256xf32>
    %19 = vector.shape_cast %18 : vector<1x1x256xf32> to vector<1x256xf32>
    %c0_11 = arith.constant 0 : index
    %c0_12 = arith.constant 0 : index
    %c0_13 = arith.constant 0 : index
    %20 = vector.load %arg5[%c0_11, %c0_12, %c0_13] : memref<1x1x256xf32, #tpu.memory_space<vmem>>, vector<1x1x256xf32>
    %21 = vector.shape_cast %20 : vector<1x1x256xf32> to vector<1x256xf32>
    %cst_14 = arith.constant dense<0.000000e+00> : vector<8xf32>
    %22 = vector.multi_reduction <add>, %17, %cst_14 [1] : vector<8x256xf32> to vector<8xf32>
    %23 = vector.shape_cast %22 : vector<8xf32> to vector<8x1xf32>
    %cst_15 = arith.constant 2.560000e+02 : f32
    %24 = vector.broadcast %cst_15 : f32 to vector<8x1xf32>
    %25 = arith.divf %23, %24 : vector<8x1xf32>
    %26 = vector.broadcast %25 : vector<8x1xf32> to vector<8x256xf32>
    %27 = arith.subf %17, %26 : vector<8x256xf32>
    %28 = arith.mulf %27, %27 : vector<8x256xf32>
    %cst_16 = arith.constant dense<0.000000e+00> : vector<8xf32>
    %29 = vector.multi_reduction <add>, %28, %cst_16 [1] : vector<8x256xf32> to vector<8xf32>
    %30 = vector.shape_cast %29 : vector<8xf32> to vector<8x1xf32>
    %cst_17 = arith.constant 2.560000e+02 : f32
    %31 = vector.broadcast %cst_17 : f32 to vector<8x1xf32>
    %32 = arith.divf %30, %31 : vector<8x1xf32>
    %33 = vector.broadcast %25 : vector<8x1xf32> to vector<8x256xf32>
    %34 = arith.subf %17, %33 : vector<8x256xf32>
    %cst_18 = arith.constant 9.99999974E-6 : f32
    %35 = vector.broadcast %cst_18 : f32 to vector<8x1xf32>
    %36 = arith.addf %32, %35 : vector<8x1xf32>
    %37 = math.rsqrt %36 : vector<8x1xf32>
    %38 = vector.broadcast %37 : vector<8x1xf32> to vector<8x256xf32>
    %39 = arith.mulf %34, %38 : vector<8x256xf32>
    %40 = vector.broadcast %19 : vector<1x256xf32> to vector<8x256xf32>
    %41 = arith.mulf %39, %40 : vector<8x256xf32>
    %42 = vector.broadcast %21 : vector<1x256xf32> to vector<8x256xf32>
    %43 = arith.addf %41, %42 : vector<8x256xf32>
    %44 = arith.truncf %43 : vector<8x256xf32> to vector<8x256xbf16>
    %c0_19 = arith.constant 0 : index
    %c0_20 = arith.constant 0 : index
    %c0_21 = arith.constant 0 : index
    %45 = vector.load %arg6[%c0_19, %c0_20, %c0_21] : memref<1x256x768xbf16, #tpu.memory_space<vmem>>, vector<1x256x768xbf16>
    %46 = vector.shape_cast %45 : vector<1x256x768xbf16> to vector<256x768xbf16>
    %cst_22 = arith.constant dense<0.000000e+00> : vector<8x768xf32>
    %47 = tpu.matmul %44, %46, %cst_22 {dimension_numbers = #tpu.dot_dimension_numbers<[1], [0], [0], [1], [0, 0, 1, 1], [], []>} : vector<8x256xbf16>, vector<256x768xbf16>, vector<8x768xf32> -> vector<8x768xf32>
    %c0_23 = arith.constant 0 : index
    %c0_24 = arith.constant 0 : index
    %c0_25 = arith.constant 0 : index
    %48 = vector.load %arg7[%c0_23, %c0_24, %c0_25] : memref<1x1x768xf32, #tpu.memory_space<vmem>>, vector<1x1x768xf32>
    %49 = vector.shape_cast %48 : vector<1x1x768xf32> to vector<1x768xf32>
    %50 = vector.broadcast %49 : vector<1x768xf32> to vector<8x768xf32>
    %51 = arith.addf %47, %50 : vector<8x768xf32>
    %52 = vector.extract_strided_slice %51 {offsets = [0, 0], sizes = [8, 128], strides = [1, 1]} : vector<8x768xf32> to vector<8x128xf32>
    %53 = arith.truncf %52 : vector<8x128xf32> to vector<8x128xbf16>
    %54 = vector.extract_strided_slice %51 {offsets = [0, 256], sizes = [8, 128], strides = [1, 1]} : vector<8x768xf32> to vector<8x128xf32>
    %55 = arith.truncf %54 : vector<8x128xf32> to vector<8x128xbf16>
    %56 = vector.extract_strided_slice %51 {offsets = [0, 512], sizes = [8, 128], strides = [1, 1]} : vector<8x768xf32> to vector<8x128xf32>
    %57 = arith.truncf %56 : vector<8x128xf32> to vector<8x128xbf16>
    "tpu.trace_start"() <{level = 10 : i32, message = "qd,kd->qk"}> : () -> ()
    %cst_26 = arith.constant dense<0.000000e+00> : vector<8x8xf32>
    %58 = tpu.matmul %53, %55, %cst_26 {dimension_numbers = #tpu.dot_dimension_numbers<[1], [1], [0], [0], [0, 0, 1, 0], [], []>} : vector<8x128xbf16>, vector<8x128xbf16>, vector<8x8xf32> -> vector<8x8xf32>
    "tpu.trace_stop"() : () -> ()
    %cst_27 = arith.constant 0.0883883461 : f32
    %59 = vector.broadcast %cst_27 : f32 to vector<8x8xf32>
    %60 = arith.mulf %58, %59 : vector<8x8xf32>
    %61 = arith.addf %60, %16 : vector<8x8xf32>
    %cst_28 = arith.constant dense<0xFF800000> : vector<8xf32>
    %62 = vector.multi_reduction <maximumf>, %61, %cst_28 [1] : vector<8x8xf32> to vector<8xf32>
    %63 = vector.shape_cast %62 : vector<8xf32> to vector<8x1xf32>
    %64 = vector.broadcast %63 : vector<8x1xf32> to vector<8x8xf32>
    %65 = arith.subf %61, %64 : vector<8x8xf32>
    %66 = math.exp %65 : vector<8x8xf32>
    %cst_29 = arith.constant dense<0.000000e+00> : vector<8xf32>
    %67 = vector.multi_reduction <add>, %66, %cst_29 [1] : vector<8x8xf32> to vector<8xf32>
    %68 = vector.shape_cast %67 : vector<8xf32> to vector<8x1xf32>
    %69 = tpu.reciprocal %68 {approx = true} : vector<8x1xf32> -> vector<8x1xf32>
    %70 = vector.broadcast %69 : vector<8x1xf32> to vector<8x8xf32>
    %71 = arith.mulf %66, %70 : vector<8x8xf32>
    %72 = arith.truncf %71 : vector<8x8xf32> to vector<8x8xbf16>
    %cst_30 = arith.constant dense<0.000000e+00> : vector<8x128xf32>
    %73 = tpu.matmul %72, %57, %cst_30 {dimension_numbers = #tpu.dot_dimension_numbers<[1], [0], [0], [1], [0, 0, 1, 1], [], []>} : vector<8x8xbf16>, vector<8x128xbf16>, vector<8x128xf32> -> vector<8x128xf32>
    %74 = vector.extract_strided_slice %51 {offsets = [0, 128], sizes = [8, 128], strides = [1, 1]} : vector<8x768xf32> to vector<8x128xf32>
    %75 = arith.truncf %74 : vector<8x128xf32> to vector<8x128xbf16>
    %76 = vector.extract_strided_slice %51 {offsets = [0, 384], sizes = [8, 128], strides = [1, 1]} : vector<8x768xf32> to vector<8x128xf32>
    %77 = arith.truncf %76 : vector<8x128xf32> to vector<8x128xbf16>
    %78 = vector.extract_strided_slice %51 {offsets = [0, 640], sizes = [8, 128], strides = [1, 1]} : vector<8x768xf32> to vector<8x128xf32>
    %79 = arith.truncf %78 : vector<8x128xf32> to vector<8x128xbf16>
    "tpu.trace_start"() <{level = 10 : i32, message = "qd,kd->qk"}> : () -> ()
    %cst_31 = arith.constant dense<0.000000e+00> : vector<8x8xf32>
    %80 = tpu.matmul %75, %77, %cst_31 {dimension_numbers = #tpu.dot_dimension_numbers<[1], [1], [0], [0], [0, 0, 1, 0], [], []>} : vector<8x128xbf16>, vector<8x128xbf16>, vector<8x8xf32> -> vector<8x8xf32>
    "tpu.trace_stop"() : () -> ()
    %cst_32 = arith.constant 0.0883883461 : f32
    %81 = vector.broadcast %cst_32 : f32 to vector<8x8xf32>
    %82 = arith.mulf %80, %81 : vector<8x8xf32>
    %83 = arith.addf %82, %16 : vector<8x8xf32>
    %cst_33 = arith.constant dense<0xFF800000> : vector<8xf32>
    %84 = vector.multi_reduction <maximumf>, %83, %cst_33 [1] : vector<8x8xf32> to vector<8xf32>
    %85 = vector.shape_cast %84 : vector<8xf32> to vector<8x1xf32>
    %86 = vector.broadcast %85 : vector<8x1xf32> to vector<8x8xf32>
    %87 = arith.subf %83, %86 : vector<8x8xf32>
    %88 = math.exp %87 : vector<8x8xf32>
    %cst_34 = arith.constant dense<0.000000e+00> : vector<8xf32>
    %89 = vector.multi_reduction <add>, %88, %cst_34 [1] : vector<8x8xf32> to vector<8xf32>
    %90 = vector.shape_cast %89 : vector<8xf32> to vector<8x1xf32>
    %91 = tpu.reciprocal %90 {approx = true} : vector<8x1xf32> -> vector<8x1xf32>
    %92 = vector.broadcast %91 : vector<8x1xf32> to vector<8x8xf32>
    %93 = arith.mulf %88, %92 : vector<8x8xf32>
    %94 = arith.truncf %93 : vector<8x8xf32> to vector<8x8xbf16>
    %cst_35 = arith.constant dense<0.000000e+00> : vector<8x128xf32>
    %95 = tpu.matmul %94, %79, %cst_35 {dimension_numbers = #tpu.dot_dimension_numbers<[1], [0], [0], [1], [0, 0, 1, 1], [], []>} : vector<8x8xbf16>, vector<8x128xbf16>, vector<8x128xf32> -> vector<8x128xf32>
    %96 = tpu.concatenate %73, %95 in 1 : vector<8x128xf32>, vector<8x128xf32> -> vector<8x256xf32>
    %97 = arith.truncf %96 : vector<8x256xf32> to vector<8x256xbf16>
    %c0_36 = arith.constant 0 : index
    %c0_37 = arith.constant 0 : index
    %c0_38 = arith.constant 0 : index
    %98 = vector.load %arg8[%c0_36, %c0_37, %c0_38] : memref<1x256x256xbf16, #tpu.memory_space<vmem>>, vector<1x256x256xbf16>
    %99 = vector.shape_cast %98 : vector<1x256x256xbf16> to vector<256x256xbf16>
    %cst_39 = arith.constant dense<0.000000e+00> : vector<8x256xf32>
    %100 = tpu.matmul %97, %99, %cst_39 {dimension_numbers = #tpu.dot_dimension_numbers<[1], [0], [0], [1], [0, 0, 1, 1], [], []>} : vector<8x256xbf16>, vector<256x256xbf16>, vector<8x256xf32> -> vector<8x256xf32>
    %c0_40 = arith.constant 0 : index
    %c0_41 = arith.constant 0 : index
    %c0_42 = arith.constant 0 : index
    %101 = vector.load %arg9[%c0_40, %c0_41, %c0_42] : memref<1x1x256xf32, #tpu.memory_space<vmem>>, vector<1x1x256xf32>
    %102 = vector.shape_cast %101 : vector<1x1x256xf32> to vector<1x256xf32>
    %103 = vector.broadcast %102 : vector<1x256xf32> to vector<8x256xf32>
    %104 = arith.addf %100, %103 : vector<8x256xf32>
    %105 = arith.addf %17, %104 : vector<8x256xf32>
    %c0_43 = arith.constant 0 : index
    %c0_44 = arith.constant 0 : index
    %c0_45 = arith.constant 0 : index
    %106 = vector.load %arg10[%c0_43, %c0_44, %c0_45] : memref<1x1x256xf32, #tpu.memory_space<vmem>>, vector<1x1x256xf32>
    %107 = vector.shape_cast %106 : vector<1x1x256xf32> to vector<1x256xf32>
    %c0_46 = arith.constant 0 : index
    %c0_47 = arith.constant 0 : index
    %c0_48 = arith.constant 0 : index
    %108 = vector.load %arg11[%c0_46, %c0_47, %c0_48] : memref<1x1x256xf32, #tpu.memory_space<vmem>>, vector<1x1x256xf32>
    %109 = vector.shape_cast %108 : vector<1x1x256xf32> to vector<1x256xf32>
    %cst_49 = arith.constant dense<0.000000e+00> : vector<8xf32>
    %110 = vector.multi_reduction <add>, %105, %cst_49 [1] : vector<8x256xf32> to vector<8xf32>
    %111 = vector.shape_cast %110 : vector<8xf32> to vector<8x1xf32>
    %cst_50 = arith.constant 2.560000e+02 : f32
    %112 = vector.broadcast %cst_50 : f32 to vector<8x1xf32>
    %113 = arith.divf %111, %112 : vector<8x1xf32>
    %114 = vector.broadcast %113 : vector<8x1xf32> to vector<8x256xf32>
    %115 = arith.subf %105, %114 : vector<8x256xf32>
    %116 = arith.mulf %115, %115 : vector<8x256xf32>
    %cst_51 = arith.constant dense<0.000000e+00> : vector<8xf32>
    %117 = vector.multi_reduction <add>, %116, %cst_51 [1] : vector<8x256xf32> to vector<8xf32>
    %118 = vector.shape_cast %117 : vector<8xf32> to vector<8x1xf32>
    %cst_52 = arith.constant 2.560000e+02 : f32
    %119 = vector.broadcast %cst_52 : f32 to vector<8x1xf32>
    %120 = arith.divf %118, %119 : vector<8x1xf32>
    %121 = vector.broadcast %113 : vector<8x1xf32> to vector<8x256xf32>
    %122 = arith.subf %105, %121 : vector<8x256xf32>
    %cst_53 = arith.constant 9.99999974E-6 : f32
    %123 = vector.broadcast %cst_53 : f32 to vector<8x1xf32>
    %124 = arith.addf %120, %123 : vector<8x1xf32>
    %125 = math.rsqrt %124 : vector<8x1xf32>
    %126 = vector.broadcast %125 : vector<8x1xf32> to vector<8x256xf32>
    %127 = arith.mulf %122, %126 : vector<8x256xf32>
    %128 = vector.broadcast %107 : vector<1x256xf32> to vector<8x256xf32>
    %129 = arith.mulf %127, %128 : vector<8x256xf32>
    %130 = vector.broadcast %109 : vector<1x256xf32> to vector<8x256xf32>
    %131 = arith.addf %129, %130 : vector<8x256xf32>
    %132 = arith.truncf %131 : vector<8x256xf32> to vector<8x256xbf16>
    %c0_54 = arith.constant 0 : index
    %c0_55 = arith.constant 0 : index
    %c0_56 = arith.constant 0 : index
    %133 = vector.load %arg12[%c0_54, %c0_55, %c0_56] : memref<1x256x1024xbf16, #tpu.memory_space<vmem>>, vector<1x256x1024xbf16>
    %134 = vector.shape_cast %133 : vector<1x256x1024xbf16> to vector<256x1024xbf16>
    %cst_57 = arith.constant dense<0.000000e+00> : vector<8x1024xf32>
    %135 = tpu.matmul %132, %134, %cst_57 {dimension_numbers = #tpu.dot_dimension_numbers<[1], [0], [0], [1], [0, 0, 1, 1], [], []>} : vector<8x256xbf16>, vector<256x1024xbf16>, vector<8x1024xf32> -> vector<8x1024xf32>
    %c0_58 = arith.constant 0 : index
    %c0_59 = arith.constant 0 : index
    %c0_60 = arith.constant 0 : index
    %136 = vector.load %arg13[%c0_58, %c0_59, %c0_60] : memref<1x1x1024xf32, #tpu.memory_space<vmem>>, vector<1x1x1024xf32>
    %137 = vector.shape_cast %136 : vector<1x1x1024xf32> to vector<1x1024xf32>
    %138 = vector.broadcast %137 : vector<1x1024xf32> to vector<8x1024xf32>
    %139 = arith.addf %135, %138 : vector<8x1024xf32>
    %cst_61 = arith.constant 1.702000e+00 : f32
    %140 = vector.broadcast %cst_61 : f32 to vector<8x1024xf32>
    %141 = arith.mulf %140, %139 : vector<8x1024xf32>
    %142 = arith.negf %141 : vector<8x1024xf32>
    %143 = math.exp %142 : vector<8x1024xf32>
    %cst_62 = arith.constant 1.000000e+00 : f32
    %144 = vector.broadcast %cst_62 : f32 to vector<8x1024xf32>
    %145 = arith.addf %144, %143 : vector<8x1024xf32>
    %146 = arith.divf %144, %145 : vector<8x1024xf32>
    %147 = arith.mulf %139, %146 : vector<8x1024xf32>
    %148 = arith.truncf %147 : vector<8x1024xf32> to vector<8x1024xbf16>
    %c0_63 = arith.constant 0 : index
    %c0_64 = arith.constant 0 : index
    %c0_65 = arith.constant 0 : index
    %149 = vector.load %arg14[%c0_63, %c0_64, %c0_65] : memref<1x1024x256xbf16, #tpu.memory_space<vmem>>, vector<1x1024x256xbf16>
    %150 = vector.shape_cast %149 : vector<1x1024x256xbf16> to vector<1024x256xbf16>
    %cst_66 = arith.constant dense<0.000000e+00> : vector<8x256xf32>
    %151 = tpu.matmul %148, %150, %cst_66 {dimension_numbers = #tpu.dot_dimension_numbers<[1], [0], [0], [1], [0, 0, 1, 1], [], []>} : vector<8x1024xbf16>, vector<1024x256xbf16>, vector<8x256xf32> -> vector<8x256xf32>
    %c0_67 = arith.constant 0 : index
    %c0_68 = arith.constant 0 : index
    %c0_69 = arith.constant 0 : index
    %152 = vector.load %arg15[%c0_67, %c0_68, %c0_69] : memref<1x1x256xf32, #tpu.memory_space<vmem>>, vector<1x1x256xf32>
    %153 = vector.shape_cast %152 : vector<1x1x256xf32> to vector<1x256xf32>
    %154 = vector.broadcast %153 : vector<1x256xf32> to vector<8x256xf32>
    %155 = arith.addf %151, %154 : vector<8x256xf32>
    %156 = arith.addf %105, %155 : vector<8x256xf32>
    %c0_70 = arith.constant 0 : index
    %c0_71 = arith.constant 0 : index
    %157 = vector.load %arg19[%c0_70, %c0_71] : memref<8x256xf32, #tpu.memory_space<vmem>>, vector<8x256xf32>
    tpu.vector_store %arg19[%c0_70, %c0_71], %156 {strides = array<i32>} : memref<8x256xf32, #tpu.memory_space<vmem>>, vector<8x256xf32>,
    %c1_i32 = arith.constant 1 : i32
    %158 = arith.cmpi eq, %arg1, %c1_i32 : i32
    %159 = arith.extui %158 : i1 to i32
    %c0_i32_72 = arith.constant 0 : i32
    %160 = arith.cmpi ne, %159, %c0_i32_72 : i32
    scf.if %160 {
      %c0_73 = arith.constant 0 : index
      %c0_74 = arith.constant 0 : index
      %161 = vector.load %arg16[%c0_73, %c0_74] : memref<1x256xf32, #tpu.memory_space<vmem>>, vector<1x256xf32>
      %c0_75 = arith.constant 0 : index
      %c0_76 = arith.constant 0 : index
      %162 = vector.load %arg17[%c0_75, %c0_76] : memref<1x256xf32, #tpu.memory_space<vmem>>, vector<1x256xf32>
      %cst_77 = arith.constant dense<0.000000e+00> : vector<8xf32>
      %163 = vector.multi_reduction <add>, %156, %cst_77 [1] : vector<8x256xf32> to vector<8xf32>
      %164 = vector.shape_cast %163 : vector<8xf32> to vector<8x1xf32>
      %cst_78 = arith.constant 2.560000e+02 : f32
      %165 = vector.broadcast %cst_78 : f32 to vector<8x1xf32>
      %166 = arith.divf %164, %165 : vector<8x1xf32>
      %167 = vector.broadcast %166 : vector<8x1xf32> to vector<8x256xf32>
      %168 = arith.subf %156, %167 : vector<8x256xf32>
      %169 = arith.mulf %168, %168 : vector<8x256xf32>
      %cst_79 = arith.constant dense<0.000000e+00> : vector<8xf32>
      %170 = vector.multi_reduction <add>, %169, %cst_79 [1] : vector<8x256xf32> to vector<8xf32>
      %171 = vector.shape_cast %170 : vector<8xf32> to vector<8x1xf32>
      %cst_80 = arith.constant 2.560000e+02 : f32
      %172 = vector.broadcast %cst_80 : f32 to vector<8x1xf32>
      %173 = arith.divf %171, %172 : vector<8x1xf32>
      %174 = vector.broadcast %166 : vector<8x1xf32> to vector<8x256xf32>
      %175 = arith.subf %156, %174 : vector<8x256xf32>
      %cst_81 = arith.constant 9.99999974E-6 : f32
      %176 = vector.broadcast %cst_81 : f32 to vector<8x1xf32>
      %177 = arith.addf %173, %176 : vector<8x1xf32>
      %178 = math.rsqrt %177 : vector<8x1xf32>
      %179 = vector.broadcast %178 : vector<8x1xf32> to vector<8x256xf32>
      %180 = arith.mulf %175, %179 : vector<8x256xf32>
      %181 = vector.broadcast %161 : vector<1x256xf32> to vector<8x256xf32>
      %182 = arith.mulf %180, %181 : vector<8x256xf32>
      %183 = vector.broadcast %162 : vector<1x256xf32> to vector<8x256xf32>
      %184 = arith.addf %182, %183 : vector<8x256xf32>
      %cst_82 = arith.constant dense<0.000000e+00> : vector<1x256xf32>
      %185 = tpu.matmul %4, %184, %cst_82 {dimension_numbers = #tpu.dot_dimension_numbers<[1], [0], [0], [1], [0, 0, 1, 1], [], []>} : vector<1x8xf32>, vector<8x256xf32>, vector<1x256xf32> -> vector<1x256xf32>
      %186 = vector.shape_cast %4 : vector<1x8xf32> to vector<1x1x8xf32>
      %cst_83 = arith.constant dense<0.000000e+00> : vector<1xf32>
      %187 = vector.multi_reduction <add>, %186, %cst_83 [1, 2] : vector<1x1x8xf32> to vector<1xf32>
      %188 = vector.shape_cast %187 : vector<1xf32> to vector<1x1x1xf32>
      %189 = vector.extract %188[0, 0, 0] : f32 from vector<1x1x1xf32>
      %190 = vector.broadcast %189 : f32 to vector<1x256xf32>
      %191 = arith.divf %185, %190 : vector<1x256xf32>
      %c0_84 = arith.constant 0 : index
      %c0_85 = arith.constant 0 : index
      %c0_86 = arith.constant 0 : index
      %192 = vector.load %arg18[%c0_84, %c0_85, %c0_86] : memref<1x1x256xf32, #tpu.memory_space<vmem>>, vector<1x1x256xf32>
      %193 = vector.shape_cast %192 : vector<1x1x256xf32> to vector<1x256xf32>
      %194 = vector.shape_cast %191 : vector<1x256xf32> to vector<1x1x256xf32>
      tpu.vector_store %arg18[%c0_84, %c0_85, %c0_86], %194 {strides = array<i32>} : memref<1x1x256xf32, #tpu.memory_space<vmem>>, vector<1x1x256xf32>,
    } else {
    }
    return
  }
  func.func @transform_0(%arg0: i32, %arg1: i32) -> (i32, i32, i32) {
    %c0_i32 = arith.constant 0 : i32
    %c0_i32_0 = arith.constant 0 : i32
    %c0_i32_1 = arith.constant 0 : i32
    return %arg0, %c0_i32, %c0_i32_0 : i32, i32, i32
  }
  func.func @transform_1(%arg0: i32, %arg1: i32) -> (i32, i32, i32) {
    %c0_i32 = arith.constant 0 : i32
    %c0_i32_0 = arith.constant 0 : i32
    %c0_i32_1 = arith.constant 0 : i32
    return %arg0, %c0_i32, %c0_i32_0 : i32, i32, i32
  }
  func.func @transform_2(%arg0: i32, %arg1: i32) -> (i32, i32, i32) {
    %c0_i32 = arith.constant 0 : i32
    %c0_i32_0 = arith.constant 0 : i32
    %c0_i32_1 = arith.constant 0 : i32
    return %arg1, %c0_i32, %c0_i32_0 : i32, i32, i32
  }
  func.func @transform_3(%arg0: i32, %arg1: i32) -> (i32, i32, i32) {
    %c0_i32 = arith.constant 0 : i32
    %c0_i32_0 = arith.constant 0 : i32
    %c0_i32_1 = arith.constant 0 : i32
    return %arg1, %c0_i32, %c0_i32_0 : i32, i32, i32
  }
  func.func @transform_4(%arg0: i32, %arg1: i32) -> (i32, i32, i32) {
    %c0_i32 = arith.constant 0 : i32
    %c0_i32_0 = arith.constant 0 : i32
    %c0_i32_1 = arith.constant 0 : i32
    return %arg1, %c0_i32, %c0_i32_0 : i32, i32, i32
  }
  func.func @transform_5(%arg0: i32, %arg1: i32) -> (i32, i32, i32) {
    %c0_i32 = arith.constant 0 : i32
    %c0_i32_0 = arith.constant 0 : i32
    %c0_i32_1 = arith.constant 0 : i32
    return %arg1, %c0_i32, %c0_i32_0 : i32, i32, i32
  }
  func.func @transform_6(%arg0: i32, %arg1: i32) -> (i32, i32, i32) {
    %c0_i32 = arith.constant 0 : i32
    %c0_i32_0 = arith.constant 0 : i32
    %c0_i32_1 = arith.constant 0 : i32
    return %arg1, %c0_i32, %c0_i32_0 : i32, i32, i32
  }
  func.func @transform_7(%arg0: i32, %arg1: i32) -> (i32, i32, i32) {
    %c0_i32 = arith.constant 0 : i32
    %c0_i32_0 = arith.constant 0 : i32
    %c0_i32_1 = arith.constant 0 : i32
    return %arg1, %c0_i32, %c0_i32_0 : i32, i32, i32
  }
  func.func @transform_8(%arg0: i32, %arg1: i32) -> (i32, i32, i32) {
    %c0_i32 = arith.constant 0 : i32
    %c0_i32_0 = arith.constant 0 : i32
    %c0_i32_1 = arith.constant 0 : i32
    return %arg1, %c0_i32, %c0_i32_0 : i32, i32, i32
  }
  func.func @transform_9(%arg0: i32, %arg1: i32) -> (i32, i32, i32) {
    %c0_i32 = arith.constant 0 : i32
    %c0_i32_0 = arith.constant 0 : i32
    %c0_i32_1 = arith.constant 0 : i32
    return %arg1, %c0_i32, %c0_i32_0 : i32, i32, i32
  }
  func.func @transform_10(%arg0: i32, %arg1: i32) -> (i32, i32, i32) {
    %c0_i32 = arith.constant 0 : i32
    %c0_i32_0 = arith.constant 0 : i32
    %c0_i32_1 = arith.constant 0 : i32
    return %arg1, %c0_i32, %c0_i32_0 : i32, i32, i32
  }
  func.func @transform_11(%arg0: i32, %arg1: i32) -> (i32, i32, i32) {
    %c0_i32 = arith.constant 0 : i32
    %c0_i32_0 = arith.constant 0 : i32
    %c0_i32_1 = arith.constant 0 : i32
    return %arg1, %c0_i32, %c0_i32_0 : i32, i32, i32
  }
  func.func @transform_12(%arg0: i32, %arg1: i32) -> (i32, i32, i32) {
    %c0_i32 = arith.constant 0 : i32
    %c0_i32_0 = arith.constant 0 : i32
    %c0_i32_1 = arith.constant 0 : i32
    return %arg1, %c0_i32, %c0_i32_0 : i32, i32, i32
  }
  func.func @transform_13(%arg0: i32, %arg1: i32) -> (i32, i32, i32) {
    %c0_i32 = arith.constant 0 : i32
    %c0_i32_0 = arith.constant 0 : i32
    %c0_i32_1 = arith.constant 0 : i32
    return %arg1, %c0_i32, %c0_i32_0 : i32, i32, i32
  }
  func.func @transform_14(%arg0: i32, %arg1: i32) -> (i32, i32) {
    %c0_i32 = arith.constant 0 : i32
    %c0_i32_0 = arith.constant 0 : i32
    %c0_i32_1 = arith.constant 0 : i32
    return %c0_i32, %c0_i32_0 : i32, i32
  }
  func.func @transform_15(%arg0: i32, %arg1: i32) -> (i32, i32) {
    %c0_i32 = arith.constant 0 : i32
    %c0_i32_0 = arith.constant 0 : i32
    %c0_i32_1 = arith.constant 0 : i32
    return %c0_i32, %c0_i32_0 : i32, i32
  }
  func.func @transform_16(%arg0: i32, %arg1: i32) -> (i32, i32, i32) {
    %c0_i32 = arith.constant 0 : i32
    %c0_i32_0 = arith.constant 0 : i32
    %c0_i32_1 = arith.constant 0 : i32
    return %arg0, %c0_i32, %c0_i32_0 : i32, i32, i32
  }
}

</mosaic_0001>

<bundles_post_ra>
// kernel: tpu_custom_call.1
= control target key start
LH: loop header
LB: loop body
LE: loop exit
PB: predicated region body
PF: predicated region fallthrough
CT: control target
= control target key end

     0   :  { %s7589_s0 = inlined_call_operand.hbm [shape: f32[2,8,256], index: 0, kind: input, shape index: {}]   ;;  %s7590_s1 = inlined_call_operand.hbm [shape: f32[2,1,8], index: 1, kind: input, shape index: {}]   ;;  %s7591_s2 = inlined_call_operand.hbm [shape: f32[2,1,256], index: 2, kind: input, shape index: {}]   ;;  %s7592_s3 = inlined_call_operand.hbm [shape: f32[2,1,256], index: 3, kind: input, shape index: {}]   ;;  %s7593_s4 = inlined_call_operand.hbm [shape: bf16[2,256,768], index: 4, kind: input, shape index: {}]   ;;  %s7594_s5 = inlined_call_operand.vmem [shape: f32[2,1,768], index: 5, kind: input, shape index: {}]   ;;  %s7595_s6 = inlined_call_operand.hbm [shape: bf16[2,256,256], index: 6, kind: input, shape index: {}]   ;;  %s7596_s7 = inlined_call_operand.hbm [shape: f32[2,1,256], index: 7, kind: input, shape index: {}]   ;;  %s7597_s8 = inlined_call_operand.hbm [shape: f32[2,1,256], index: 8, kind: input, shape index: {}]   ;;  %s7598_s9 = inlined_call_operand.vmem [shape: f32[2,1,256], index: 9, kind: input, shape index: {}]   ;;  %s7599_s10 = inlined_call_operand.hbm [shape: bf16[2,256,1024], index: 10, kind: input, shape index: {}]   ;;  %s7600_s11 = inlined_call_operand.vmem [shape: f32[2,1,1024], index: 11, kind: input, shape index: {}]   ;;  %s7601_s12 = inlined_call_operand.hbm [shape: bf16[2,1024,256], index: 12, kind: input, shape index: {}]   ;;  %s7602_s13 = inlined_call_operand.vmem [shape: f32[2,1,256], index: 13, kind: input, shape index: {}]   ;;  %s7603_s14 = inlined_call_operand.vmem [shape: f32[1,256], index: 14, kind: input, shape index: {}]   ;;  %s7604_s15 = inlined_call_operand.vmem [shape: f32[1,256], index: 15, kind: input, shape index: {}]   ;;  %s7605_s16 = inlined_call_operand.hbm [shape: f32[2,1,256], index: 16, kind: output, shape index: {}]  }
   0x1   :  { %7642 = sst [smem:[#allocation47_spill]] %s7589_s0 }
   0x2   :  { %7643 = sst [smem:[#allocation48_spill]] %s7590_s1 }
   0x3   :  { %7644 = sst [smem:[#allocation49_spill]] %s7591_s2 }
   0x4   :  { %7645 = sst [smem:[#allocation50_spill]] %s7592_s3 }
   0x5   :  { %7646 = sst [smem:[#allocation51_spill]] %s7593_s4 }
   0x6   :  { %7647 = sst [smem:[#allocation52_spill]] %s7594_s5 }
   0x7   :  { %7648 = sst [smem:[#allocation53_spill]] %s7595_s6 }
   0x8   :  { %7649 = sst [smem:[#allocation54_spill]] %s7596_s7 }
   0x9   :  { %7650 = sst [smem:[#allocation55_spill]] %s7597_s8 }
   0xa   :  { %7651 = sst [smem:[#allocation56_spill]] %s7598_s9 }
   0xb   :  { %7652 = sst [smem:[#allocation57_spill]] %s7599_s10 }
   0xc   :  { %7653 = sst [smem:[#allocation58_spill]] %s7600_s11 }
   0xd   :  { %7654 = sst [smem:[#allocation59_spill]] %s7601_s12 }
   0xe   :  { %7655 = sst [smem:[#allocation60_spill]] %s7602_s13 }
   0xf   :  { %7656 = sst [smem:[#allocation61_spill]] %s7603_s14 }
  0x10   :  { %7657 = sst [smem:[#allocation62_spill]] %s7604_s15 }
  0x11   :  { %7658 = sst [smem:[#allocation63_spill]] %s7605_s16 }
  0x12   :  { %21 = vsyncpa [#allocation4], 0 }
  0x13   :  { %23 = vsyncpa [#allocation4 + $0x1], 0 }
  0x14   :  { %24 = vsyncpa [#allocation7], 0 }
  0x15   :  { %26 = vsyncpa [#allocation7 + $0x1], 0 }
  0x16   :  { %27 = vsyncpa [#allocation10], 0 }
  0x17   :  { %29 = vsyncpa [#allocation10 + $0x1], 0 }
  0x18   :  { %30 = vsyncpa [#allocation13], 0 }
  0x19   :  { %32 = vsyncpa [#allocation13 + $0x1], 0 }
  0x1a   :  { %33 = vsyncpa [#allocation16], 0 }
  0x1b   :  { %35 = vsyncpa [#allocation16 + $0x1], 0 }
  0x1c   :  { %36 = vsyncpa [#allocation19], 0 }
  0x1d   :  { %38 = vsyncpa [#allocation19 + $0x1], 0 }
  0x1e   :  { %39 = vsyncpa [#allocation5], 0 }
  0x1f   :  { %41 = vsyncpa [#allocation5 + $0x1], 0  ;;  %s6389_s21 = smov 0   ;;  %s6391_s22 = smov 0  }
  0x20   :  { %s6393_s23 = smov 0   ;;  %s6395_s24 = smov 0  }
  0x21   :  { %s6397_s25 = smov 0   ;;  %s6399_s26 = smov 0  }
  0x22   :  { %s6401_s27 = smov 0   ;;  %s6403_s28 = smov 0  }
  0x23   :  { %s6405_s29 = smov 0   ;;  %s6407_s30 = smov 0  }
  0x24   :  { %s6409_s0 = smov 0  }
  0x25 LB: > { %7659 = sst [smem:[#allocation29_spill]] %s6244_s22  ;;  %s6445_s17 = sadd.s32 4294967295, %s6280_s0   ;;  %s6280_s0 = sphi %s6409_s0, %s47_s0   ;;  %s6276_s30 = sphi %s6407_s30, %s7748_s30   ;;  %s6272_s29 = sphi %s6405_s29, %s7747_s29   ;;  %s6268_s28 = sphi %s6403_s28, %s7751_s28   ;;  %s6264_s27 = sphi %s6401_s27, %s7745_s27   ;;  %s6260_s26 = sphi %s6399_s26, %s7744_s26   ;;  %s6256_s25 = sphi %s6397_s25, %s7750_s25   ;;  %s6252_s24 = sphi %s6395_s24, %s7749_s24   ;;  %s6248_s23 = sphi %s6393_s23, %s7742_s23   ;;  %s6244_s22 = sphi %s6391_s22, %s7741_s22   ;;  %s6240_s21 = sphi %s6389_s21, %s7740_s21  }
  0x26   : > { %7660 = sst [smem:[#allocation30_spill]] %s6248_s23  ;;  %s4751_s18 = sadd.s32 4294967294, %s6280_s0  }
  0x27   : > { %7661 = sst [smem:[#allocation31_spill]] %s6252_s24  ;;  %s56_s19 = sadd.s32 1, %s6272_s29 }
  0x28   : > { %7662 = sst [smem:[#allocation32_spill]] %s6260_s26  ;;  %s59_s20 = sadd.s32 1, %s6276_s30 }
  0x29   : > { %7663 = sst [smem:[#allocation33_spill]] %s6264_s27  ;;  %p57_p0 = scmp.ge.s32.totalorder %s56_s19, 2 }
  0x2a   : > { %7664 = sst [smem:[#allocation34_spill]] %s6268_s28  ;;  %s66_s16 = sadd.s32 1, %s6260_s26 }
  0x2b   : > { %7665 = sst [smem:[#allocation35_spill]] %s6272_s29  ;;  %p73_p1 = scmp.ne.s32.totalorder %s6260_s26, %s6256_s25 }
  0x2c   : > { %7666 = sst [smem:[#allocation36_spill]] %s6276_s30  ;;  %p74_p2 = scmp.eq.s32.totalorder %s6280_s0, 0 }
  0x2d   : > { %7667 = sst [smem:[#allocation37_spill]] %s6280_s0  ;;  %s7753_s19 = smov (%p57_p0, %s56_s19), 0 }
  0x2e   : > { %7668 = sst [smem:[#allocation38_spill]] %s6445_s17  ;;  %s7755_s20 = smov (!%p57_p0, %s59_s20), %s6276_s30 }
  0x2f   : > { %7669 = sst [smem:[#allocation39_spill]] %s7753_s19  ;;  %p6462_p3 = por %p74_p2, %p73_p1 }
  0x30   : > { %p7610_p4 = scmp.ne.s32.totalorder %s6256_s25, %s6252_s24  ;;  %p61_p5 = scmp.ge.s32.totalorder %s7755_s20, 2 }
  0x31   : > { %p80_p6 = scmp.eq.s32.totalorder %s6445_s17, 0  ;;  %s115_s15 = ssub.s32 %s6272_s29, %s7753_s19 }
  0x32   : > { %s118_s14 = sadd.s32 1, %s6248_s23  ;;  %s7757_s20 = smov (%p61_p5, %s7755_s20), 0 }
  0x33   : > { %7671 = sst [smem:[#allocation40_spill]] %s7757_s20  ;;  %p6479_p7 = por %p80_p6, %p7610_p4 }
  0x34   : > { %p116_p8 = scmp.eq.s32.totalorder %s115_s15, 0  ;;  %s63_s19 = ssub.s32 %s6276_s30, %s7757_s20 }
  0x35   : > { %s7672_s13 = scalar_select %p6479_p7, 1, 0 }
  0x36   : > { %p125_p9 = scmp.ne.s32.totalorder %s6248_s23, %s6244_s22  ;;  %p64_p10 = scmp.eq.s32.totalorder %s63_s19, 0 }
  0x37   : > { %7673 = sst [smem:[#allocation41_spill]] %s7672_s13  ;;  %p131_p11 = scmp.ne.s32.totalorder %s6244_s22, %s6240_s21 }
  0x38   : > { %s6490_s11 = scalar_select %p116_p8, %s6248_s23, %s118_s14  }
  0x39   : > { %s6493_s5 = scalar_select %p64_p10, %s6260_s26, %s66_s16  }
  0x3a   : > { %7674 = sst [smem:[#allocation42_spill]] %s6490_s11  ;;  %p6497_p12 = por %p125_p9, %p74_p2 }
  0x3b   : > { %7675 = sst [smem:[#allocation43_spill]] %s6493_s5  ;;  %p6503_p13 = por %p131_p11, %p80_p6 }
  0x3c   : > { %p483_p0 = scmp.eq.s32.totalorder %s6445_s17, 3  ;;  %p489_p5 = scmp.eq.s32.totalorder %s4751_s18, 3 }
  0x3d   : > { %s7677_s27 = scalar_select %p6503_p13, 1, 0 }
  0x3e   : > { %p7618_p4 = scmp.lt.s32.totalorder %s6280_s0, 4  ;;  %p6512_p7 = por %p483_p0, %p73_p1 }
  0x3f   : > { %7678 = sst [smem:[#allocation44_spill]] %s7677_s27  ;;  %p7681_p8 = scmp.ne.s32.totalorder %s6256_s25, %s6252_s24 }
  0x40   : > { %s7679_s15 = scalar_select %p6512_p7, 1, 0 }
  0x41   : > { %p6519_p10 = por %p489_p5, %p7681_p8  ;;  %s6524_s16 = sand.u32 1, %s6260_s26  }
  0x42   : > { %7680 = sst [smem:[#allocation45_spill]] %s7679_s15  ;;  %p6530_p2 = pnand %p7618_p4, %p6462_p3 }
  0x43   : > { %s7682_s14 = scalar_select %p6519_p10, 1, 0 }
  0x44   : > { %s7684_s21 = scalar_select %p6530_p2, 1, 0 }
  0x45   : > { %7683 = sst [smem:[#allocation46_spill]] %s7682_s14  ;;  %s6535_s18 = sand.u32 1, %s6280_s0  }
  0x46   : > { %s4757_s19 = sshll.u32 %s6276_s30, 4  ;;  %s537_s20 = scalar_lea.vmem [#allocation6], %s6524_s16 }
  0x47   : > { %s544_s5 = sshll.u32 %s537_s20, 4  ;;  %s7685_s1 = sld [smem:[#allocation48_spill]]  ;;  %s6544_s5 = int_to_ptr.vmem [resolvable:$true] %s544_s5 }
  0x48   : > { %p7627_p3 = pneg %p6530_p2 }
  0x4d   : > { %s6542_s26 = scalar_lea.hbm %s7685_s1, %s4757_s19  ;;  %s5839_s11 = scalar_lea.hbm %s7685_s1, 32 }
  0x4e   : > { %s5834_s14 = scalar_lea.hbm %s6542_s26, 16  ;;  %p5840_p11 = scmp.lt.u32.totalorder %s6542_s26, %s7685_s1 }
  0x4f   : > { %p5835_p1 = scmp.ne.s32.totalorder %s6542_s26, %s5834_s14  ;;  %p5841_p0 = scmp.lt.u32.totalorder %s5839_s11, %s5834_s14 }
  0x50   : > { %p5843_p8 = scmp.lt.u32.totalorder %s5834_s14, %s6542_s26 }
  0x51   : > { %p5837_p6 = pnand %p7627_p3, %p5835_p1  ;;  %p5842_p5 = por %p5841_p0, %p5840_p11 }
  0x53   : > { %p5838_p9 = pneg %p5837_p6  ;;  %p5844_p4 = por %p5843_p8, %p5842_p5 }
  0x55   : > { %p5845_p10 = pnand %p5844_p4, %p5838_p9 }
  0x57   : > { %5848 = shalt.err (!%p5845_p10)
}
  0x58   : > { %s5849_s28 = scalar_lea.vmem %s6544_s5, 16  ;;  %s6282_s15 = smov [#allocation6]  }
  0x59   : > { %p5850_p1 = scmp.ne.s32.totalorder %s6544_s5, %s5849_s28  ;;  %s5854_s20 = sshll.u32 %s6282_s15, 4  ;;  %s5855_s20 = int_to_ptr.vmem [resolvable:$false] %s5854_s20 }
  0x5a   : > { %s5856_s24 = scalar_lea.vmem %s5855_s20, 32  ;;  %p5857_p13 = scmp.lt.s32.totalorder %s6544_s5, %s5855_s20 }
  0x5b   : > { %p5852_p6 = pnand %p5850_p1, %p7627_p3  ;;  %p5858_p11 = scmp.lt.s32.totalorder %s5856_s24, %s5849_s28 }
  0x5d   : > { %p5853_p7 = pneg %p5852_p6  ;;  %p5859_p0 = por %p5858_p11, %p5857_p13 }
  0x5f   : > { %p5860_p5 = pnand %p5859_p0, %p5853_p7 }
  0x61   : > { %5863 = shalt.err (!%p5860_p5)
}
  0x62   : > { %s7686_s14 = scalar_lea.sflag [#allocation7], %s6535_s18  ;;  %p7687_p4 = scmp.lt.s32.totalorder %s6280_s0, 4 }
  0x63   : > { %5270 = dma.hbm_to_vmem [thread:$0]  (!%p6530_p2), %s6542_s26, 16, %s6544_s5, %s7686_s14  }
  0x64   : > { %p6578_p10 = pnand %p7687_p4, %p6497_p12  ;;  %p4780_p7 = scmp.ge.s32.totalorder %s6280_s0, 1 }
  0x65   : > { %p737_p13 = scmp.lt.s32.totalorder %s6280_s0, 5  ;;  %s6585_s11 = sand.u32 1, %s6248_s23  }
  0x66   : > { %s7688_s28 = scalar_select %p6578_p10, 1, 0 }
  0x67   : > { %s6588_s19 = sshll.u32 %s6585_s11, 1  ;;  %p6590_p9 = pnand %p4780_p7, %p737_p13 }
  0x68   : > { %s6595_s5 = sshll.u32 %s6272_s29, 5  ;;  %s7690_s3 = sld [smem:[#allocation50_spill]] }
  0x69   : > { %s7689_s15 = scalar_select %p6590_p9, 1, 0 }
  0x6a   : > { %s574_s24 = scalar_lea.vmem [#allocation9], %s6588_s19  ;;  %p6611_p8 = pneg %p6578_p10 }
  0x6b   : > { %s582_s14 = sshll.u32 %s574_s24, 4  ;;  %s6604_s14 = int_to_ptr.vmem [resolvable:$true] %s582_s14 }
  0x6e   : > { %s6601_s20 = scalar_lea.hbm %s7690_s3, %s6595_s5  ;;  %s5869_s27 = scalar_lea.hbm %s7690_s3, 64 }
  0x6f   : > { %s5864_s23 = scalar_lea.hbm %s6601_s20, 32  ;;  %p5870_p11 = scmp.lt.u32.totalorder %s6601_s20, %s7690_s3 }
  0x70   : > { %p5865_p12 = scmp.ne.s32.totalorder %s6601_s20, %s5864_s23  ;;  %p5871_p0 = scmp.lt.u32.totalorder %s5869_s27, %s5864_s23 }
  0x71   : > { %p5873_p4 = scmp.lt.u32.totalorder %s5864_s23, %s6601_s20 }
  0x72   : > { %p5867_p1 = pnand %p6611_p8, %p5865_p12  ;;  %p5872_p5 = por %p5871_p0, %p5870_p11 }
  0x74   : > { %p5868_p6 = pneg %p5867_p1  ;;  %p5874_p7 = por %p5873_p4, %p5872_p5 }
  0x76   : > { %p5875_p13 = pnand %p5874_p7, %p5868_p6 }
  0x78   : > { %5878 = shalt.err (!%p5875_p13)
}
  0x79   : > { %s5879_s1 = scalar_lea.vmem %s6604_s14, 32  ;;  %s6283_s9 = smov [#allocation9]  }
  0x7a   : > { %p5880_p12 = scmp.ne.s32.totalorder %s6604_s14, %s5879_s1  ;;  %s5884_s26 = sshll.u32 %s6283_s9, 4  ;;  %s5885_s26 = int_to_ptr.vmem [resolvable:$false] %s5884_s26 }
  0x7b   : > { %s5886_s22 = scalar_lea.vmem %s5885_s26, 64  ;;  %p5887_p9 = scmp.lt.s32.totalorder %s6604_s14, %s5885_s26 }
  0x7c   : > { %p5882_p1 = pnand %p5880_p12, %p6611_p8  ;;  %p5888_p2 = scmp.lt.s32.totalorder %s5886_s22, %s5879_s1 }
  0x7e   : > { %p5883_p3 = pneg %p5882_p1  ;;  %p5889_p11 = por %p5888_p2, %p5887_p9 }
  0x80   : > { %p5890_p0 = pnand %p5889_p11, %p5883_p3 }
  0x82   : > { %5893 = shalt.err (!%p5890_p0)
}
  0x83   : > { %s7692_s23 = scalar_lea.sflag [#allocation10], %s6535_s18  ;;  %s4765_s27 = sshll.u32 %s6585_s11, 8 }
  0x84   : > { %5276 = dma.hbm_to_vmem [thread:$0]  (!%p6578_p10), %s6601_s20, 32, %s6604_s14, %s7692_s23  }
  0x85   : > { %s5198_s24 = sshll.u32 %s6272_s29, 12  ;;  %s7693_s6 = sld [smem:[#allocation53_spill]] }
  0x86   : > { %s621_s26 = scalar_lea.vmem [#allocation12], %s4765_s27  ;;  %s7637_s17 = scalar_lea.sflag [#allocation13], %s6535_s18 }
  0x87   : > { %s628_s22 = sshll.u32 %s621_s26, 4  ;;  %s6643_s22 = int_to_ptr.vmem [resolvable:$true] %s628_s22 }
  0x8b   : > { %s6641_s1 = scalar_lea.hbm %s7693_s6, %s5198_s24  ;;  %s5899_s3 = scalar_lea.hbm %s7693_s6, 8192 }
  0x8c   : > { %s5894_s13 = scalar_lea.hbm %s6641_s1, 4096  ;;  %p5900_p6 = scmp.lt.u32.totalorder %s6641_s1, %s7693_s6 }
  0x8d   : > { %p5895_p2 = scmp.ne.s32.totalorder %s6641_s1, %s5894_s13  ;;  %p5901_p5 = scmp.lt.u32.totalorder %s5899_s3, %s5894_s13 }
  0x8e   : > { %p5903_p7 = scmp.lt.u32.totalorder %s5894_s13, %s6641_s1 }
  0x8f   : > { %p5897_p3 = pnand %p5895_p2, %p6611_p8  ;;  %p5902_p4 = por %p5901_p5, %p5900_p6 }
  0x91   : > { %p5898_p9 = pneg %p5897_p3  ;;  %p5904_p13 = por %p5903_p7, %p5902_p4 }
  0x93   : > { %p5905_p12 = pnand %p5904_p13, %p5898_p9 }
  0x95   : > { %5908 = shalt.err (!%p5905_p12)
}
  0x96   : > { %s5909_s27 = scalar_lea.vmem %s6643_s22, 4096  ;;  %s6284_s9 = smov [#allocation12]  }
  0x97   : > { %p5910_p1 = scmp.ne.s32.totalorder %s6643_s22, %s5909_s27  ;;  %s5914_s26 = sshll.u32 %s6284_s9, 4  ;;  %s5915_s26 = int_to_ptr.vmem [resolvable:$false] %s5914_s26 }
  0x98   : > { %s5916_s20 = scalar_lea.vmem %s5915_s26, 8192  ;;  %p5917_p2 = scmp.lt.s32.totalorder %s6643_s22, %s5915_s26 }
  0x99   : > { %p5912_p11 = pnand %p5910_p1, %p6611_p8  ;;  %p5918_p3 = scmp.lt.s32.totalorder %s5916_s20, %s5909_s27 }
  0x9b   : > { %p5913_p0 = pneg %p5912_p11  ;;  %p5919_p6 = por %p5918_p3, %p5917_p2 }
  0x9d   : > { %p5920_p5 = pnand %p5919_p6, %p5913_p0 }
  0x9f   : > { %5923 = shalt.err (!%p5920_p5)
}
  0xa0   : > { %s7633_s13 = smov 128   ;;  %s7634_s14 = smov 8  }
  0xa1   : > { %5282 = dma.hbm_to_vmem [thread:$0]  (!%p6578_p10), %s6641_s1, 4096, %s6643_s22, %s7637_s17, %s7633_s13, %s7633_s13, %s7634_s14  }
  0xa2   : > { %s7694_s8 = sld [smem:[#allocation55_spill]]  ;;  %s661_s27 = scalar_lea.vmem [#allocation15], %s6588_s19 }
  0xa3   : > { %s669_s9 = sshll.u32 %s661_s27, 4  ;;  %s658_s26 = scalar_lea.sflag [#allocation16], %s6535_s18  ;;  %s670_s9 = int_to_ptr.vmem [resolvable:$true] %s669_s9 }
  0xa8   : > { %s6676_s24 = scalar_lea.hbm %s7694_s8, %s6595_s5  ;;  %s5929_s22 = scalar_lea.hbm %s7694_s8, 64 }
  0xa9   : > { %s5924_s20 = scalar_lea.hbm %s6676_s24, 32  ;;  %p5930_p13 = scmp.lt.u32.totalorder %s6676_s24, %s7694_s8 }
  0xaa   : > { %p5925_p9 = scmp.ne.s32.totalorder %s6676_s24, %s5924_s20  ;;  %p5931_p12 = scmp.lt.u32.totalorder %s5929_s22, %s5924_s20 }
  0xab   : > { %p5933_p11 = scmp.lt.u32.totalorder %s5924_s20, %s6676_s24 }
  0xac   : > { %p5927_p4 = pnand %p5925_p9, %p6611_p8  ;;  %p5932_p1 = por %p5931_p12, %p5930_p13 }
  0xae   : > { %p5928_p7 = pneg %p5927_p4  ;;  %p5934_p0 = por %p5933_p11, %p5932_p1 }
  0xb0   : > { %p5935_p2 = pnand %p5934_p0, %p5928_p7 }
  0xb2   : > { %5938 = shalt.err (!%p5935_p2)
}
  0xb3   : > { %s5939_s27 = scalar_lea.vmem %s670_s9, 32  ;;  %s6287_s13 = smov [#allocation15]  }
  0xb4   : > { %p5940_p3 = scmp.ne.s32.totalorder %s670_s9, %s5939_s27  ;;  %s5944_s14 = sshll.u32 %s6287_s13, 4  ;;  %s5945_s14 = int_to_ptr.vmem [resolvable:$false] %s5944_s14 }
  0xb5   : > { %s5946_s6 = scalar_lea.vmem %s5945_s14, 64  ;;  %p5947_p9 = scmp.lt.s32.totalorder %s670_s9, %s5945_s14 }
  0xb6   : > { %p5942_p6 = pnand %p5940_p3, %p6611_p8  ;;  %p5948_p4 = scmp.lt.s32.totalorder %s5946_s6, %s5939_s27 }
  0xb8   : > { %p5943_p5 = pneg %p5942_p6  ;;  %p5949_p10 = por %p5948_p4, %p5947_p9 }
  0xba   : > { %p5950_p12 = pnand %p5949_p10, %p5943_p5 }
  0xbc   : > { %5953 = shalt.err (!%p5950_p12)
}
  0xbd   : > { %p7695_p13 = scmp.ne.s32.totalorder %s7688_s28, 0  ;;  %s4754_s20 = sshll.u32 %s6524_s16, 4 }
  0xbe   : > { %s5195_s13 = sshll.u32 %s6276_s30, 8  ;;  %s7696_s14 = sld [smem:[#allocation47_spill]] }
  0xbf   : > { %5288 = dma.hbm_to_vmem [thread:$0]  (!%p7695_p13), %s6676_s24, 32, %s670_s9, %s658_s26  }
  0xc0   : > { %s519_s23 = scalar_lea.vmem [#allocation3], %s4754_s20  ;;  %s7697_s2 = sld [smem:[#allocation49_spill]] }
  0xc1   : > { %s527_s27 = sshll.u32 %s519_s23, 4  ;;  %s516_s24 = scalar_lea.sflag [#allocation4], %s6524_s16  ;;  %s6706_s27 = int_to_ptr.vmem [resolvable:$true] %s527_s27 }
  0xc2   : > { %p7698_p7 = scmp.ne.s32.totalorder %s7684_s21, 0 }
  0xc4   : > { %s6704_s3 = scalar_lea.hbm %s7696_s14, %s5195_s13  ;;  %p7699_p1 = pneg %p7698_p7 }
  0xc5   : > { %s5954_s9 = scalar_lea.hbm %s6704_s3, 256  ;;  %s5959_s22 = scalar_lea.hbm %s7696_s14, 512 }
  0xc6   : > { %s6712_s8 = scalar_lea.hbm %s7697_s2, %s6595_s5  ;;  %p5955_p10 = scmp.ne.s32.totalorder %s6704_s3, %s5954_s9 }
  0xc7   : > { %p5960_p2 = scmp.lt.u32.totalorder %s6704_s3, %s7696_s14  ;;  %p5961_p3 = scmp.lt.u32.totalorder %s5959_s22, %s5954_s9 }
  0xc8   : > { %p5957_p11 = pnand %p5955_p10, %p7699_p1  ;;  %p5963_p5 = scmp.lt.u32.totalorder %s5954_s9, %s6704_s3 }
  0xc9   : > { %p5962_p6 = por %p5961_p3, %p5960_p2 }
  0xca   : > { %p5958_p0 = pneg %p5957_p11 }
  0xcb   : > { %p5964_p9 = por %p5963_p5, %p5962_p6 }
  0xcd   : > { %p5965_p4 = pnand %p5964_p9, %p5958_p0 }
  0xcf   : > { %5968 = shalt.err (!%p5965_p4)
}
  0xd0   : > { %s5969_s17 = scalar_lea.vmem %s6706_s27, 256  ;;  %p7700_p10 = pmov %p7699_p1 }
  0xd1   : > { %p5970_p12 = scmp.ne.s32.totalorder %s6706_s27, %s5969_s17  ;;  %s6288_s16 = smov [#allocation3]  }
  0xd2   : > { %s5974_s6 = sshll.u32 %s6288_s16, 4  ;;  %s5975_s6 = int_to_ptr.vmem [resolvable:$false] %s5974_s6 }
  0xd3   : > { %p5972_p1 = pnand %p5970_p12, %p7700_p10  ;;  %s5976_s13 = scalar_lea.vmem %s5975_s6, 512 }
  0xd4   : > { %p5977_p13 = scmp.lt.s32.totalorder %s6706_s27, %s5975_s6  ;;  %p5978_p2 = scmp.lt.s32.totalorder %s5976_s13, %s5969_s17 }
  0xd5   : > { %p5973_p11 = pneg %p5972_p1 }
  0xd6   : > { %p5979_p3 = por %p5978_p2, %p5977_p13 }
  0xd8   : > { %p5980_p6 = pnand %p5979_p3, %p5973_p11 }
  0xda   : > { %5983 = shalt.err (!%p5980_p6)
}
  0xdb   : > { %5267 = dma.hbm_to_vmem [thread:$0]  (!%p7698_p7), %s6704_s3, 256, %s6706_s27, %s516_s24  }
  0xdc   : > { %s555_s9 = scalar_lea.vmem [#allocation8], %s6588_s19  ;;  %s5236_s22 = smul.u32 768, %s6585_s11 }
  0xdd   : > { %s563_s1 = sshll.u32 %s555_s9, 4  ;;  %s5237_s20 = smul.u32 12288, %s6272_s29  ;;  %s564_s1 = int_to_ptr.vmem [resolvable:$true] %s563_s1 }
  0xde   : > { %s5984_s23 = scalar_lea.hbm %s6712_s8, 32  ;;  %s5989_s16 = scalar_lea.hbm %s7697_s2, 64 }
  0xdf   : > { %p5985_p13 = scmp.ne.s32.totalorder %s6712_s8, %s5984_s23  ;;  %p5990_p9 = scmp.lt.u32.totalorder %s6712_s8, %s7697_s2 }
  0xe0   : > { %p5991_p4 = scmp.lt.u32.totalorder %s5989_s16, %s5984_s23  ;;  %p5993_p12 = scmp.lt.u32.totalorder %s5984_s23, %s6712_s8 }
  0xe1   : > { %p5987_p0 = pnand %p5985_p13, %p6611_p8 }
  0xe2   : > { %p5992_p7 = por %p5991_p4, %p5990_p9 }
  0xe3   : > { %p5988_p5 = pneg %p5987_p0 }
  0xe4   : > { %p5994_p10 = por %p5993_p12, %p5992_p7 }
  0xe6   : > { %p5995_p1 = pnand %p5994_p10, %p5988_p5 }
  0xe8   : > { %5998 = shalt.err (!%p5995_p1)
}
  0xe9   : > { %s5999_s3 = scalar_lea.vmem %s564_s1, 32  ;;  %s6289_s27 = smov [#allocation8]  }
  0xea   : > { %p6000_p11 = scmp.ne.s32.totalorder %s564_s1, %s5999_s3  ;;  %s6004_s24 = sshll.u32 %s6289_s27, 4  ;;  %s6005_s24 = int_to_ptr.vmem [resolvable:$false] %s6004_s24 }
  0xeb   : > { %s6006_s9 = scalar_lea.vmem %s6005_s24, 64  ;;  %p6007_p6 = scmp.lt.s32.totalorder %s564_s1, %s6005_s24 }
  0xec   : > { %p6002_p2 = pnand %p6000_p11, %p6611_p8  ;;  %p6008_p13 = scmp.lt.s32.totalorder %s6006_s9, %s5999_s3 }
  0xee   : > { %p6003_p3 = pneg %p6002_p2  ;;  %p6009_p0 = por %p6008_p13, %p6007_p6 }
  0xf0   : > { %p6010_p4 = pnand %p6009_p0, %p6003_p3 }
  0xf2   : > { %6013 = shalt.err (!%p6010_p4)
}
  0xf3   : > { %p7701_p9 = scmp.ne.s32.totalorder %s7688_s28, 0  ;;  %s7702_s23 = scalar_lea.sflag [#allocation7], %s6535_s18 }
  0xf4   : > { %s7703_s4 = sld [smem:[#allocation51_spill]]  ;;  %s593_s6 = scalar_lea.vmem [#allocation11], %s5236_s22 }
  0xf5   : > { %5273 = dma.hbm_to_vmem [thread:$0]  (!%p7701_p9), %s6712_s8, 32, %s564_s1, %s7702_s23  }
  0xf6   : > { %s600_s13 = sshll.u32 %s593_s6, 4  ;;  %s6767_s13 = int_to_ptr.vmem [resolvable:$true] %s600_s13 }
  0xfa   : > { %s6763_s16 = scalar_lea.hbm %s7703_s4, %s5237_s20  ;;  %s6019_s27 = scalar_lea.hbm %s7703_s4, 24576 }
  0xfb   : > { %s6014_s3 = scalar_lea.hbm %s6763_s16, 12288  ;;  %p6020_p10 = scmp.lt.u32.totalorder %s6763_s16, %s7703_s4 }
  0xfc   : > { %p6015_p5 = scmp.ne.s32.totalorder %s6763_s16, %s6014_s3  ;;  %p6021_p1 = scmp.lt.u32.totalorder %s6019_s27, %s6014_s3 }
  0xfd   : > { %p6023_p2 = scmp.lt.u32.totalorder %s6014_s3, %s6763_s16 }
  0xfe   : > { %p6017_p7 = pnand %p6015_p5, %p6611_p8  ;;  %p6022_p11 = por %p6021_p1, %p6020_p10 }
 0x100   : > { %p6018_p12 = pneg %p6017_p7  ;;  %p6024_p3 = por %p6023_p2, %p6022_p11 }
 0x102   : > { %p6025_p6 = pnand %p6024_p3, %p6018_p12 }
 0x104   : > { %6028 = shalt.err (!%p6025_p6)
}
 0x105   : > { %s6029_s22 = scalar_lea.vmem %s6767_s13, 12288  ;;  %s6290_s9 = smov [#allocation11]  }
 0x106   : > { %p6030_p13 = scmp.ne.s32.totalorder %s6767_s13, %s6029_s22  ;;  %s6034_s23 = sshll.u32 %s6290_s9, 4  ;;  %s6035_s23 = int_to_ptr.vmem [resolvable:$false] %s6034_s23 }
 0x107   : > { %s6036_s21 = scalar_lea.vmem %s6035_s23, 24576  ;;  %p6037_p5 = scmp.lt.s32.totalorder %s6767_s13, %s6035_s23 }
 0x108   : > { %p6032_p0 = pnand %p6030_p13, %p6611_p8  ;;  %p6038_p7 = scmp.lt.s32.totalorder %s6036_s21, %s6029_s22 }
 0x10a   : > { %p6033_p4 = pneg %p6032_p0  ;;  %p6039_p10 = por %p6038_p7, %p6037_p5 }
 0x10c   : > { %p6040_p1 = pnand %p6039_p10, %p6033_p4 }
 0x10e   : > { %6043 = shalt.err (!%p6040_p1)
}
 0x10f   : > { %s6291_s17 = smov 384   ;;  %s6292_s6 = smov 24  }
 0x110   : > { %s7704_s3 = scalar_lea.sflag [#allocation10], %s6535_s18  ;;  %s7705_s7 = sld [smem:[#allocation54_spill]] }
 0x111   : > { %5279 = dma.hbm_to_vmem [thread:$0]  (!%p7701_p9), %s6763_s16, 12288, %s6767_s13, %s7704_s3, %s6291_s17, %s6291_s17, %s6292_s6  }
 0x112   : > { %s642_s20 = scalar_lea.vmem [#allocation14], %s6588_s19  ;;  %s4774_s22 = sshll.u32 %s6585_s11, 10 }
 0x113   : > { %s650_s24 = sshll.u32 %s642_s20, 4  ;;  %s651_s24 = int_to_ptr.vmem [resolvable:$true] %s650_s24 }
 0x116   : > { %s6796_s27 = scalar_lea.hbm %s7705_s7, %s6595_s5  ;;  %s6049_s13 = scalar_lea.hbm %s7705_s7, 64 }
 0x117   : > { %s6044_s9 = scalar_lea.hbm %s6796_s27, 32  ;;  %p6050_p3 = scmp.lt.u32.totalorder %s6796_s27, %s7705_s7 }
 0x118   : > { %p6045_p12 = scmp.ne.s32.totalorder %s6796_s27, %s6044_s9  ;;  %p6051_p6 = scmp.lt.u32.totalorder %s6049_s13, %s6044_s9 }
 0x119   : > { %p6053_p0 = scmp.lt.u32.totalorder %s6044_s9, %s6796_s27 }
 0x11a   : > { %p6047_p11 = pnand %p6045_p12, %p6611_p8  ;;  %p6052_p13 = por %p6051_p6, %p6050_p3 }
 0x11c   : > { %p6048_p2 = pneg %p6047_p11  ;;  %p6054_p4 = por %p6053_p0, %p6052_p13 }
 0x11e   : > { %p6055_p5 = pnand %p6054_p4, %p6048_p2 }
 0x120   : > { %6058 = shalt.err (!%p6055_p5)
}
 0x121   : > { %s6059_s19 = scalar_lea.vmem %s651_s24, 32  ;;  %s6293_s17 = smov [#allocation14]  }
 0x122   : > { %p6060_p7 = scmp.ne.s32.totalorder %s651_s24, %s6059_s19  ;;  %s6064_s6 = sshll.u32 %s6293_s17, 4  ;;  %s6065_s6 = int_to_ptr.vmem [resolvable:$false] %s6064_s6 }
 0x123   : > { %s6066_s3 = scalar_lea.vmem %s6065_s6, 64  ;;  %p6067_p12 = scmp.lt.s32.totalorder %s651_s24, %s6065_s6 }
 0x124   : > { %p6062_p10 = pnand %p6060_p7, %p6611_p8  ;;  %p6068_p11 = scmp.lt.s32.totalorder %s6066_s3, %s6059_s19 }
 0x126   : > { %p6063_p1 = pneg %p6062_p10  ;;  %p6069_p9 = por %p6068_p11, %p6067_p12 }
 0x128   : > { %p6070_p3 = pnand %p6069_p9, %p6063_p1 }
 0x12a   : > { %6073 = shalt.err (!%p6070_p3)
}
 0x12b   : > { %p7706_p6 = scmp.ne.s32.totalorder %s7688_s28, 0  ;;  %s7707_s8 = scalar_lea.sflag [#allocation13], %s6535_s18 }
 0x12c   : > { %s5201_s1 = sshll.u32 %s6272_s29, 14  ;;  %s687_s20 = scalar_lea.vmem [#allocation17], %s4774_s22 }
 0x12d   : > { %5285 = dma.hbm_to_vmem [thread:$0]  (!%p7706_p6), %s6796_s27, 32, %s651_s24, %s7707_s8  }
 0x12e   : > { %s694_s9 = sshll.u32 %s687_s20, 4  ;;  %s7708_s10 = sld [smem:[#allocation57_spill]]  ;;  %s6829_s9 = int_to_ptr.vmem [resolvable:$true] %s694_s9 }
 0x134   : > { %s6827_s13 = scalar_lea.hbm %s7708_s10, %s5201_s1  ;;  %s6079_s5 = scalar_lea.hbm %s7708_s10, 32768 }
 0x135   : > { %s6074_s21 = scalar_lea.hbm %s6827_s13, 16384  ;;  %p6080_p0 = scmp.lt.u32.totalorder %s6827_s13, %s7708_s10 }
 0x136   : > { %p6075_p9 = scmp.ne.s32.totalorder %s6827_s13, %s6074_s21  ;;  %p6081_p4 = scmp.lt.u32.totalorder %s6079_s5, %s6074_s21 }
 0x137   : > { %p6083_p7 = scmp.lt.u32.totalorder %s6074_s21, %s6827_s13 }
 0x138   : > { %p6077_p2 = pnand %p6075_p9, %p6611_p8  ;;  %p6082_p5 = por %p6081_p4, %p6080_p0 }
 0x13a   : > { %p6078_p13 = pneg %p6077_p2  ;;  %p6084_p10 = por %p6083_p7, %p6082_p5 }
 0x13c   : > { %p6085_p1 = pnand %p6084_p10, %p6078_p13 }
 0x13e   : > { %6088 = shalt.err (!%p6085_p1)
}
 0x13f   : > { %s6089_s6 = scalar_lea.vmem %s6829_s9, 16384  ;;  %s6294_s3 = smov [#allocation17]  }
 0x140   : > { %p6090_p12 = scmp.ne.s32.totalorder %s6829_s9, %s6089_s6  ;;  %s6094_s8 = sshll.u32 %s6294_s3, 4  ;;  %s6095_s8 = int_to_ptr.vmem [resolvable:$false] %s6094_s8 }
 0x141   : > { %s6096_s20 = scalar_lea.vmem %s6095_s8, 32768  ;;  %p6097_p9 = scmp.lt.s32.totalorder %s6829_s9, %s6095_s8 }
 0x142   : > { %p6092_p11 = pnand %p6090_p12, %p6611_p8  ;;  %p6098_p2 = scmp.lt.s32.totalorder %s6096_s20, %s6089_s6 }
 0x144   : > { %p6093_p3 = pneg %p6092_p11  ;;  %p6099_p0 = por %p6098_p2, %p6097_p9 }
 0x146   : > { %p6100_p4 = pnand %p6099_p0, %p6093_p3 }
 0x148   : > { %6103 = shalt.err (!%p6100_p4)
}
 0x149   : > { %s6295_s23 = smov 512   ;;  %s6296_s16 = smov 32  }
 0x14a   : > { %5291 = dma.hbm_to_vmem [thread:$0]  (!%p7706_p6), %s6827_s13, 16384, %s6829_s9, %s658_s26, %s6295_s23, %s6295_s23, %s6296_s16  }
 0x14b   : > { %s7709_s12 = sld [smem:[#allocation59_spill]]  ;;  %s715_s5 = scalar_lea.vmem [#allocation18], %s4774_s22 }
 0x14c   : > { %s722_s19 = sshll.u32 %s715_s5, 4  ;;  %s712_s17 = scalar_lea.sflag [#allocation19], %s6585_s11  ;;  %s6863_s19 = int_to_ptr.vmem [resolvable:$true] %s722_s19 }
 0x151   : > { %s6859_s24 = scalar_lea.hbm %s7709_s12, %s5201_s1  ;;  %s6109_s1 = scalar_lea.hbm %s7709_s12, 32768 }
 0x152   : > { %s6104_s6 = scalar_lea.hbm %s6859_s24, 16384  ;;  %p6110_p10 = scmp.lt.u32.totalorder %s6859_s24, %s7709_s12 }
 0x153   : > { %p6105_p13 = scmp.ne.s32.totalorder %s6859_s24, %s6104_s6  ;;  %p6111_p1 = scmp.lt.u32.totalorder %s6109_s1, %s6104_s6 }
 0x154   : > { %p6113_p11 = scmp.lt.u32.totalorder %s6104_s6, %s6859_s24 }
 0x155   : > { %p6107_p5 = pnand %p6105_p13, %p6611_p8  ;;  %p6112_p12 = por %p6111_p1, %p6110_p10 }
 0x157   : > { %p6108_p7 = pneg %p6107_p5  ;;  %p6114_p3 = por %p6113_p11, %p6112_p12 }
 0x159   : > { %p6115_p9 = pnand %p6114_p3, %p6108_p7 }
 0x15b   : > { %6118 = shalt.err (!%p6115_p9)
}
 0x15c   : > { %s6119_s22 = scalar_lea.vmem %s6863_s19, 16384  ;;  %s6297_s3 = smov [#allocation18]  }
 0x15d   : > { %p6120_p2 = scmp.ne.s32.totalorder %s6863_s19, %s6119_s22  ;;  %s6124_s8 = sshll.u32 %s6297_s3, 4  ;;  %s6125_s8 = int_to_ptr.vmem [resolvable:$false] %s6124_s8 }
 0x15e   : > { %s6126_s20 = scalar_lea.vmem %s6125_s8, 32768  ;;  %p6127_p13 = scmp.lt.s32.totalorder %s6863_s19, %s6125_s8 }
 0x15f   : > { %p6122_p0 = pnand %p6120_p2, %p6611_p8  ;;  %p6128_p5 = scmp.lt.s32.totalorder %s6126_s20, %s6119_s22 }
 0x161   : > { %p6123_p4 = pneg %p6122_p0  ;;  %p6129_p10 = por %p6128_p5, %p6127_p13 }
 0x163   : > { %p6130_p1 = pnand %p6129_p10, %p6123_p4 }
 0x165   : > { %6133 = shalt.err (!%p6130_p1)
}
 0x166   : > { %s7710_s23 = smov 8   ;;  %s7711_s16 = smov 128  }
 0x167   : > { %5294 = dma.hbm_to_vmem [thread:$0]  (!%p7706_p6), %s6859_s24, 16384, %s6863_s19, %s712_s17, %s7711_s16, %s7711_s16, %s7710_s23  }
 0x168   : > { %p7712_p8 = scmp.ne.s32.totalorder %s7689_s15, 0 }
 0x169   : > { %s7713_s0 = sld [smem:[#allocation41_spill]] (!%p7712_p8)  ;;  %s6895_s21 = sand.u32 (!%p7712_p8), 1, %s6256_s25  }
 0x16a   : > { %741 = sbr.rel (%p7712_p8) target bundleno = 3341 (0xd0d), region = 84  ;;  %s4781_s27 = sshll.u32 (!%p7712_p8), %s6895_s21, 4 }
 0x16b   : > { %s744_s5 = scalar_lea.sflag (!%p7712_p8), [#allocation4], %s6895_s21  ;;  %s6899_s28 = scalar_lea.vmem (!%p7712_p8), [#allocation3], %s4781_s27 }
 0x16f   : > { %p7714_p7 = scmp.ne.s32.totalorder (!%p7712_p8), %s7713_s0, 0 }
 0x171   : > { %6207 = dma.done.wait (%p7714_p7), %s744_s5, 256  }
 0x172   : > { %6209 = vsyncadd (%p7714_p7), %s744_s5, 4294967040  ;;  %s7715_s11 = sld [smem:[#allocation38_spill]] }
 0x178   : > { %s752_s15 = sand.u32 1, %s7715_s11  }
 0x179   : > { %s753_s24 = scalar_lea.sflag [#allocation7], %s752_s15 }
 0x17a   : > { %6211 = dma.done.wait (%p7714_p7), %s753_s24, 16  }
 0x17b   : > { %6213 = vsyncadd (%p7714_p7), %s753_s24, 4294967280  ;;  %s7716_s17 = sld [smem:[#allocation29_spill]]  ;;  %s7717_s6 = sld [smem:[#allocation44_spill]] }
 0x181   : > { %s762_s18 = sand.u32 1, %s7716_s17   ;;  %p7718_p6 = scmp.ne.s32.totalorder %s7717_s6, 0 }
 0x182   : > { %s6912_s26 = sshll.u32 %s762_s18, 1 }
 0x183   : > { %6215 = dma.done.wait (%p7718_p6), %s753_s24, 32  }
 0x184   : > { %6217 = vsyncadd (%p7718_p6), %s753_s24, 4294967264  ;;  %s770_s9 = scalar_lea.sflag [#allocation10], %s752_s15 }
 0x185   : > { %6219 = dma.done.wait (%p7718_p6), %s770_s9, 12320  }
 0x186   : > { %6221 = vsyncadd (%p7718_p6), %s770_s9, 4294954976  ;;  %s5238_s22 = smul.u32 768, %s762_s18  ;;  %s4784_s3 = sshll.u32 %s762_s18, 8 }
 0x187   : > { %s788_s20 = scalar_lea.sflag [#allocation13], %s752_s15  ;;  %s6926_s23 = scalar_lea.vmem [#allocation12], %s4784_s3 }
 0x188   : > { %s6924_s8 = scalar_lea.vmem [#allocation11], %s5238_s22 }
 0x189   : > { %6223 = dma.done.wait (%p7718_p6), %s788_s20, 4128  }
 0x18a   : > { %6225 = vsyncadd (%p7718_p6), %s788_s20, 4294963168  ;;  %s806_s0 = scalar_lea.sflag [#allocation16], %s752_s15 }
 0x18b   : > { %6227 = dma.done.wait (%p7718_p6), %s806_s0, 16416  }
 0x18c   : > { %6229 = vsyncadd (%p7718_p6), %s806_s0, 4294950880  ;;  %s4787_s5 = sshll.u32 %s762_s18, 10  ;;  %s824_s24 = scalar_lea.sflag [#allocation19], %s762_s18 }
 0x18d   : > { %s6938_s11 = scalar_lea.vmem [#allocation17], %s4787_s5  ;;  %s6940_s17 = scalar_lea.vmem [#allocation18], %s4787_s5 }
 0x18e   : > { %6231 = dma.done.wait (%p7718_p6), %s824_s24, 16384  }
 0x18f   : > { %6233 = vsyncadd (%p7718_p6), %s824_s24, 4294950912  ;;  %s7719_s15 = sld [smem:[#allocation33_spill]]  ;;  %s4789_s9 = sshll.u32 %s6895_s21, 1 }
 0x190   : > { %s7720_s16 = sld [smem:[#allocation56_spill]]  ;;  %s7721_s1 = sld [smem:[#allocation52_spill]] }
 0x191   : > { %s7722_s4 = sld [smem:[#allocation58_spill]]  ;;  %s7723_s14 = sld [smem:[#allocation60_spill]] }
 0x192   : > { %s6969_s29 = scalar_lea.vmem [#allocation20], %s4789_s9 }
 0x195   : > { %p936_p12 = scmp.lt.s32.totalorder %s7719_s15, 1  ;;  %p4793_p11 = scmp.ne.s32.totalorder %s7719_s15, 0 }
 0x196   : > { %v957_v0 = vld [vmem:[%s6899_s28] sm:$0xff] (!%p4793_p11)  ;;  %v958_v1 = vld [vmem:[%s6899_s28 + $0x8] sm:$0xff] (!%p4793_p11) }
 0x197   : > { %s937_s22 = scalar_select %p936_p12, %s7719_s15, 1 }
 0x198   : > { %956 = sbr.rel (%p4793_p11) target bundleno = 415 (0x19f), region = 128  ;;  %959 = vst [vmem:[#allocation2] sm:$0xff] (!%p4793_p11), %v957_v0  ;;  %960 = vst [vmem:[#allocation2 + $0x8] sm:$0xff] (!%p4793_p11), %v958_v1 }
 0x199   : > { %s5239_s3 = smul.u32 6, %s937_s22  ;;  %s4790_s20 = sshll.u32 %s937_s22, 1 }
 0x19a   : > { %s6952_s19 = scalar_lea.vmem %s7720_s16, %s4790_s20  ;;  %s4791_s18 = sshll.u32 %s937_s22, 3 }
 0x19b   : > { %s6957_s2 = scalar_lea.vmem %s7721_s1, %s5239_s3  ;;  %s6962_s7 = scalar_lea.vmem %s7722_s4, %s4791_s18 }
 0x19c   : > { %s6967_s30 = scalar_lea.vmem %s7723_s14, %s4790_s20 }
 0x19f PF: > { %v6974_v2 = vld [vmem:[#allocation2] sm:$0xff]  ;;  %v6976_v3 = vld [vmem:[#allocation2 + $0x8] sm:$0xff]  ;;  %v5402_v6 = vld [vmem:[%s6924_s8] ss:$24 sps:$4 sm:$0xff]   ;;  %s7724_s4 = scalar_lea.vmem [#allocation8], %s6912_s26  ;;  %s7725_s10 = scalar_lea.vmem [#allocation9], %s6912_s26 }
 0x1a0   : > { %v981_v4 = vadd.f32 %v6976_v3, %v6974_v2  ;;  %v5400_v5 = vld [vmem:[%s6924_s8 + $0x4] ss:$24 sps:$4 sm:$0xff]   ;;  %v5405_v8 = vld [vmem:[%s6924_s8 + $0x8] ss:$24 sps:$4 sm:$0xff]   ;;  %v5406_v9 = vld [vmem:[%s6924_s8 + $0x34] ss:$24 sps:$4 sm:$0xff]  }
 0x1a1   : > { %v5403_v7 = vld [vmem:[%s6924_s8 + $0xc] ss:$24 sps:$4 sm:$0xff]   ;;  %1634 = vmatprep.subr.bf16.mxu0 %v5400_v5  ;;  %v5409_v10 = vld [vmem:[%s6924_s8 + $0x3c] ss:$24 sps:$4 sm:$0xff]   ;;  %v5408_v11 = vld [vmem:[%s6924_s8 + $0x30] ss:$24 sps:$4 sm:$0xff]  }
 0x1a2   : > { %982 = vadd.xlane.f32.xlu0 %v981_v4  ;;  %1675 = vmatprep.subr.bf16.mxu1 %v5403_v7  ;;  %v5411_v12 = vld [vmem:[%s6924_s8 + $0x38] ss:$24 sps:$4 sm:$0xff]   ;;  %v5412_v13 = vld [vmem:[%s6924_s8 + $0x64] ss:$24 sps:$4 sm:$0xff]   ;;  %v5417_v16 = vld [vmem:[%s6924_s8 + $0x68] ss:$24 sps:$4 sm:$0xff]  }
 0x1a3   : > { %1635 = vmatpush1.bf16.msra.mxu0 %v5402_v6  ;;  %1676 = vmatpush1.bf16.msra.mxu1 %v5405_v8  ;;  %v5415_v14 = vld [vmem:[%s6924_s8 + $0x6c] ss:$24 sps:$4 sm:$0xff]   ;;  %v5414_v15 = vld [vmem:[%s6924_s8 + $0x60] ss:$24 sps:$4 sm:$0xff]   ;;  %v5421_v18 = vld [vmem:[%s6924_s8 + $0x9c] ss:$24 sps:$4 sm:$0xff]  }
 0x1a4   : > { %1636 = vmatprep.subr.bf16.mxu0 %v5406_v9  ;;  %1677 = vmatprep.subr.bf16.mxu1 %v5409_v10  ;;  %v5418_v17 = vld [vmem:[%s6924_s8 + $0x94] ss:$24 sps:$4 sm:$0xff]   ;;  %v5420_v19 = vld [vmem:[%s6924_s8 + $0x90] ss:$24 sps:$4 sm:$0xff]   ;;  %v5424_v21 = vld [vmem:[%s6924_s8 + $0xc4] ss:$24 sps:$4 sm:$0xff]  }
 0x1a5   : > { %v5423_v20 = vld [vmem:[%s6924_s8 + $0x98] ss:$24 sps:$4 sm:$0xff]   ;;  %v5427_v22 = vld [vmem:[%s6924_s8 + $0xcc] ss:$24 sps:$4 sm:$0xff]   ;;  %v5429_v24 = vld [vmem:[%s6924_s8 + $0xc8] ss:$24 sps:$4 sm:$0xff]  }
 0x1a6   : > { %v5426_v23 = vld [vmem:[%s6924_s8 + $0xc0] ss:$24 sps:$4 sm:$0xff]   ;;  %v5430_v25 = vld [vmem:[%s6924_s8 + $0xf4] ss:$24 sps:$4 sm:$0xff]   ;;  %v5432_v27 = vld [vmem:[%s6924_s8 + $0xf0] ss:$24 sps:$4 sm:$0xff]  }
 0x1a7   : > { %1637 = vmatpush1.bf16.msra.mxu0 %v5408_v11  ;;  %1678 = vmatpush1.bf16.msra.mxu1 %v5411_v12  ;;  %v5433_v26 = vld [vmem:[%s6924_s8 + $0xfc] ss:$24 sps:$4 sm:$0xff]   ;;  %v5435_v28 = vld [vmem:[%s6924_s8 + $0xf8] ss:$24 sps:$4 sm:$0xff]   ;;  %v5439_v30 = vld [vmem:[%s6924_s8 + $0x12c] ss:$24 sps:$4 sm:$0xff]  }
 0x1a8   : > { %1638 = vmatprep.subr.bf16.mxu0 %v5412_v13  ;;  %1679 = vmatprep.subr.bf16.mxu1 %v5415_v14  ;;  %v5436_v29 = vld [vmem:[%s6924_s8 + $0x124] ss:$24 sps:$4 sm:$0xff]   ;;  %v5438_v31 = vld [vmem:[%s6924_s8 + $0x120] ss:$24 sps:$4 sm:$0xff]   ;;  %v5442_v33 = vld [vmem:[%s6924_s8 + $0x154] ss:$24 sps:$4 sm:$0xff]  }
 0x1a9   : > { %v5441_v32 = vld [vmem:[%s6924_s8 + $0x128] ss:$24 sps:$4 sm:$0xff]   ;;  %v5445_v34 = vld [vmem:[%s6924_s8 + $0x15c] ss:$24 sps:$4 sm:$0xff]   ;;  %v5447_v36 = vld [vmem:[%s6924_s8 + $0x158] ss:$24 sps:$4 sm:$0xff]  }
 0x1aa   : > { %v5444_v35 = vld [vmem:[%s6924_s8 + $0x150] ss:$24 sps:$4 sm:$0xff]   ;;  %v5448_v37 = vld [vmem:[%s6924_s8 + $0x184] ss:$24 sps:$4 sm:$0xff]   ;;  %v5450_v39 = vld [vmem:[%s6924_s8 + $0x180] ss:$24 sps:$4 sm:$0xff]  }
 0x1ab   : > { %1639 = vmatpush1.bf16.msra.mxu0 %v5414_v15  ;;  %1680 = vmatpush1.bf16.msra.mxu1 %v5417_v16  ;;  %v5451_v38 = vld [vmem:[%s6924_s8 + $0x18c] ss:$24 sps:$4 sm:$0xff]   ;;  %v5453_v40 = vld [vmem:[%s6924_s8 + $0x188] ss:$24 sps:$4 sm:$0xff]   ;;  %v5457_v42 = vld [vmem:[%s6924_s8 + $0x1bc] ss:$24 sps:$4 sm:$0xff]   ;;  %v962_v15 = vlaneseq }
 0x1ac   : > { %1640 = vmatprep.subr.bf16.mxu0 %v5418_v17  ;;  %1681 = vmatprep.subr.bf16.mxu1 %v5421_v18  ;;  %v5454_v41 = vld [vmem:[%s6924_s8 + $0x1b4] ss:$24 sps:$4 sm:$0xff]   ;;  %v5456_v43 = vld [vmem:[%s6924_s8 + $0x1b0] ss:$24 sps:$4 sm:$0xff]   ;;  %v5460_v45 = vld [vmem:[%s6924_s8 + $0x1e4] ss:$24 sps:$4 sm:$0xff]  }
 0x1ad   : > { %v5459_v44 = vld [vmem:[%s6924_s8 + $0x1b8] ss:$24 sps:$4 sm:$0xff]   ;;  %v5463_v54 = vld [vmem:[%s6924_s8 + $0x1ec] ss:$24 sps:$4 sm:$0xff]   ;;  %v5465_v55 = vld [vmem:[%s6924_s8 + $0x1e8] ss:$24 sps:$4 sm:$0xff]  }
 0x1ae   : > { %v5462_v53 = vld [vmem:[%s6924_s8 + $0x1e0] ss:$24 sps:$4 sm:$0xff]   ;;  %v5466_v56 = vld [vmem:[%s6924_s8 + $0x214] ss:$24 sps:$4 sm:$0xff]   ;;  %v5468_v57 = vld [vmem:[%s6924_s8 + $0x210] ss:$24 sps:$4 sm:$0xff]  }
 0x1af   : > { %1641 = vmatpush1.bf16.msra.mxu0 %v5420_v19  ;;  %1682 = vmatpush1.bf16.msra.mxu1 %v5423_v20  ;;  %v5469_v58 = vld [vmem:[%s6924_s8 + $0x21c] ss:$24 sps:$4 sm:$0xff]   ;;  %v5471_v59 = vld [vmem:[%s6924_s8 + $0x218] ss:$24 sps:$4 sm:$0xff]   ;;  %v5475_v62 = vld [vmem:[%s6924_s8 + $0x24c] ss:$24 sps:$4 sm:$0xff]  }
 0x1b0   : > { %1642 = vmatprep.subr.bf16.mxu0 %v5424_v21  ;;  %1683 = vmatprep.subr.bf16.mxu1 %v5427_v22  ;;  %v5472_v60 = vld [vmem:[%s6924_s8 + $0x244] ss:$24 sps:$4 sm:$0xff]   ;;  %v5474_v61 = vld [vmem:[%s6924_s8 + $0x240] ss:$24 sps:$4 sm:$0xff]   ;;  %v5478_v0 = vld [vmem:[%s6924_s8 + $0x274] ss:$24 sps:$4 sm:$0xff]  }
 0x1b1   : > { %v5477_v63 = vld [vmem:[%s6924_s8 + $0x248] ss:$24 sps:$4 sm:$0xff]   ;;  %v5481_v1 = vld [vmem:[%s6924_s8 + $0x27c] ss:$24 sps:$4 sm:$0xff]   ;;  %v5487_v5 = vld [vmem:[%s6924_s8 + $0x2ac] ss:$24 sps:$4 sm:$0xff]  }
 0x1b2   : > { %v5484_v4 = vld [vmem:[%s6924_s8 + $0x2a4] ss:$24 sps:$4 sm:$0xff]   ;;  %v5486_v6 = vld [vmem:[%s6924_s8 + $0x2a0] ss:$24 sps:$4 sm:$0xff]   ;;  %v5490_v8 = vld [vmem:[%s6924_s8 + $0x2d4] ss:$24 sps:$4 sm:$0xff]  }
 0x1b3   : > { %1643 = vmatpush1.bf16.msra.mxu0 %v5426_v23  ;;  %1684 = vmatpush1.bf16.msra.mxu1 %v5429_v24  ;;  %v5489_v7 = vld [vmem:[%s6924_s8 + $0x2a8] ss:$24 sps:$4 sm:$0xff]   ;;  %v5493_v9 = vld [vmem:[%s6924_s8 + $0x2dc] ss:$24 sps:$4 sm:$0xff]   ;;  %v5495_v11 = vld [vmem:[%s6924_s8 + $0x2d8] ss:$24 sps:$4 sm:$0xff]  }
 0x1b4   : > { %1644 = vmatprep.subr.bf16.mxu0 %v5430_v25  ;;  %1685 = vmatprep.subr.bf16.mxu1 %v5433_v26  ;;  %v5492_v10 = vld [vmem:[%s6924_s8 + $0x2d0] ss:$24 sps:$4 sm:$0xff]   ;;  %v5498_v12 = vld [vmem:[%s6924_s8 + $0x14] ss:$24 sps:$4 sm:$0xff]   ;;  %v7056_v17 = vshrl.u32 %v962_v15, 7  ;;  %vm6299_vm0 = vmmov 0  }
 0x1b5   : > { %v979_v20 = vld [vmem:[%s7724_s4] sm:$0x3]  ;;  %v980_v21 = vld [vmem:[%s7725_s10] sm:$0x3]  ;;  %vm1818_vm1 = vcmask 1043456   ;;  %vm1802_vm3 = vcmask 64512  }
 0x1b6   : > { %v7059_v18 = vsub.s32 1, %v7056_v17  ;;  %v7062_v19 = vsub.s32 0, %v7056_v17  ;;  %s7727_s12 = scalar_lea.vmem [#allocation14], %s6912_s26  ;;  %s7728_s14 = scalar_lea.vmem [#allocation15], %s6912_s26 }
 0x1b7   : > { %1645 = vmatpush1.bf16.msra.mxu0 %v5432_v27  ;;  %1686 = vmatpush1.bf16.msra.mxu1 %v5435_v28 }
 0x1b8   : > { %1646 = vmatprep.subr.bf16.mxu0 %v5436_v29  ;;  %1687 = vmatprep.subr.bf16.mxu1 %v5439_v30  ;;  %v1006_v22 = vrot.slane %v979_v20, %v7059_v18  ;;  %v1002_v23 = vrot.slane %v979_v20, %v7062_v19  ;;  %v1019_v26 = vrot.slane %v980_v21, %v7059_v18 }
 0x1b9   : > { %v1015_v28 = vrot.slane %v980_v21, %v7062_v19 }
 0x1bb   : > { %1647 = vmatpush1.bf16.msra.mxu0 %v5438_v31  ;;  %1688 = vmatpush1.bf16.msra.mxu1 %v5441_v32 }
 0x1bc   : > { %1648 = vmatprep.subr.bf16.mxu0 %v5442_v33  ;;  %1689 = vmatprep.subr.bf16.mxu1 %v5445_v34  ;;  %v5496_v34 = vld [vmem:[%s6924_s8 + $0x10] ss:$24 sps:$4 sm:$0xff]  }
 0x1bf   : > { %1649 = vmatpush1.bf16.msra.mxu0 %v5444_v35  ;;  %1690 = vmatpush1.bf16.msra.mxu1 %v5447_v36  ;;  %v5501_v36 = vld [vmem:[%s6924_s8 + $0x44] ss:$24 sps:$4 sm:$0xff]  }
 0x1c0   : > { %1650 = vmatprep.subr.bf16.mxu0 %v5448_v37  ;;  %1691 = vmatprep.subr.bf16.mxu1 %v5451_v38  ;;  %v5499_v37 = vld [vmem:[%s6924_s8 + $0x40] ss:$24 sps:$4 sm:$0xff]   ;;  %v5504_v38 = vld [vmem:[%s6924_s8 + $0x74] ss:$24 sps:$4 sm:$0xff]  }
 0x1c3   : > { %1651 = vmatpush1.bf16.msra.mxu0 %v5450_v39  ;;  %1692 = vmatpush1.bf16.msra.mxu1 %v5453_v40  ;;  %v5502_v39 = vld [vmem:[%s6924_s8 + $0x70] ss:$24 sps:$4 sm:$0xff]   ;;  %v5507_v40 = vld [vmem:[%s6924_s8 + $0xa4] ss:$24 sps:$4 sm:$0xff]  }
 0x1c4   : > { %1652 = vmatprep.subr.bf16.mxu0 %v5454_v41  ;;  %1693 = vmatprep.subr.bf16.mxu1 %v5457_v42  ;;  %v5505_v41 = vld [vmem:[%s6924_s8 + $0xa0] ss:$24 sps:$4 sm:$0xff]   ;;  %v5510_v42 = vld [vmem:[%s6924_s8 + $0xd4] ss:$24 sps:$4 sm:$0xff]  }
 0x1c7   : > { %1653 = vmatpush1.bf16.msra.mxu0 %v5456_v43  ;;  %1694 = vmatpush1.bf16.msra.mxu1 %v5459_v44  ;;  %v5508_v43 = vld [vmem:[%s6924_s8 + $0xd0] ss:$24 sps:$4 sm:$0xff]   ;;  %v5513_v44 = vld [vmem:[%s6924_s8 + $0x104] ss:$24 sps:$4 sm:$0xff]  }
 0x1c8   : > { %1654 = vmatprep.subr.bf16.mxu0 %v5460_v45  ;;  %1695 = vmatprep.subr.bf16.mxu1 %v5463_v54  ;;  %v5511_v45 = vld [vmem:[%s6924_s8 + $0x100] ss:$24 sps:$4 sm:$0xff]   ;;  %v5528_v54 = vld [vmem:[%s6924_s8 + $0x1f4] ss:$24 sps:$4 sm:$0xff]  }
 0x1cb   : > { %1655 = vmatpush1.bf16.msra.mxu0 %v5462_v53  ;;  %1696 = vmatpush1.bf16.msra.mxu1 %v5465_v55  ;;  %v5523_v53 = vld [vmem:[%s6924_s8 + $0x1c0] ss:$24 sps:$4 sm:$0xff]   ;;  %v5526_v55 = vld [vmem:[%s6924_s8 + $0x1f0] ss:$24 sps:$4 sm:$0xff]  }
 0x1cc   : > { %1656 = vmatprep.subr.bf16.mxu0 %v5466_v56  ;;  %1697 = vmatprep.subr.bf16.mxu1 %v5469_v58  ;;  %v5531_v56 = vld [vmem:[%s6924_s8 + $0x224] ss:$24 sps:$4 sm:$0xff]   ;;  %v5534_v58 = vld [vmem:[%s6924_s8 + $0x254] ss:$24 sps:$4 sm:$0xff]  }
 0x1cf   : > { %1657 = vmatpush1.bf16.msra.mxu0 %v5468_v57  ;;  %1698 = vmatpush1.bf16.msra.mxu1 %v5471_v59  ;;  %v5529_v57 = vld [vmem:[%s6924_s8 + $0x220] ss:$24 sps:$4 sm:$0xff]   ;;  %v5532_v59 = vld [vmem:[%s6924_s8 + $0x250] ss:$24 sps:$4 sm:$0xff]  }
 0x1d0   : > { %1658 = vmatprep.subr.bf16.mxu0 %v5472_v60  ;;  %1699 = vmatprep.subr.bf16.mxu1 %v5475_v62  ;;  %v5537_v60 = vld [vmem:[%s6924_s8 + $0x284] ss:$24 sps:$4 sm:$0xff]   ;;  %v5540_v62 = vld [vmem:[%s6924_s8 + $0x2b4] ss:$24 sps:$4 sm:$0xff]  }
 0x1d3   : > { %1659 = vmatpush1.bf16.msra.mxu0 %v5474_v61  ;;  %1700 = vmatpush1.bf16.msra.mxu1 %v5477_v63  ;;  %v5535_v61 = vld [vmem:[%s6924_s8 + $0x280] ss:$24 sps:$4 sm:$0xff]   ;;  %v5538_v63 = vld [vmem:[%s6924_s8 + $0x2b0] ss:$24 sps:$4 sm:$0xff]  }
 0x1d4   : > { %1660 = vmatprep.subr.bf16.mxu0 %v5478_v0  ;;  %1701 = vmatprep.subr.bf16.mxu1 %v5481_v1  ;;  %v5543_v0 = vld [vmem:[%s6924_s8 + $0x2e4] ss:$24 sps:$4 sm:$0xff]   ;;  %v5541_v1 = vld [vmem:[%s6924_s8 + $0x2e0] ss:$24 sps:$4 sm:$0xff]  }
 0x22f   : > { %v983_v46 = vpop.xlane.xlu0 %982 }
 0x230   : > { %v985_v47 = vmul.f32 0.00390625, %v983_v46  ;;  %v5516_v46 = vld [vmem:[%s6924_s8 + $0x134] ss:$24 sps:$4 sm:$0xff]  }
 0x232   : > { %v7022_v48 = vsub.f32 %v6974_v2, %v985_v47  ;;  %v7025_v49 = vsub.f32 %v6976_v3, %v985_v47  ;;  %v5480_v2 = vld [vmem:[%s6924_s8 + $0x270] ss:$24 sps:$4 sm:$0xff]  }
 0x233   : > { %v5483_v3 = vld [vmem:[%s6924_s8 + $0x278] ss:$24 sps:$4 sm:$0xff]   ;;  %1661 = vmatpush1.bf16.msra.mxu0 %v5480_v2  ;;  %v6298_v2 = vmov 0.0  }
 0x234   : > { %v988_v50 = vmul.f32 %v7022_v48, %v7022_v48  ;;  %v989_v51 = vmul.f32 %v7025_v49, %v7025_v49  ;;  %1702 = vmatpush1.bf16.msra.mxu1 %v5483_v3  ;;  %1662 = vmatprep.subr.bf16.mxu0 %v5484_v4  ;;  %v5514_v47 = vld [vmem:[%s6924_s8 + $0x130] ss:$24 sps:$4 sm:$0xff]   ;;  %v1134_v3 = vsub.s32 2, %v7056_v17 }
 0x235   : > { %1703 = vmatprep.subr.bf16.mxu1 %v5487_v5  ;;  %v1122_v4 = vld [vmem:[%s6957_s2] sm:$0x3f]  ;;  %v1138_v5 = vsub.s32 3, %v7056_v17  ;;  %s7726_s2 = scalar_lea.vmem [#allocation6], %s6895_s21 }
 0x236   : > { %v990_v52 = vadd.f32 %v989_v51, %v988_v50  ;;  %v5522_v50 = vld [vmem:[%s6924_s8 + $0x194] ss:$24 sps:$4 sm:$0xff]   ;;  %v5520_v51 = vld [vmem:[%s6924_s8 + $0x190] ss:$24 sps:$4 sm:$0xff]  }
 0x237   : > { %1663 = vmatpush1.bf16.msra.mxu0 %v5486_v6  ;;  %v1135_v6 = vrot.slane %v1122_v4, %v1134_v3 }
 0x238   : > { %991 = vadd.xlane.f32.xlu0 %v990_v52  ;;  %1704 = vmatpush1.bf16.msra.mxu1 %v5489_v7  ;;  %v5525_v52 = vld [vmem:[%s6924_s8 + $0x1c4] ss:$24 sps:$4 sm:$0xff]   ;;  %v1139_v7 = vrot.slane %v1122_v4, %v1138_v5 }
 0x239   : > { %1664 = vmatprep.subr.bf16.mxu0 %v5490_v8  ;;  %1705 = vmatprep.subr.bf16.mxu1 %v5493_v9 }
 0x23b   : > { %1665 = vmatpush1.bf16.msra.mxu0 %v5492_v10 }
 0x23c   : > { %1706 = vmatpush1.bf16.msra.mxu1 %v5495_v11  ;;  %1716 = vmatprep.subr.bf16.mxu0 %v5498_v12 }
 0x23d   : > { %5224 = vmatprep.subr.bf16.mxu1 %v6298_v2 }
 0x2c5   : > { %v992_v13 = vpop.xlane.xlu0 %991 }
 0x2c6   : > { %v993_v14 = vmul.f32 0.00390625, %v992_v13  ;;  %v1127_v13 = vrot.slane %v1122_v4, %v7062_v19 }
 0x2c8   : > { %v994_v16 = vadd.f32 1e-05, %v993_v14 }
 0x2ca   : > { %5784 = vrsqrt.f32 %v994_v16 }
 0x2d4   : > { %v5785_v24 = vpop.eup %5784 }
 0x2d5   : > { %v997_v25 = vmul.f32 %v5785_v24, %v7025_v49  ;;  %v996_v27 = vmul.f32 %v5785_v24, %v7022_v48  ;;  %v5519_v48 = vld [vmem:[%s6924_s8 + $0x164] ss:$24 sps:$4 sm:$0xff]   ;;  %v5517_v49 = vld [vmem:[%s6924_s8 + $0x160] ss:$24 sps:$4 sm:$0xff]  }
 0x2d7   : > { %v1010_v29 = vmul.f32 %v1006_v22, %v997_v25  ;;  %v1009_v30 = vmul.f32 %v1002_v23, %v996_v27  ;;  %v1131_v22 = vrot.slane %v1122_v4, %v7059_v18 }
 0x2d9   : > { %v1023_v31 = vadd.f32 %v1019_v26, %v1010_v29  ;;  %v1022_v32 = vadd.f32 %v1015_v28, %v1009_v30  ;;  %v1142_v30 = vsub.s32 4, %v7056_v17 }
 0x2db   : > { %v1025_v33 = vpack.c.bf16 %v1023_v31, %v1023_v31  ;;  %v7075_v35 = vpack.c.bf16 %v1022_v32, %v1022_v32  ;;  %v1146_v31 = vsub.s32 5, %v7056_v17  ;;  %v1143_v32 = vrot.slane %v1122_v4, %v1142_v30 }
 0x2dd   : > { %1666 = vmatprep.mubr.bf16.mxu0 %v1025_v33  ;;  %1707 = vmatprep.mubr.bf16.mxu1 %v1025_v33 }
 0x2de   : > { %1667 = vmatmul.mubr.bf16.vlgmr.msra.gmra.mrb[0].mxu0 %v7075_v35  ;;  %1708 = vmatmul.mubr.bf16.vlgmr.msra.gmra.mrb[0].mxu1 %v7075_v35 }
 0x2df   : > { %1717 = vmatpush1.bf16.msra.mxu0 %v5496_v34  ;;  %1748 = vmatprep.mubr.bf16.mxu0 %v1025_v33  ;;  %v1147_v33 = vrot.slane %v1122_v4, %v1146_v31 }
 0x2e0   : > { %1718 = vmatprep.subr.bf16.mxu0 %v5501_v36  ;;  %5226 = vmatprep.mubr.msk.bf16.mxu1 %vm6299_vm0, %v6298_v2 }
 0x2e3   : > { %1719 = vmatpush1.bf16.msra.mxu0 %v5499_v37 }
 0x2e4   : > { %1720 = vmatprep.subr.bf16.mxu0 %v5504_v38 }
 0x2e7   : > { %1721 = vmatpush1.bf16.msra.mxu0 %v5502_v39 }
 0x2e8   : > { %1722 = vmatprep.subr.bf16.mxu0 %v5507_v40 }
 0x2eb   : > { %1723 = vmatpush1.bf16.msra.mxu0 %v5505_v41 }
 0x2ec   : > { %1724 = vmatprep.subr.bf16.mxu0 %v5510_v42 }
 0x2ef   : > { %1725 = vmatpush1.bf16.msra.mxu0 %v5508_v43 }
 0x2f0   : > { %1726 = vmatprep.subr.bf16.mxu0 %v5513_v44  ;;  %v7131_v44 = vld [vmem:[%s7726_s2] sm:$0x1] }
 0x2f3   : > { %1727 = vmatpush1.bf16.msra.mxu0 %v5511_v45  ;;  %v968_v45 = vsub.f32 1.0, %v7131_v44 }
 0x2f4   : > { %1728 = vmatprep.subr.bf16.mxu0 %v5516_v46  ;;  %v965_v46 = vand.u32 127, %v962_v15 }
 0x2f6   : > { %vm966_vm2 = vcmp.le.s32.totalorder %v965_v46, %v7056_v17  ;;  %v5568_v46 = vld [vmem:[%s6926_s23 + $0x80] ss:$8 sps:$4 sm:$0xff]  }
 0x2f7   : > { %1729 = vmatpush1.bf16.msra.mxu0 %v5514_v47  ;;  %v969_v47 = vmul.f32 -1e+09, %v968_v45  ;;  %v5570_v45 = vld [vmem:[%s6926_s23 + $0x84] ss:$8 sps:$4 sm:$0xff]  }
 0x2f8   : > { %1730 = vmatprep.subr.bf16.mxu0 %v5519_v48 }
 0x2f9   : > { %v974_v48 = vrot.slane %v969_v47, %v7062_v19  ;;  %v5573_v47 = vld [vmem:[%s6926_s23 + $0x94] ss:$8 sps:$4 sm:$0xff]  }
 0x2fb   : > { %1731 = vmatpush1.bf16.msra.mxu0 %v5517_v49  ;;  %v6300_v49 = vmov -1e+09  }
 0x2fc   : > { %1732 = vmatprep.subr.bf16.mxu0 %v5522_v50  ;;  %v967_v50 = vsel %vm966_vm2, 0.0, %v6300_v49  ;;  %v5576_v49 = vld [vmem:[%s6926_s23 + $0xa4] ss:$8 sps:$4 sm:$0xff]  }
 0x2ff   : > { %1733 = vmatpush1.bf16.msra.mxu0 %v5520_v51 }
 0x300   : > { %1734 = vmatprep.subr.bf16.mxu0 %v5525_v52  ;;  %v976_v52 = vadd.f32 %v974_v48, %v967_v50  ;;  %v5571_v48 = vld [vmem:[%s6926_s23 + $0x90] ss:$8 sps:$4 sm:$0xff]   ;;  %v5574_v50 = vld [vmem:[%s6926_s23 + $0xa0] ss:$8 sps:$4 sm:$0xff]  }
 0x303   : > { %1735 = vmatpush1.bf16.msra.mxu0 %v5523_v53 }
 0x304   : > { %1736 = vmatprep.subr.bf16.mxu0 %v5528_v54 }
 0x307   : > { %1737 = vmatpush1.bf16.msra.mxu0 %v5526_v55 }
 0x308   : > { %1738 = vmatprep.subr.bf16.mxu0 %v5531_v56 }
 0x30b   : > { %1739 = vmatpush1.bf16.msra.mxu0 %v5529_v57 }
 0x30c   : > { %1740 = vmatprep.subr.bf16.mxu0 %v5534_v58 }
 0x30f   : > { %1741 = vmatpush1.bf16.msra.mxu0 %v5532_v59 }
 0x310   : > { %1742 = vmatprep.subr.bf16.mxu0 %v5537_v60 }
 0x313   : > { %1743 = vmatpush1.bf16.msra.mxu0 %v5535_v61 }
 0x314   : > { %1744 = vmatprep.subr.bf16.mxu0 %v5540_v62 }
 0x317   : > { %1745 = vmatpush1.bf16.msra.mxu0 %v5538_v63 }
 0x318   : > { %1746 = vmatprep.subr.bf16.mxu0 %v5543_v0 }
 0x31b   : > { %1747 = vmatpush1.bf16.msra.mxu0 %v5541_v1 }
 0x31c   : > { %5212 = vmatprep.subr.bf16.mxu0 %v6298_v2 }
 0x31e   : > { %1749 = vmatmul.mubr.bf16.vlgmr.msra.gmra.mrb[4].mxu0 %v7075_v35 }
 0x31f   : > { %5214 = vmatprep.mubr.msk.bf16.mxu0 %vm6299_vm0, %v6298_v2 }
 0x3b1   : > { %v1668_v8 = vpop.f32.mrb[0].mxu0  ;;  %v1709_v9 = vpop.f32.mrb[0].mxu1 }
 0x3b2   : > { %v1710_v10 = vadd.f32 %v1709_v9, %v1135_v6  ;;  %v1670_v11 = vpop.f32.mrb[1].mxu0  ;;  %v1711_v12 = vpop.f32.mrb[1].mxu1  ;;  %v1669_v26 = vadd.f32 %v1668_v8, %v1127_v13 }
 0x3b3   : > { %v1712_v14 = vadd.f32 %v1711_v12, %v1139_v7  ;;  %v1672_v16 = vpop.f32.mrb[2].mxu0  ;;  %v1713_v20 = vpop.f32.mrb[2].mxu1  ;;  %v1671_v27 = vadd.f32 %v1670_v11, %v1131_v22 }
 0x3b4   : > { %v1758_v21 = vpack.c.bf16 %v1710_v10, %v1710_v10  ;;  %v1673_v23 = vpop.f32.mrb[3].mxu0  ;;  %v1714_v24 = vpop.f32.mrb[3].mxu1  ;;  %v1757_v28 = vpack.c.bf16 %v1669_v26, %v1669_v26 }
 0x3b5   : > { %v1863_v25 = vpack.c.bf16 %v1712_v14, %v1712_v14  ;;  %v1862_v29 = vpack.c.bf16 %v1671_v27, %v1671_v27  ;;  %v5546_v14 = vld [vmem:[%s6926_s23 + $0x4] ss:$8 sps:$4 sm:$0xff]   ;;  %v5544_v23 = vld [vmem:[%s6926_s23] ss:$8 sps:$4 sm:$0xff]  }
 0x3b6   : > { %5213 = vmatpush3.bf16.xpose.msra.mxu0 %v1758_v21 }
 0x3b7   : > { %5225 = vmatpush3.bf16.xpose.msra.mxu1 %v1863_v25  ;;  %5218 = vmatprep.subr.bf16.mxu0 %v6298_v2  ;;  %v5549_v25 = vld [vmem:[%s6926_s23 + $0x14] ss:$8 sps:$4 sm:$0xff]  }
 0x3b8   : > { %5230 = vmatprep.subr.bf16.mxu1 %v6298_v2 }
 0x3bd   : > { %5215 = vmatmul.mubr.bf16.vlgmr.msra.gmra.mrb[8].mxu0 %v1757_v28  ;;  %v5547_v28 = vld [vmem:[%s6926_s23 + $0x10] ss:$8 sps:$4 sm:$0xff]  }
 0x3be   : > { %5227 = vmatmul.mubr.bf16.vlgmr.msra.gmra.mrb[4].mxu1 %v1862_v29  ;;  %5220 = vmatprep.mubr.msk.bf16.mxu0 %vm6299_vm0, %v6298_v2 }
 0x3bf   : > { %5232 = vmatprep.mubr.msk.bf16.mxu1 %vm6299_vm0, %v6298_v2 }
 0x3f1   : > { %v1750_v34 = vpop.f32.mrb[4].mxu0 }
 0x3f2   : > { %v1751_v35 = vadd.f32 %v1750_v34, %v1143_v32  ;;  %v1752_v36 = vpop.f32.mrb[5].mxu0  ;;  %v5552_v32 = vld [vmem:[%s6926_s23 + $0x24] ss:$8 sps:$4 sm:$0xff]   ;;  %v5555_v34 = vld [vmem:[%s6926_s23 + $0x34] ss:$8 sps:$4 sm:$0xff]  }
 0x3f3   : > { %v1753_v37 = vadd.f32 %v1752_v36, %v1147_v33  ;;  %v1754_v38 = vpop.f32.mrb[6].mxu0  ;;  %v5550_v33 = vld [vmem:[%s6926_s23 + $0x20] ss:$8 sps:$4 sm:$0xff]   ;;  %v5558_v36 = vld [vmem:[%s6926_s23 + $0x44] ss:$8 sps:$4 sm:$0xff]  }
 0x3f4   : > { %v1759_v39 = vpack.c.bf16 %v1751_v35, %v1751_v35  ;;  %v1755_v40 = vpop.f32.mrb[7].mxu0  ;;  %v5553_v35 = vld [vmem:[%s6926_s23 + $0x30] ss:$8 sps:$4 sm:$0xff]   ;;  %v5561_v38 = vld [vmem:[%s6926_s23 + $0x54] ss:$8 sps:$4 sm:$0xff]  }
 0x3f5   : > { %v1864_v41 = vpack.c.bf16 %v1753_v37, %v1753_v37  ;;  %v5556_v37 = vld [vmem:[%s6926_s23 + $0x40] ss:$8 sps:$4 sm:$0xff]   ;;  %v5564_v40 = vld [vmem:[%s6926_s23 + $0x64] ss:$8 sps:$4 sm:$0xff]  }
 0x3f6   : > { %v1820_v42 = vsel %vm1818_vm1, %v1759_v39, 0  ;;  %v5559_v39 = vld [vmem:[%s6926_s23 + $0x50] ss:$8 sps:$4 sm:$0xff]  }
 0x3f7   : > { %v1923_v43 = vsel %vm1818_vm1, %v1864_v41, 0  ;;  %5219 = vmatpush3.bf16.msra.mxu0 %v1820_v42  ;;  %v5562_v41 = vld [vmem:[%s6926_s23 + $0x60] ss:$8 sps:$4 sm:$0xff]   ;;  %v5567_v42 = vld [vmem:[%s6926_s23 + $0x74] ss:$8 sps:$4 sm:$0xff]  }
 0x3f8   : > { %5231 = vmatpush3.bf16.msra.mxu1 %v1923_v43  ;;  %v5565_v43 = vld [vmem:[%s6926_s23 + $0x70] ss:$8 sps:$4 sm:$0xff]  }
 0x3f9   : > { %2171 = vmatprep.subr.bf16.mxu1 %v5546_v14 }
 0x490   : > { %v1794_v51 = vpop.f32.mrb[8].mxu0 }
 0x491   : > { %v5216_v53 = vpop.f32.mrb[9].mxu0  ;;  %v1899_v54 = vpop.f32.mrb[4].mxu1  ;;  %v1800_v55 = vmul.f32 0.088388346, %v1794_v51  ;;  %v5579_v51 = vld [vmem:[%s6926_s23 + $0xb4] ss:$8 sps:$4 sm:$0xff]  }
 0x492   : > { %v1905_v56 = vmul.f32 0.088388346, %v1899_v54  ;;  %v1797_v57 = vpop.f32.mrb[10].mxu0  ;;  %v5228_v58 = vpop.f32.mrb[5].mxu1  ;;  %v5582_v53 = vld [vmem:[%s6926_s23 + $0xc4] ss:$8 sps:$4 sm:$0xff]  }
 0x493   : > { %v5217_v59 = vpop.f32.mrb[11].mxu0  ;;  %v1902_v60 = vpop.f32.mrb[6].mxu1  ;;  %v1801_v0 = vadd.f32 %v1800_v55, %v976_v52  ;;  %v5580_v54 = vld [vmem:[%s6926_s23 + $0xc0] ss:$8 sps:$4 sm:$0xff]   ;;  %v5585_v55 = vld [vmem:[%s6926_s23 + $0xd4] ss:$8 sps:$4 sm:$0xff]  }
 0x494   : > { %v5229_v61 = vpop.f32.mrb[7].mxu1  ;;  %v1906_v62 = vadd.f32 %v1905_v56, %v976_v52  ;;  %v5577_v52 = vld [vmem:[%s6926_s23 + $0xb0] ss:$8 sps:$4 sm:$0xff]   ;;  %v5588_v57 = vld [vmem:[%s6926_s23 + $0xe4] ss:$8 sps:$4 sm:$0xff]  }
 0x495   : > { %v1803_v1 = vsel %vm1802_vm3, %v1801_v0, -inf  ;;  %v5583_v56 = vld [vmem:[%s6926_s23 + $0xd0] ss:$8 sps:$4 sm:$0xff]   ;;  %v5586_v58 = vld [vmem:[%s6926_s23 + $0xe0] ss:$8 sps:$4 sm:$0xff]  }
 0x496   : > { %v1907_v63 = vsel %vm1802_vm3, %v1906_v62, -inf  ;;  %v5591_v59 = vld [vmem:[%s6926_s23 + $0xf4] ss:$8 sps:$4 sm:$0xff]   ;;  %v5589_v60 = vld [vmem:[%s6926_s23 + $0xf0] ss:$8 sps:$4 sm:$0xff]  }
 0x497   : > { %1908 = vmax.xlane.f32.xlu1 %v1907_v63 }
 0x49b   : > { %1804 = vmax.xlane.f32.xlu1 %v1803_v1 }
 0x524   : > { %v1909_v2 = vpop.xlane.xlu1 %1908 }
 0x525   : > { %v1910_v4 = vsub.f32 %v1906_v62, %v1909_v2 }
 0x527   : > { %v1911_v6 = vmul.f32 1.442695, %v1910_v4 }
 0x528   : > { %v1805_v7 = vpop.xlane.xlu1 %1804 }
 0x529   : > { %5786 = vpow2.f32 %v1911_v6  ;;  %v1806_v8 = vsub.f32 %v1801_v0, %v1805_v7 }
 0x52b   : > { %v1807_v9 = vmul.f32 1.442695, %v1806_v8 }
 0x52d   : > { %5788 = vpow2.f32 %v1807_v9  ;;  %v1999_v9 = vld [vmem:[%s7727_s12] sm:$0x3] }
 0x533   : > { %v5787_v10 = vpop.eup %5786 }
 0x534   : > { %v1913_v11 = vsel %vm1802_vm3, %v5787_v10, 0.0 }
 0x535   : > { %1914 = vadd.xlane.f32.xlu0 %v1913_v11  ;;  %v2008_v11 = vrot.slane %v1999_v9, %v7059_v18 }
 0x537   : > { %v5789_v12 = vpop.eup %5788 }
 0x538   : > { %v1809_v13 = vsel %vm1802_vm3, %v5789_v12, 0.0 }
 0x539   : > { %1810 = vadd.xlane.f32.xlu1 %v1809_v13 }
 0x5c2   : > { %v1915_v16 = vpop.xlane.xlu0 %1914 }
 0x5c3   : > { %5790 = vrcp.f32 %v1915_v16 }
 0x5c6   : > { %v1811_v20 = vpop.xlane.xlu1 %1810 }
 0x5c7   : > { %5792 = vrcp.f32 %v1811_v20 }
 0x5cd   : > { %v5791_v21 = vpop.eup %5790 }
 0x5ce   : > { %v1917_v22 = vmul.f32 %v5791_v21, %v5787_v10  ;;  %v2004_v10 = vrot.slane %v1999_v9, %v7062_v19  ;;  %v5828_v21 = vld [vmem:[#allocation2] sm:$0xff]  ;;  %v2305_v9 = vld [vmem:[%s6938_s11 + $0x168] sm:$0xff] }
 0x5d0   : > { %v1918_v24 = vpack.c.bf16 %v1917_v22, %v1917_v22 }
 0x5d1   : > { %v5793_v26 = vpop.eup %5792 }
 0x5d2   : > { %v1813_v27 = vmul.f32 %v5793_v26, %v5789_v12  ;;  %5233 = vmatmul.mubr.msk.bf16.vlgmr.msra.gmra.mrb[8].mxu1 %vm1802_vm3, %v1918_v24  ;;  %v5829_v24 = vld [vmem:[#allocation2 + $0x8] sm:$0xff] }
 0x5d3   : > { %2172 = vmatpush1.bf16.msra.mxu1 %v5544_v23 }
 0x5d4   : > { %v1814_v29 = vpack.c.bf16 %v1813_v27, %v1813_v27  ;;  %2173 = vmatprep.subr.bf16.mxu1 %v5549_v25  ;;  %v2260_v27 = vld [vmem:[%s6938_s11] sm:$0xff] }
 0x5d6   : > { %5221 = vmatmul.mubr.msk.bf16.vlgmr.msra.gmra.mrb[12].mxu0 %vm1802_vm3, %v1814_v29  ;;  %v2261_v29 = vld [vmem:[%s6938_s11 + $0x8] sm:$0xff] }
 0x5d7   : > { %2174 = vmatpush1.bf16.msra.mxu1 %v5547_v28  ;;  %v2264_v28 = vld [vmem:[%s6938_s11 + $0x20] sm:$0xff] }
 0x5d8   : > { %2175 = vmatprep.subr.bf16.mxu1 %v5552_v32  ;;  %v4924_v32 = vcombine.low %v2260_v27, %v2264_v28 }
 0x5db   : > { %2176 = vmatpush1.bf16.msra.mxu1 %v5550_v33  ;;  %v4925_v33 = vcombine.high %v2260_v27, %v2264_v28  ;;  %v2316_v28 = vld [vmem:[%s6938_s11 + $0x1c0] sm:$0xff] }
 0x5dc   : > { %2177 = vmatprep.subr.bf16.mxu1 %v5555_v34  ;;  %v2265_v34 = vld [vmem:[%s6938_s11 + $0x28] sm:$0xff] }
 0x5dd   : > { %3070 = vmatprep.subr.bf16.mxu0 %v4925_v33  ;;  %v2321_v33 = vld [vmem:[%s6938_s11 + $0x1e8] sm:$0xff] }
 0x5de   : > { %3071 = vmatpush1.bf16.msra.mxu0 %v4924_v32  ;;  %v2317_v32 = vld [vmem:[%s6938_s11 + $0x1c8] sm:$0xff] }
 0x5df   : > { %2178 = vmatpush1.bf16.msra.mxu1 %v5553_v35  ;;  %v2268_v35 = vld [vmem:[%s6938_s11 + $0x40] sm:$0xff] }
 0x5e0   : > { %2179 = vmatprep.subr.bf16.mxu1 %v5558_v36  ;;  %v2272_v36 = vld [vmem:[%s6938_s11 + $0x60] sm:$0xff] }
 0x5e3   : > { %2180 = vmatpush1.bf16.msra.mxu1 %v5556_v37  ;;  %v4926_v37 = vcombine.low %v2261_v29, %v2265_v34 }
 0x5e4   : > { %2181 = vmatprep.subr.bf16.mxu1 %v5561_v38  ;;  %v4927_v38 = vcombine.high %v2261_v29, %v2265_v34  ;;  %v2320_v29 = vld [vmem:[%s6938_s11 + $0x1e0] sm:$0xff] }
 0x5e7   : > { %2182 = vmatpush1.bf16.msra.mxu1 %v5559_v39  ;;  %v4933_v39 = vcombine.high %v2268_v35, %v2272_v36 }
 0x5e8   : > { %2183 = vmatprep.subr.bf16.mxu1 %v5564_v40  ;;  %v2269_v40 = vld [vmem:[%s6938_s11 + $0x48] sm:$0xff] }
 0x5e9   : > { %3072 = vmatprep.subr.bf16.mxu0 %v4933_v39  ;;  %v2328_v39 = vld [vmem:[%s6938_s11 + $0x220] sm:$0xff] }
 0x5eb   : > { %2184 = vmatpush1.bf16.msra.mxu1 %v5562_v41  ;;  %v2273_v41 = vld [vmem:[%s6938_s11 + $0x68] sm:$0xff] }
 0x5ec   : > { %2185 = vmatprep.subr.bf16.mxu1 %v5567_v42  ;;  %v2276_v42 = vld [vmem:[%s6938_s11 + $0x80] sm:$0xff] }
 0x5ef   : > { %2186 = vmatpush1.bf16.msra.mxu1 %v5565_v43  ;;  %v4935_v43 = vcombine.high %v2269_v40, %v2273_v41 }
 0x5f0   : > { %2187 = vmatprep.subr.bf16.mxu1 %v5570_v45  ;;  %v2280_v45 = vld [vmem:[%s6938_s11 + $0xa0] sm:$0xff] }
 0x5f3   : > { %2188 = vmatpush1.bf16.msra.mxu1 %v5568_v46  ;;  %v2277_v46 = vld [vmem:[%s6938_s11 + $0x88] sm:$0xff] }
 0x5f4   : > { %2189 = vmatprep.subr.bf16.mxu1 %v5573_v47  ;;  %v2281_v47 = vld [vmem:[%s6938_s11 + $0xa8] sm:$0xff] }
 0x5f7   : > { %2190 = vmatpush1.bf16.msra.mxu1 %v5571_v48  ;;  %v4932_v48 = vcombine.low %v2268_v35, %v2272_v36  ;;  %v4981_v36 = vcombine.high %v2316_v28, %v2320_v29 }
 0x5f8   : > { %2191 = vmatprep.subr.bf16.mxu1 %v5576_v49  ;;  %v4934_v49 = vcombine.low %v2269_v40, %v2273_v41  ;;  %v2325_v40 = vld [vmem:[%s6938_s11 + $0x208] sm:$0xff] }
 0x5f9   : > { %3073 = vmatpush1.bf16.msra.mxu0 %v4932_v48  ;;  %v2329_v41 = vld [vmem:[%s6938_s11 + $0x228] sm:$0xff]  ;;  %v2336_v48 = vld [vmem:[%s6938_s11 + $0x260] sm:$0xff] }
 0x5fb   : > { %2192 = vmatpush1.bf16.msra.mxu1 %v5574_v50  ;;  %v4941_v50 = vcombine.high %v2276_v42, %v2280_v45 }
 0x5fc   : > { %2193 = vmatprep.subr.bf16.mxu1 %v5579_v51  ;;  %v4943_v51 = vcombine.high %v2277_v46, %v2281_v47 }
 0x5fd   : > { %3074 = vmatprep.subr.bf16.mxu0 %v4941_v50  ;;  %v2337_v50 = vld [vmem:[%s6938_s11 + $0x268] sm:$0xff] }
 0x5ff   : > { %2194 = vmatpush1.bf16.msra.mxu1 %v5577_v52  ;;  %v2284_v52 = vld [vmem:[%s6938_s11 + $0xc0] sm:$0xff] }
 0x600   : > { %2195 = vmatprep.subr.bf16.mxu1 %v5582_v53  ;;  %v2288_v53 = vld [vmem:[%s6938_s11 + $0xe0] sm:$0xff] }
 0x603   : > { %2196 = vmatpush1.bf16.msra.mxu1 %v5580_v54  ;;  %v2285_v54 = vld [vmem:[%s6938_s11 + $0xc8] sm:$0xff] }
 0x604   : > { %2197 = vmatprep.subr.bf16.mxu1 %v5585_v55  ;;  %v2289_v55 = vld [vmem:[%s6938_s11 + $0xe8] sm:$0xff] }
 0x607   : > { %2198 = vmatpush1.bf16.msra.mxu1 %v5583_v56  ;;  %v4940_v56 = vcombine.low %v2276_v42, %v2280_v45  ;;  %v4980_v42 = vcombine.low %v2316_v28, %v2320_v29  ;;  %v2361_v28 = vld [vmem:[%s6938_s11 + $0x328] sm:$0xff] }
 0x608   : > { %2199 = vmatprep.subr.bf16.mxu1 %v5588_v57  ;;  %v4942_v57 = vcombine.low %v2277_v46, %v2281_v47  ;;  %v4991_v46 = vcombine.high %v2325_v40, %v2329_v41  ;;  %v2332_v47 = vld [vmem:[%s6938_s11 + $0x240] sm:$0xff] }
 0x609   : > { %3075 = vmatpush1.bf16.msra.mxu0 %v4940_v56  ;;  %v2344_v56 = vld [vmem:[%s6938_s11 + $0x2a0] sm:$0xff] }
 0x60b   : > { %2200 = vmatpush1.bf16.msra.mxu1 %v5586_v58  ;;  %v4949_v58 = vcombine.high %v2284_v52, %v2288_v53 }
 0x60c   : > { %2201 = vmatprep.subr.bf16.mxu1 %v5591_v59  ;;  %v4951_v59 = vcombine.high %v2285_v54, %v2289_v55 }
 0x60d   : > { %3076 = vmatprep.subr.bf16.mxu0 %v4949_v58  ;;  %v2345_v58 = vld [vmem:[%s6938_s11 + $0x2a8] sm:$0xff] }
 0x60f   : > { %2202 = vmatpush1.bf16.msra.mxu1 %v5589_v60  ;;  %v2292_v60 = vld [vmem:[%s6938_s11 + $0x100] sm:$0xff] }
 0x610   : > { %3111 = vmatprep.subr.bf16.mxu1 %v4927_v38  ;;  %v2324_v38 = vld [vmem:[%s6938_s11 + $0x200] sm:$0xff] }
 0x611   : > { %v4989_v45 = vcombine.high %v2324_v38, %v2328_v39 }
 0x6a5   : > { %v1959_v61 = vpop.f32.mrb[8].mxu1 }
 0x6a6   : > { %v1966_v62 = vpack.c.bf16 %v1959_v61, %v1959_v61  ;;  %v5234_v63 = vpop.f32.mrb[9].mxu1  ;;  %v2296_v61 = vld [vmem:[%s6938_s11 + $0x120] sm:$0xff] }
 0x6a7   : > { %v1962_v0 = vpop.f32.mrb[10].mxu1  ;;  %v2297_v63 = vld [vmem:[%s6938_s11 + $0x128] sm:$0xff] }
 0x6a8   : > { %v5235_v1 = vpop.f32.mrb[11].mxu1  ;;  %2203 = vmatprep.mubr.bf16.mxu1 %v1966_v62  ;;  %v2293_v62 = vld [vmem:[%s6938_s11 + $0x108] sm:$0xff]  ;;  %v4948_v0 = vcombine.low %v2284_v52, %v2288_v53  ;;  %v4990_v52 = vcombine.low %v2325_v40, %v2329_v41  ;;  %v4997_v53 = vcombine.high %v2332_v47, %v2336_v48 }
 0x6a9   : > { %v1856_v2 = vpop.f32.mrb[12].mxu0  ;;  %v4950_v1 = vcombine.low %v2285_v54, %v2289_v55  ;;  %v2340_v55 = vld [vmem:[%s6938_s11 + $0x280] sm:$0xff] }
 0x6aa   : > { %v1965_v4 = vpack.c.bf16 %v1856_v2, %v1856_v2  ;;  %v5222_v6 = vpop.f32.mrb[13].mxu0  ;;  %v4957_v2 = vcombine.high %v2292_v60, %v2296_v61  ;;  %3077 = vmatpush1.bf16.msra.mxu0 %v4948_v0 }
 0x6ab   : > { %v1859_v7 = vpop.f32.mrb[14].mxu0  ;;  %v2300_v6 = vld [vmem:[%s6938_s11 + $0x140] sm:$0xff] }
 0x6ac   : > { %v5223_v8 = vpop.f32.mrb[15].mxu0  ;;  %2204 = vmatmul.mubr.bf16.vlgmr.msra.gmra.mrb[12].mxu1 %v1965_v4  ;;  %v4959_v4 = vcombine.high %v2293_v62, %v2297_v63  ;;  %v2304_v7 = vld [vmem:[%s6938_s11 + $0x160] sm:$0xff]  ;;  %3078 = vmatprep.subr.bf16.mxu0 %v4957_v2 }
 0x6ad   : > { %3112 = vmatpush1.bf16.msra.mxu1 %v4926_v37  ;;  %v2301_v8 = vld [vmem:[%s6938_s11 + $0x148] sm:$0xff]  ;;  %v4983_v37 = vcombine.high %v2317_v32, %v2321_v33 }
 0x6ae   : > { %3113 = vmatprep.subr.bf16.mxu1 %v4935_v43  ;;  %v4982_v43 = vcombine.low %v2317_v32, %v2321_v33 }
 0x6b1   : > { %3114 = vmatpush1.bf16.msra.mxu1 %v4934_v49  ;;  %v2333_v49 = vld [vmem:[%s6938_s11 + $0x248] sm:$0xff] }
 0x6b2   : > { %3115 = vmatprep.subr.bf16.mxu1 %v4943_v51  ;;  %v4988_v51 = vcombine.low %v2324_v38, %v2328_v39  ;;  %v4999_v54 = vcombine.high %v2333_v49, %v2337_v50  ;;  %v2369_v38 = vld [vmem:[%s6938_s11 + $0x368] sm:$0xff] }
 0x6b5   : > { %3116 = vmatpush1.bf16.msra.mxu1 %v4942_v57  ;;  %v2341_v57 = vld [vmem:[%s6938_s11 + $0x288] sm:$0xff] }
 0x6b6   : > { %3117 = vmatprep.subr.bf16.mxu1 %v4951_v59  ;;  %v4996_v59 = vcombine.low %v2332_v47, %v2336_v48  ;;  %v5006_v0 = vcombine.low %v2341_v57, %v2345_v58  ;;  %v2377_v47 = vld [vmem:[%s6938_s11 + $0x3a8] sm:$0xff] }
 0x6b9   : > { %3118 = vmatpush1.bf16.msra.mxu1 %v4950_v1 }
 0x6ba   : > { %3119 = vmatprep.subr.bf16.mxu1 %v4959_v4 }
 0x77f   : > { %v2205_v12 = vpop.f32.mrb[12].mxu1 }
 0x780   : > { %v2206_v13 = vadd.f32 %v2205_v12, %v2004_v10  ;;  %v2207_v14 = vpop.f32.mrb[13].mxu1  ;;  %v4956_v10 = vcombine.low %v2292_v60, %v2296_v61  ;;  %v4965_v12 = vcombine.high %v2300_v6, %v2304_v7  ;;  %v4998_v60 = vcombine.low %v2333_v49, %v2337_v50 }
 0x781   : > { %v2208_v16 = vadd.f32 %v2207_v14, %v2008_v11  ;;  %v2209_v20 = vpop.f32.mrb[14].mxu1  ;;  %v4958_v11 = vcombine.low %v2293_v62, %v2297_v63  ;;  %v2308_v14 = vld [vmem:[%s6938_s11 + $0x180] sm:$0xff]  ;;  %v5005_v61 = vcombine.high %v2340_v55, %v2344_v56  ;;  %v5007_v62 = vcombine.high %v2341_v57, %v2345_v58 }
 0x782   : > { %v7179_v22 = vadd.f32 %v5828_v21, %v2206_v13  ;;  %v2210_v23 = vpop.f32.mrb[15].mxu1  ;;  %v4967_v13 = vcombine.high %v2301_v8, %v2305_v9  ;;  %v2309_v20 = vld [vmem:[%s6938_s11 + $0x188] sm:$0xff]  ;;  %3079 = vmatpush1.bf16.msra.mxu0 %v4956_v10  ;;  %v5004_v63 = vcombine.low %v2340_v55, %v2344_v56  ;;  %v2348_v10 = vld [vmem:[%s6938_s11 + $0x2c0] sm:$0xff] }
 0x783   : > { %v7181_v25 = vadd.f32 %v5829_v24, %v2208_v16  ;;  %v2312_v16 = vld [vmem:[%s6938_s11 + $0x1a0] sm:$0xff]  ;;  %v2313_v21 = vld [vmem:[%s6938_s11 + $0x1a8] sm:$0xff]  ;;  %v4964_v23 = vcombine.low %v2300_v6, %v2304_v7  ;;  %3120 = vmatpush1.bf16.msra.mxu1 %v4958_v11  ;;  %3080 = vmatprep.subr.bf16.mxu0 %v4965_v12  ;;  %v4966_v24 = vcombine.low %v2301_v8, %v2305_v9 }
 0x784   : > { %3121 = vmatprep.subr.bf16.mxu1 %v4967_v13  ;;  %v4975_v27 = vcombine.high %v2309_v20, %v2313_v21  ;;  %v4972_v34 = vcombine.low %v2308_v14, %v2312_v16  ;;  %v4974_v35 = vcombine.low %v2309_v20, %v2313_v21  ;;  %v2352_v11 = vld [vmem:[%s6938_s11 + $0x2e0] sm:$0xff]  ;;  %v2349_v12 = vld [vmem:[%s6938_s11 + $0x2c8] sm:$0xff] }
 0x785   : > { %v2216_v26 = vadd.f32 %v7181_v25, %v7179_v22  ;;  %v5013_v13 = vcombine.high %v2348_v10, %v2352_v11  ;;  %v2385_v55 = vld [vmem:[%s6938_s11 + $0x3e8] sm:$0xff] }
 0x786   : > { %3081 = vmatpush1.bf16.msra.mxu0 %v4964_v23  ;;  %v2356_v23 = vld [vmem:[%s6938_s11 + $0x300] sm:$0xff] }
 0x787   : > { %2217 = vadd.xlane.f32.xlu0 %v2216_v26  ;;  %v4973_v26 = vcombine.high %v2308_v14, %v2312_v16  ;;  %3122 = vmatpush1.bf16.msra.mxu1 %v4966_v24  ;;  %v2353_v14 = vld [vmem:[%s6938_s11 + $0x2e8] sm:$0xff]  ;;  %v5012_v16 = vcombine.low %v2348_v10, %v2352_v11  ;;  %v2360_v24 = vld [vmem:[%s6938_s11 + $0x320] sm:$0xff]  ;;  %v2214_v10 = vld [vmem:[%s7728_s14] sm:$0x3] }
 0x788   : > { %3123 = vmatprep.subr.bf16.mxu1 %v4975_v27  ;;  %v5014_v20 = vcombine.low %v2349_v12, %v2353_v14  ;;  %v5015_v21 = vcombine.high %v2349_v12, %v2353_v14  ;;  %v5021_v27 = vcombine.high %v2356_v23, %v2360_v24  ;;  %v5020_v29 = vcombine.low %v2356_v23, %v2360_v24  ;;  %v2215_v11 = vld [vmem:[%s6952_s19] sm:$0x3] }
 0x789   : > { %3082 = vmatprep.subr.bf16.mxu0 %v4973_v26  ;;  %v2357_v26 = vld [vmem:[%s6938_s11 + $0x308] sm:$0xff]  ;;  %v2240_v12 = vrot.slane %v2214_v10, %v7059_v18  ;;  %v2249_v23 = vrot.slane %v2215_v11, %v7062_v19 }
 0x78a   : > { %3083 = vmatpush1.bf16.msra.mxu0 %v4972_v34  ;;  %v5022_v32 = vcombine.low %v2357_v26, %v2361_v28  ;;  %v5023_v33 = vcombine.high %v2357_v26, %v2361_v28  ;;  %v2364_v34 = vld [vmem:[%s6938_s11 + $0x340] sm:$0xff] }
 0x78b   : > { %3124 = vmatpush1.bf16.msra.mxu1 %v4974_v35  ;;  %3084 = vmatprep.subr.bf16.mxu0 %v4981_v36  ;;  %v2368_v35 = vld [vmem:[%s6938_s11 + $0x360] sm:$0xff]  ;;  %v2365_v36 = vld [vmem:[%s6938_s11 + $0x348] sm:$0xff] }
 0x78c   : > { %3125 = vmatprep.subr.bf16.mxu1 %v4983_v37  ;;  %v5029_v37 = vcombine.high %v2364_v34, %v2368_v35  ;;  %v5028_v39 = vcombine.low %v2364_v34, %v2368_v35  ;;  %v5030_v40 = vcombine.low %v2365_v36, %v2369_v38  ;;  %v5031_v41 = vcombine.high %v2365_v36, %v2369_v38  ;;  %v2275_v34 = vld [vmem:[%s6938_s11 + $0x78] sm:$0xff]  ;;  %v2282_v38 = vld [vmem:[%s6938_s11 + $0xb0] sm:$0xff] }
 0x78e   : > { %3085 = vmatpush1.bf16.msra.mxu0 %v4980_v42  ;;  %v2372_v42 = vld [vmem:[%s6938_s11 + $0x380] sm:$0xff] }
 0x78f   : > { %3126 = vmatpush1.bf16.msra.mxu1 %v4982_v43  ;;  %3086 = vmatprep.subr.bf16.mxu0 %v4989_v45  ;;  %v2376_v43 = vld [vmem:[%s6938_s11 + $0x3a0] sm:$0xff]  ;;  %v2373_v45 = vld [vmem:[%s6938_s11 + $0x388] sm:$0xff] }
 0x790   : > { %3127 = vmatprep.subr.bf16.mxu1 %v4991_v46  ;;  %v5037_v46 = vcombine.high %v2372_v42, %v2376_v43  ;;  %v5036_v48 = vcombine.low %v2372_v42, %v2376_v43  ;;  %v5038_v49 = vcombine.low %v2373_v45, %v2377_v47  ;;  %v5039_v50 = vcombine.high %v2373_v45, %v2377_v47  ;;  %v2290_v47 = vld [vmem:[%s6938_s11 + $0xf0] sm:$0xff] }
 0x792   : > { %3087 = vmatpush1.bf16.msra.mxu0 %v4988_v51  ;;  %v2380_v51 = vld [vmem:[%s6938_s11 + $0x3c0] sm:$0xff] }
 0x793   : > { %3128 = vmatpush1.bf16.msra.mxu1 %v4990_v52  ;;  %3088 = vmatprep.subr.bf16.mxu0 %v4997_v53  ;;  %v2384_v52 = vld [vmem:[%s6938_s11 + $0x3e0] sm:$0xff]  ;;  %v2381_v53 = vld [vmem:[%s6938_s11 + $0x3c8] sm:$0xff] }
 0x794   : > { %3129 = vmatprep.subr.bf16.mxu1 %v4999_v54  ;;  %v5045_v54 = vcombine.high %v2380_v51, %v2384_v52  ;;  %v5044_v56 = vcombine.low %v2380_v51, %v2384_v52  ;;  %v5047_v57 = vcombine.high %v2381_v53, %v2385_v55  ;;  %v5046_v58 = vcombine.low %v2381_v53, %v2385_v55  ;;  %v2298_v55 = vld [vmem:[%s6938_s11 + $0x130] sm:$0xff] }
 0x796   : > { %3089 = vmatpush1.bf16.msra.mxu0 %v4996_v59  ;;  %v2262_v59 = vld [vmem:[%s6938_s11 + $0x10] sm:$0xff] }
 0x797   : > { %3130 = vmatpush1.bf16.msra.mxu1 %v4998_v60  ;;  %3090 = vmatprep.subr.bf16.mxu0 %v5005_v61  ;;  %v2266_v60 = vld [vmem:[%s6938_s11 + $0x30] sm:$0xff]  ;;  %v2263_v61 = vld [vmem:[%s6938_s11 + $0x18] sm:$0xff] }
 0x798   : > { %3131 = vmatprep.subr.bf16.mxu1 %v5007_v62  ;;  %v4929_v62 = vcombine.high %v2262_v59, %v2266_v60 }
 0x79a   : > { %3091 = vmatpush1.bf16.msra.mxu0 %v5004_v63  ;;  %v2267_v63 = vld [vmem:[%s6938_s11 + $0x38] sm:$0xff] }
 0x79b   : > { %3132 = vmatpush1.bf16.msra.mxu1 %v5006_v0  ;;  %3092 = vmatprep.subr.bf16.mxu0 %v5013_v13  ;;  %v4928_v0 = vcombine.low %v2262_v59, %v2266_v60  ;;  %v2236_v13 = vrot.slane %v2214_v10, %v7062_v19  ;;  %v2310_v10 = vld [vmem:[%s6938_s11 + $0x190] sm:$0xff] }
 0x79c   : > { %3133 = vmatprep.subr.bf16.mxu1 %v5015_v21  ;;  %v2253_v21 = vrot.slane %v2215_v11, %v7059_v18  ;;  %v2314_v11 = vld [vmem:[%s6938_s11 + $0x1b0] sm:$0xff] }
 0x79e   : > { %3093 = vmatpush1.bf16.msra.mxu0 %v5012_v16 }
 0x79f   : > { %3134 = vmatpush1.bf16.msra.mxu1 %v5014_v20  ;;  %3094 = vmatprep.subr.bf16.mxu0 %v5021_v27 }
 0x7a0   : > { %3135 = vmatprep.subr.bf16.mxu1 %v5023_v33  ;;  %v2271_v33 = vld [vmem:[%s6938_s11 + $0x58] sm:$0xff] }
 0x7a1   : > { %v4938_v42 = vcombine.low %v2271_v33, %v2275_v34 }
 0x7a2   : > { %3095 = vmatpush1.bf16.msra.mxu0 %v5020_v29  ;;  %v2270_v29 = vld [vmem:[%s6938_s11 + $0x50] sm:$0xff] }
 0x7a3   : > { %3136 = vmatpush1.bf16.msra.mxu1 %v5022_v32  ;;  %3096 = vmatprep.subr.bf16.mxu0 %v5029_v37  ;;  %v2274_v32 = vld [vmem:[%s6938_s11 + $0x70] sm:$0xff]  ;;  %v4939_v37 = vcombine.high %v2271_v33, %v2275_v34 }
 0x7a4   : > { %3137 = vmatprep.subr.bf16.mxu1 %v5031_v41  ;;  %v4936_v41 = vcombine.low %v2270_v29, %v2274_v32  ;;  %v2326_v34 = vld [vmem:[%s6938_s11 + $0x210] sm:$0xff] }
 0x7a6   : > { %3097 = vmatpush1.bf16.msra.mxu0 %v5028_v39  ;;  %v2279_v39 = vld [vmem:[%s6938_s11 + $0x98] sm:$0xff] }
 0x7a7   : > { %3138 = vmatpush1.bf16.msra.mxu1 %v5030_v40  ;;  %3098 = vmatprep.subr.bf16.mxu0 %v5037_v46  ;;  %v2283_v40 = vld [vmem:[%s6938_s11 + $0xb8] sm:$0xff]  ;;  %v2286_v46 = vld [vmem:[%s6938_s11 + $0xd0] sm:$0xff] }
 0x7a8   : > { %3139 = vmatprep.subr.bf16.mxu1 %v5039_v50  ;;  %v4947_v45 = vcombine.high %v2279_v39, %v2283_v40  ;;  %v4946_v51 = vcombine.low %v2279_v39, %v2283_v40  ;;  %v4953_v52 = vcombine.high %v2286_v46, %v2290_v47 }
 0x7aa   : > { %3099 = vmatpush1.bf16.msra.mxu0 %v5036_v48  ;;  %v2287_v48 = vld [vmem:[%s6938_s11 + $0xd8] sm:$0xff] }
 0x7ab   : > { %3140 = vmatpush1.bf16.msra.mxu1 %v5038_v49  ;;  %3100 = vmatprep.subr.bf16.mxu0 %v5045_v54  ;;  %v2291_v49 = vld [vmem:[%s6938_s11 + $0xf8] sm:$0xff]  ;;  %v2294_v54 = vld [vmem:[%s6938_s11 + $0x110] sm:$0xff] }
 0x7ac   : > { %3141 = vmatprep.subr.bf16.mxu1 %v5047_v57  ;;  %v4955_v53 = vcombine.high %v2287_v48, %v2291_v49  ;;  %v2299_v57 = vld [vmem:[%s6938_s11 + $0x138] sm:$0xff]  ;;  %v4954_v59 = vcombine.low %v2287_v48, %v2291_v49  ;;  %v4961_v60 = vcombine.high %v2294_v54, %v2298_v55 }
 0x7ae   : > { %3101 = vmatpush1.bf16.msra.mxu0 %v5044_v56  ;;  %v2295_v56 = vld [vmem:[%s6938_s11 + $0x118] sm:$0xff] }
 0x7af   : > { %3142 = vmatpush1.bf16.msra.mxu1 %v5046_v58  ;;  %3152 = vmatprep.subr.bf16.mxu0 %v4929_v62  ;;  %v4952_v58 = vcombine.low %v2286_v46, %v2290_v47  ;;  %v2302_v62 = vld [vmem:[%s6938_s11 + $0x150] sm:$0xff] }
 0x814   : > { %v2218_v1 = vpop.xlane.xlu0 %2217 }
 0x815   : > { %v2219_v2 = vmul.f32 0.00390625, %v2218_v1  ;;  %v4930_v1 = vcombine.low %v2263_v61, %v2267_v63 }
 0x817   : > { %v7230_v4 = vsub.f32 %v7179_v22, %v2219_v2  ;;  %v7233_v6 = vsub.f32 %v7181_v25, %v2219_v2  ;;  %v4931_v2 = vcombine.high %v2263_v61, %v2267_v63  ;;  %v4963_v61 = vcombine.high %v2295_v56, %v2299_v57  ;;  %v2306_v63 = vld [vmem:[%s6938_s11 + $0x170] sm:$0xff] }
 0x819   : > { %v2222_v7 = vmul.f32 %v7230_v4, %v7230_v4  ;;  %v2223_v8 = vmul.f32 %v7233_v6, %v7233_v6  ;;  %3193 = vmatprep.subr.bf16.mxu1 %v4931_v2  ;;  %v4960_v2 = vcombine.low %v2294_v54, %v2298_v55 }
 0x81b   : > { %v2224_v9 = vadd.f32 %v2223_v8, %v2222_v7 }
 0x81d   : > { %2225 = vadd.xlane.f32.xlu1 %v2224_v9 }
 0x8aa   : > { %v2226_v7 = vpop.xlane.xlu1 %2225 }
 0x8ab   : > { %v2227_v8 = vmul.f32 0.00390625, %v2226_v7  ;;  %v4962_v7 = vcombine.low %v2295_v56, %v2299_v57 }
 0x8ad   : > { %v2228_v9 = vadd.f32 1e-05, %v2227_v8  ;;  %v4969_v8 = vcombine.high %v2302_v62, %v2306_v63 }
 0x8af   : > { %5794 = vrsqrt.f32 %v2228_v9 }
 0x8b9   : > { %v5795_v14 = vpop.eup %5794 }
 0x8ba   : > { %v2230_v16 = vmul.f32 %v5795_v14, %v7230_v4  ;;  %v2231_v20 = vmul.f32 %v5795_v14, %v7233_v6  ;;  %v2278_v4 = vld [vmem:[%s6938_s11 + $0x90] sm:$0xff]  ;;  %v4937_v6 = vcombine.high %v2270_v29, %v2274_v32  ;;  %v4968_v14 = vcombine.low %v2302_v62, %v2306_v63 }
 0x8bb   : > { %v4945_v43 = vcombine.high %v2278_v4, %v2282_v38  ;;  %v4944_v50 = vcombine.low %v2278_v4, %v2282_v38  ;;  %v2327_v4 = vld [vmem:[%s6938_s11 + $0x218] sm:$0xff] }
 0x8bc   : > { %v2244_v24 = vmul.f32 %v2240_v12, %v2231_v20  ;;  %v2243_v26 = vmul.f32 %v2236_v13, %v2230_v16  ;;  %v2311_v12 = vld [vmem:[%s6938_s11 + $0x198] sm:$0xff]  ;;  %v4977_v20 = vcombine.high %v2310_v10, %v2314_v11 }
 0x8bd   : > { %v2315_v13 = vld [vmem:[%s6938_s11 + $0x1b8] sm:$0xff] }
 0x8be   : > { %v2257_v27 = vadd.f32 %v2253_v21, %v2244_v24  ;;  %v2256_v28 = vadd.f32 %v2249_v23, %v2243_v26  ;;  %v4979_v21 = vcombine.high %v2311_v12, %v2315_v13  ;;  %v2318_v23 = vld [vmem:[%s6938_s11 + $0x1d0] sm:$0xff]  ;;  %v2319_v26 = vld [vmem:[%s6938_s11 + $0x1d8] sm:$0xff]  ;;  %v4978_v29 = vcombine.low %v2311_v12, %v2315_v13 }
 0x8bf   : > { %v2322_v24 = vld [vmem:[%s6938_s11 + $0x1f0] sm:$0xff] }
 0x8c0   : > { %v2259_v35 = vpack.c.bf16 %v2257_v27, %v2257_v27  ;;  %v7276_v36 = vpack.c.bf16 %v2256_v28, %v2256_v28  ;;  %v2323_v27 = vld [vmem:[%s6938_s11 + $0x1f8] sm:$0xff]  ;;  %v4976_v28 = vcombine.low %v2310_v10, %v2314_v11  ;;  %v4985_v32 = vcombine.high %v2318_v23, %v2322_v24 }
 0x8c1   : > { %v4987_v33 = vcombine.high %v2319_v26, %v2323_v27  ;;  %v4986_v38 = vcombine.low %v2319_v26, %v2323_v27 }
 0x8c2   : > { %3102 = vmatprep.mubr.bf16.mxu0 %v2259_v35  ;;  %3143 = vmatprep.mubr.bf16.mxu1 %v2259_v35 }
 0x8c3   : > { %3103 = vmatmul.mubr.bf16.vlgmr.msra.gmra.mrb[16].mxu0 %v7276_v36  ;;  %3144 = vmatmul.mubr.bf16.vlgmr.msra.gmra.mrb[16].mxu1 %v7276_v36 }
 0x8c4   : > { %3153 = vmatpush1.bf16.msra.mxu0 %v4928_v0  ;;  %3194 = vmatpush1.bf16.msra.mxu1 %v4930_v1  ;;  %v2303_v0 = vld [vmem:[%s6938_s11 + $0x158] sm:$0xff] }
 0x8c5   : > { %3184 = vmatprep.mubr.bf16.mxu0 %v2259_v35  ;;  %3225 = vmatprep.mubr.bf16.mxu1 %v2259_v35  ;;  %v2307_v1 = vld [vmem:[%s6938_s11 + $0x178] sm:$0xff]  ;;  %v2330_v35 = vld [vmem:[%s6938_s11 + $0x230] sm:$0xff] }
 0x8c6   : > { %3154 = vmatprep.subr.bf16.mxu0 %v4937_v6  ;;  %3195 = vmatprep.subr.bf16.mxu1 %v4939_v37  ;;  %v4971_v9 = vcombine.high %v2303_v0, %v2307_v1  ;;  %v4970_v16 = vcombine.low %v2303_v0, %v2307_v1  ;;  %v2331_v6 = vld [vmem:[%s6938_s11 + $0x238] sm:$0xff]  ;;  %v4984_v37 = vcombine.low %v2318_v23, %v2322_v24 }
 0x8c7   : > { %v4993_v39 = vcombine.high %v2326_v34, %v2330_v35  ;;  %v4995_v40 = vcombine.high %v2327_v4, %v2331_v6  ;;  %v4992_v46 = vcombine.low %v2326_v34, %v2330_v35  ;;  %v4994_v47 = vcombine.low %v2327_v4, %v2331_v6 }
 0x8c8   : > { %3155 = vmatpush1.bf16.msra.mxu0 %v4936_v41  ;;  %3196 = vmatpush1.bf16.msra.mxu1 %v4938_v42  ;;  %v2334_v41 = vld [vmem:[%s6938_s11 + $0x250] sm:$0xff] }
 0x8c9   : > { %3156 = vmatprep.subr.bf16.mxu0 %v4945_v43  ;;  %3197 = vmatprep.subr.bf16.mxu1 %v4947_v45  ;;  %v2338_v42 = vld [vmem:[%s6938_s11 + $0x270] sm:$0xff]  ;;  %v2335_v43 = vld [vmem:[%s6938_s11 + $0x258] sm:$0xff] }
 0x8ca   : > { %v2339_v45 = vld [vmem:[%s6938_s11 + $0x278] sm:$0xff]  ;;  %v5001_v48 = vcombine.high %v2334_v41, %v2338_v42  ;;  %v5000_v54 = vcombine.low %v2334_v41, %v2338_v42 }
 0x8cb   : > { %v5003_v49 = vcombine.high %v2335_v43, %v2339_v45  ;;  %v5002_v55 = vcombine.low %v2335_v43, %v2339_v45 }
 0x8cc   : > { %3157 = vmatpush1.bf16.msra.mxu0 %v4944_v50  ;;  %3198 = vmatpush1.bf16.msra.mxu1 %v4946_v51  ;;  %v2342_v50 = vld [vmem:[%s6938_s11 + $0x290] sm:$0xff] }
 0x8cd   : > { %3158 = vmatprep.subr.bf16.mxu0 %v4953_v52  ;;  %3199 = vmatprep.subr.bf16.mxu1 %v4955_v53  ;;  %v2346_v51 = vld [vmem:[%s6938_s11 + $0x2b0] sm:$0xff]  ;;  %v2343_v52 = vld [vmem:[%s6938_s11 + $0x298] sm:$0xff] }
 0x8ce   : > { %v2347_v53 = vld [vmem:[%s6938_s11 + $0x2b8] sm:$0xff]  ;;  %v5009_v56 = vcombine.high %v2342_v50, %v2346_v51  ;;  %v5008_v62 = vcombine.low %v2342_v50, %v2346_v51  ;;  %v5592_v50 = vld [vmem:[%s6940_s17] ss:$8 sps:$4 sm:$0xff]  }
 0x8cf   : > { %v5011_v57 = vcombine.high %v2343_v52, %v2347_v53  ;;  %v5010_v63 = vcombine.low %v2343_v52, %v2347_v53  ;;  %v5595_v51 = vld [vmem:[%s6940_s17 + $0x100] ss:$8 sps:$4 sm:$0xff]   ;;  %v5600_v52 = vld [vmem:[%s6940_s17 + $0x14] ss:$8 sps:$4 sm:$0xff]  }
 0x8d0   : > { %3159 = vmatpush1.bf16.msra.mxu0 %v4952_v58  ;;  %3200 = vmatpush1.bf16.msra.mxu1 %v4954_v59  ;;  %v2350_v58 = vld [vmem:[%s6938_s11 + $0x2d0] sm:$0xff] }
 0x8d1   : > { %3160 = vmatprep.subr.bf16.mxu0 %v4961_v60  ;;  %3201 = vmatprep.subr.bf16.mxu1 %v4963_v61  ;;  %v2354_v59 = vld [vmem:[%s6938_s11 + $0x2f0] sm:$0xff]  ;;  %v2351_v60 = vld [vmem:[%s6938_s11 + $0x2d8] sm:$0xff] }
 0x8d2   : > { %v2355_v61 = vld [vmem:[%s6938_s11 + $0x2f8] sm:$0xff]  ;;  %v5017_v0 = vcombine.high %v2350_v58, %v2354_v59  ;;  %v5016_v10 = vcombine.low %v2350_v58, %v2354_v59  ;;  %v5604_v58 = vld [vmem:[%s6940_s17 + $0x20] ss:$8 sps:$4 sm:$0xff]  }
 0x8d3   : > { %v5019_v1 = vcombine.high %v2351_v60, %v2355_v61  ;;  %v5018_v11 = vcombine.low %v2351_v60, %v2355_v61  ;;  %v5603_v53 = vld [vmem:[%s6940_s17 + $0x114] ss:$8 sps:$4 sm:$0xff]   ;;  %v5607_v59 = vld [vmem:[%s6940_s17 + $0x120] ss:$8 sps:$4 sm:$0xff]   ;;  %v5610_v61 = vld [vmem:[%s6940_s17 + $0x30] ss:$8 sps:$4 sm:$0xff]  }
 0x8d4   : > { %3161 = vmatpush1.bf16.msra.mxu0 %v4960_v2  ;;  %3202 = vmatpush1.bf16.msra.mxu1 %v4962_v7  ;;  %v2358_v2 = vld [vmem:[%s6938_s11 + $0x310] sm:$0xff] }
 0x8d5   : > { %3162 = vmatprep.subr.bf16.mxu0 %v4969_v8  ;;  %3203 = vmatprep.subr.bf16.mxu1 %v4971_v9  ;;  %v2362_v7 = vld [vmem:[%s6938_s11 + $0x330] sm:$0xff]  ;;  %v2359_v8 = vld [vmem:[%s6938_s11 + $0x318] sm:$0xff] }
 0x8d6   : > { %v2363_v9 = vld [vmem:[%s6938_s11 + $0x338] sm:$0xff]  ;;  %v5025_v12 = vcombine.high %v2358_v2, %v2362_v7  ;;  %v5024_v23 = vcombine.low %v2358_v2, %v2362_v7  ;;  %v5619_v2 = vld [vmem:[%s6940_s17 + $0x140] ss:$8 sps:$4 sm:$0xff]  }
 0x8d7   : > { %v5027_v13 = vcombine.high %v2359_v8, %v2363_v9  ;;  %v5026_v24 = vcombine.low %v2359_v8, %v2363_v9  ;;  %v5615_v60 = vld [vmem:[%s6940_s17 + $0x134] ss:$8 sps:$4 sm:$0xff]   ;;  %v5622_v9 = vld [vmem:[%s6940_s17 + $0x50] ss:$8 sps:$4 sm:$0xff]  }
 0x8d8   : > { %3163 = vmatpush1.bf16.msra.mxu0 %v4968_v14  ;;  %3204 = vmatpush1.bf16.msra.mxu1 %v4970_v16  ;;  %v2366_v14 = vld [vmem:[%s6938_s11 + $0x350] sm:$0xff] }
 0x8d9   : > { %3164 = vmatprep.subr.bf16.mxu0 %v4977_v20  ;;  %3205 = vmatprep.subr.bf16.mxu1 %v4979_v21  ;;  %v2370_v16 = vld [vmem:[%s6938_s11 + $0x370] sm:$0xff]  ;;  %v2367_v20 = vld [vmem:[%s6938_s11 + $0x358] sm:$0xff] }
 0x8da   : > { %v2371_v21 = vld [vmem:[%s6938_s11 + $0x378] sm:$0xff]  ;;  %v5033_v26 = vcombine.high %v2366_v14, %v2370_v16  ;;  %v5032_v34 = vcombine.low %v2366_v14, %v2370_v16  ;;  %v5631_v14 = vld [vmem:[%s6940_s17 + $0x160] ss:$8 sps:$4 sm:$0xff]  }
 0x8db   : > { %v5035_v27 = vcombine.high %v2367_v20, %v2371_v21  ;;  %v5034_v35 = vcombine.low %v2367_v20, %v2371_v21  ;;  %v5624_v7 = vld [vmem:[%s6940_s17 + $0x54] ss:$8 sps:$4 sm:$0xff]   ;;  %v5634_v21 = vld [vmem:[%s6940_s17 + $0x70] ss:$8 sps:$4 sm:$0xff]  }
 0x8dc   : > { %3165 = vmatpush1.bf16.msra.mxu0 %v4976_v28  ;;  %3206 = vmatpush1.bf16.msra.mxu1 %v4978_v29  ;;  %v2374_v28 = vld [vmem:[%s6938_s11 + $0x390] sm:$0xff] }
 0x8dd   : > { %3166 = vmatprep.subr.bf16.mxu0 %v4985_v32  ;;  %3207 = vmatprep.subr.bf16.mxu1 %v4987_v33  ;;  %v2378_v29 = vld [vmem:[%s6938_s11 + $0x3b0] sm:$0xff]  ;;  %v2375_v32 = vld [vmem:[%s6938_s11 + $0x398] sm:$0xff] }
 0x8de   : > { %v2379_v33 = vld [vmem:[%s6938_s11 + $0x3b8] sm:$0xff]  ;;  %v5041_v4 = vcombine.high %v2374_v28, %v2378_v29  ;;  %v5040_v41 = vcombine.low %v2374_v28, %v2378_v29  ;;  %v5643_v28 = vld [vmem:[%s6940_s17 + $0x180] ss:$8 sps:$4 sm:$0xff]  }
 0x8df   : > { %v5043_v6 = vcombine.high %v2375_v32, %v2379_v33  ;;  %v5042_v42 = vcombine.low %v2375_v32, %v2379_v33  ;;  %v5627_v8 = vld [vmem:[%s6940_s17 + $0x154] ss:$8 sps:$4 sm:$0xff]   ;;  %v5646_v33 = vld [vmem:[%s6940_s17 + $0x90] ss:$8 sps:$4 sm:$0xff]  }
 0x8e0   : > { %3167 = vmatpush1.bf16.msra.mxu0 %v4984_v37  ;;  %3208 = vmatpush1.bf16.msra.mxu1 %v4986_v38  ;;  %v2382_v37 = vld [vmem:[%s6938_s11 + $0x3d0] sm:$0xff] }
 0x8e1   : > { %3168 = vmatprep.subr.bf16.mxu0 %v4993_v39  ;;  %3209 = vmatprep.subr.bf16.mxu1 %v4995_v40  ;;  %v2386_v38 = vld [vmem:[%s6938_s11 + $0x3f0] sm:$0xff]  ;;  %v2383_v39 = vld [vmem:[%s6938_s11 + $0x3d8] sm:$0xff] }
 0x8e2   : > { %v2387_v40 = vld [vmem:[%s6938_s11 + $0x3f8] sm:$0xff]  ;;  %v5049_v43 = vcombine.high %v2382_v37, %v2386_v38 }
 0x8e3   : > { %v5051_v45 = vcombine.high %v2383_v39, %v2387_v40  ;;  %v5636_v16 = vld [vmem:[%s6940_s17 + $0x74] ss:$8 sps:$4 sm:$0xff]  }
 0x8e4   : > { %3169 = vmatpush1.bf16.msra.mxu0 %v4992_v46  ;;  %3210 = vmatpush1.bf16.msra.mxu1 %v4994_v47  ;;  %v5048_v46 = vcombine.low %v2382_v37, %v2386_v38  ;;  %v5050_v47 = vcombine.low %v2383_v39, %v2387_v40  ;;  %v5639_v20 = vld [vmem:[%s6940_s17 + $0x174] ss:$8 sps:$4 sm:$0xff]   ;;  %v5655_v37 = vld [vmem:[%s6940_s17 + $0x1a0] ss:$8 sps:$4 sm:$0xff]   ;;  %v5658_v40 = vld [vmem:[%s6940_s17 + $0xb0] ss:$8 sps:$4 sm:$0xff]  }
 0x8e5   : > { %3170 = vmatprep.subr.bf16.mxu0 %v5001_v48  ;;  %3211 = vmatprep.subr.bf16.mxu1 %v5003_v49  ;;  %v5594_v48 = vld [vmem:[%s6940_s17 + $0x4] ss:$8 sps:$4 sm:$0xff]   ;;  %v5648_v29 = vld [vmem:[%s6940_s17 + $0x94] ss:$8 sps:$4 sm:$0xff]  }
 0x8e6   : > { %v5597_v49 = vld [vmem:[%s6940_s17 + $0x104] ss:$8 sps:$4 sm:$0xff]   ;;  %v5651_v32 = vld [vmem:[%s6940_s17 + $0x194] ss:$8 sps:$4 sm:$0xff]  }
 0x8e7   : > { %v5660_v38 = vld [vmem:[%s6940_s17 + $0xb4] ss:$8 sps:$4 sm:$0xff]  }
 0x8e8   : > { %3171 = vmatpush1.bf16.msra.mxu0 %v5000_v54  ;;  %3212 = vmatpush1.bf16.msra.mxu1 %v5002_v55  ;;  %v5598_v54 = vld [vmem:[%s6940_s17 + $0x10] ss:$8 sps:$4 sm:$0xff]   ;;  %v5663_v39 = vld [vmem:[%s6940_s17 + $0x1b4] ss:$8 sps:$4 sm:$0xff]  }
 0x8e9   : > { %3172 = vmatprep.subr.bf16.mxu0 %v5009_v56  ;;  %3213 = vmatprep.subr.bf16.mxu1 %v5011_v57  ;;  %v5601_v55 = vld [vmem:[%s6940_s17 + $0x110] ss:$8 sps:$4 sm:$0xff]   ;;  %v5606_v56 = vld [vmem:[%s6940_s17 + $0x24] ss:$8 sps:$4 sm:$0xff]  }
 0x8ea   : > { %v5609_v57 = vld [vmem:[%s6940_s17 + $0x124] ss:$8 sps:$4 sm:$0xff]  }
 0x8ec   : > { %3173 = vmatpush1.bf16.msra.mxu0 %v5008_v62  ;;  %3214 = vmatpush1.bf16.msra.mxu1 %v5010_v63  ;;  %v5613_v62 = vld [vmem:[%s6940_s17 + $0x130] ss:$8 sps:$4 sm:$0xff]   ;;  %v5618_v63 = vld [vmem:[%s6940_s17 + $0x44] ss:$8 sps:$4 sm:$0xff]  }
 0x8ed   : > { %3174 = vmatprep.subr.bf16.mxu0 %v5017_v0  ;;  %3215 = vmatprep.subr.bf16.mxu1 %v5019_v1  ;;  %v5621_v0 = vld [vmem:[%s6940_s17 + $0x144] ss:$8 sps:$4 sm:$0xff]   ;;  %v5616_v1 = vld [vmem:[%s6940_s17 + $0x40] ss:$8 sps:$4 sm:$0xff]  }
 0x8f0   : > { %3175 = vmatpush1.bf16.msra.mxu0 %v5016_v10  ;;  %3216 = vmatpush1.bf16.msra.mxu1 %v5018_v11  ;;  %v5625_v10 = vld [vmem:[%s6940_s17 + $0x150] ss:$8 sps:$4 sm:$0xff]   ;;  %v5630_v11 = vld [vmem:[%s6940_s17 + $0x64] ss:$8 sps:$4 sm:$0xff]  }
 0x8f1   : > { %3176 = vmatprep.subr.bf16.mxu0 %v5025_v12  ;;  %3217 = vmatprep.subr.bf16.mxu1 %v5027_v13  ;;  %v5633_v12 = vld [vmem:[%s6940_s17 + $0x164] ss:$8 sps:$4 sm:$0xff]   ;;  %v5628_v13 = vld [vmem:[%s6940_s17 + $0x60] ss:$8 sps:$4 sm:$0xff]  }
 0x8f4   : > { %3177 = vmatpush1.bf16.msra.mxu0 %v5024_v23  ;;  %3218 = vmatpush1.bf16.msra.mxu1 %v5026_v24  ;;  %v5637_v23 = vld [vmem:[%s6940_s17 + $0x170] ss:$8 sps:$4 sm:$0xff]   ;;  %v5642_v24 = vld [vmem:[%s6940_s17 + $0x84] ss:$8 sps:$4 sm:$0xff]  }
 0x8f5   : > { %3178 = vmatprep.subr.bf16.mxu0 %v5033_v26  ;;  %3219 = vmatprep.subr.bf16.mxu1 %v5035_v27  ;;  %v5645_v26 = vld [vmem:[%s6940_s17 + $0x184] ss:$8 sps:$4 sm:$0xff]   ;;  %v5640_v27 = vld [vmem:[%s6940_s17 + $0x80] ss:$8 sps:$4 sm:$0xff]  }
 0x8f8   : > { %3179 = vmatpush1.bf16.msra.mxu0 %v5032_v34  ;;  %3220 = vmatpush1.bf16.msra.mxu1 %v5034_v35  ;;  %v5649_v34 = vld [vmem:[%s6940_s17 + $0x190] ss:$8 sps:$4 sm:$0xff]   ;;  %v5654_v35 = vld [vmem:[%s6940_s17 + $0xa4] ss:$8 sps:$4 sm:$0xff]  }
 0x8f9   : > { %3180 = vmatprep.subr.bf16.mxu0 %v5041_v4  ;;  %3221 = vmatprep.subr.bf16.mxu1 %v5043_v6  ;;  %v5657_v4 = vld [vmem:[%s6940_s17 + $0x1a4] ss:$8 sps:$4 sm:$0xff]   ;;  %v5652_v6 = vld [vmem:[%s6940_s17 + $0xa0] ss:$8 sps:$4 sm:$0xff]  }
 0x8fc   : > { %3181 = vmatpush1.bf16.msra.mxu0 %v5040_v41  ;;  %3222 = vmatpush1.bf16.msra.mxu1 %v5042_v42  ;;  %v5661_v41 = vld [vmem:[%s6940_s17 + $0x1b0] ss:$8 sps:$4 sm:$0xff]   ;;  %v5666_v42 = vld [vmem:[%s6940_s17 + $0xc4] ss:$8 sps:$4 sm:$0xff]  }
 0x8fd   : > { %3182 = vmatprep.subr.bf16.mxu0 %v5049_v43  ;;  %3223 = vmatprep.subr.bf16.mxu1 %v5051_v45  ;;  %v5669_v43 = vld [vmem:[%s6940_s17 + $0x1c4] ss:$8 sps:$4 sm:$0xff]   ;;  %v5664_v45 = vld [vmem:[%s6940_s17 + $0xc0] ss:$8 sps:$4 sm:$0xff]  }
 0x900   : > { %3183 = vmatpush1.bf16.msra.mxu0 %v5048_v46  ;;  %3224 = vmatpush1.bf16.msra.mxu1 %v5050_v47  ;;  %v5667_v46 = vld [vmem:[%s6940_s17 + $0x1c0] ss:$8 sps:$4 sm:$0xff]   ;;  %v5672_v47 = vld [vmem:[%s6940_s17 + $0xd4] ss:$8 sps:$4 sm:$0xff]  }
 0x901   : > { %4086 = vmatprep.subr.bf16.mxu0 %v5594_v48  ;;  %4127 = vmatprep.subr.bf16.mxu1 %v5597_v49  ;;  %v5675_v48 = vld [vmem:[%s6940_s17 + $0x1d4] ss:$8 sps:$4 sm:$0xff]   ;;  %v5670_v49 = vld [vmem:[%s6940_s17 + $0xd0] ss:$8 sps:$4 sm:$0xff]  }
 0x903   : > { %3185 = vmatmul.mubr.bf16.vlgmr.msra.gmra.mrb[20].mxu0 %v7276_v36  ;;  %3226 = vmatmul.mubr.bf16.vlgmr.msra.gmra.mrb[20].mxu1 %v7276_v36  ;;  %v5612_v36 = vld [vmem:[%s6940_s17 + $0x34] ss:$8 sps:$4 sm:$0xff]  }
 0x904   : > { %4087 = vmatpush1.bf16.msra.mxu0 %v5592_v50  ;;  %4128 = vmatpush1.bf16.msra.mxu1 %v5595_v51  ;;  %v5673_v50 = vld [vmem:[%s6940_s17 + $0x1d0] ss:$8 sps:$4 sm:$0xff]   ;;  %v5678_v51 = vld [vmem:[%s6940_s17 + $0xe4] ss:$8 sps:$4 sm:$0xff]  }
 0x905   : > { %4088 = vmatprep.subr.bf16.mxu0 %v5600_v52  ;;  %4129 = vmatprep.subr.bf16.mxu1 %v5603_v53  ;;  %v5681_v52 = vld [vmem:[%s6940_s17 + $0x1e4] ss:$8 sps:$4 sm:$0xff]   ;;  %v5676_v53 = vld [vmem:[%s6940_s17 + $0xe0] ss:$8 sps:$4 sm:$0xff]  }
 0x908   : > { %4089 = vmatpush1.bf16.msra.mxu0 %v5598_v54  ;;  %4130 = vmatpush1.bf16.msra.mxu1 %v5601_v55  ;;  %v5679_v54 = vld [vmem:[%s6940_s17 + $0x1e0] ss:$8 sps:$4 sm:$0xff]   ;;  %v5684_v55 = vld [vmem:[%s6940_s17 + $0xf4] ss:$8 sps:$4 sm:$0xff]  }
 0x909   : > { %4090 = vmatprep.subr.bf16.mxu0 %v5606_v56  ;;  %4131 = vmatprep.subr.bf16.mxu1 %v5609_v57  ;;  %v5687_v56 = vld [vmem:[%s6940_s17 + $0x1f4] ss:$8 sps:$4 sm:$0xff]   ;;  %v5682_v57 = vld [vmem:[%s6940_s17 + $0xf0] ss:$8 sps:$4 sm:$0xff]  }
 0x90c   : > { %4091 = vmatpush1.bf16.msra.mxu0 %v5604_v58  ;;  %4132 = vmatpush1.bf16.msra.mxu1 %v5607_v59  ;;  %v5685_v58 = vld [vmem:[%s6940_s17 + $0x1f0] ss:$8 sps:$4 sm:$0xff]   ;;  %v5690_v59 = vld [vmem:[%s6940_s17 + $0x204] ss:$8 sps:$4 sm:$0xff]  }
 0x90d   : > { %4092 = vmatprep.subr.bf16.mxu0 %v5612_v36  ;;  %4133 = vmatprep.subr.bf16.mxu1 %v5615_v60  ;;  %v5693_v36 = vld [vmem:[%s6940_s17 + $0x304] ss:$8 sps:$4 sm:$0xff]  }
 0x90e   : > { %v7405_v60 = vld [vmem:[%s6962_s7] sm:$0xff]  ;;  %s7729_s7 = sld [smem:[#allocation33_spill]] }
 0x910   : > { %4093 = vmatpush1.bf16.msra.mxu0 %v5610_v61  ;;  %4134 = vmatpush1.bf16.msra.mxu1 %v5613_v62  ;;  %v2393_v61 = vrot.slane %v7405_v60, %v7062_v19  ;;  %v2401_v62 = vrot.slane %v7405_v60, %v1134_v3 }
 0x911   : > { %4094 = vmatprep.subr.bf16.mxu0 %v5618_v63  ;;  %4135 = vmatprep.subr.bf16.mxu1 %v5621_v0  ;;  %v2397_v63 = vrot.slane %v7405_v60, %v7059_v18  ;;  %v2405_v0 = vrot.slane %v7405_v60, %v1138_v5 }
 0x914   : > { %4095 = vmatpush1.bf16.msra.mxu0 %v5616_v1  ;;  %4136 = vmatpush1.bf16.msra.mxu1 %v5619_v2  ;;  %p5188_p3 = scmp.ne.s32.totalorder %s7729_s7, 1 }
 0x915   : > { %4096 = vmatprep.subr.bf16.mxu0 %v5624_v7  ;;  %4137 = vmatprep.subr.bf16.mxu1 %v5627_v8  ;;  %vm4376_vm4 = vcmask (!%p5188_p3), 57344   ;;  %s7730_s19 = sld [smem:[#allocation61_spill]] (!%p5188_p3)  ;;  %s7731_s13 = sld [smem:[#allocation62_spill]] (!%p5188_p3)  ;;  %vm4411_vm5 = vcmp.lt.s32.totalorder (!%p5188_p3), %v962_v15, 256 }
 0x918   : > { %4097 = vmatpush1.bf16.msra.mxu0 %v5622_v9  ;;  %4138 = vmatpush1.bf16.msra.mxu1 %v5625_v10 }
 0x919   : > { %4098 = vmatprep.subr.bf16.mxu0 %v5630_v11  ;;  %4139 = vmatprep.subr.bf16.mxu1 %v5633_v12 }
 0x91c   : > { %4099 = vmatpush1.bf16.msra.mxu0 %v5628_v13  ;;  %4140 = vmatpush1.bf16.msra.mxu1 %v5631_v14 }
 0x91d   : > { %4100 = vmatprep.subr.bf16.mxu0 %v5636_v16  ;;  %4141 = vmatprep.subr.bf16.mxu1 %v5639_v20 }
 0x920   : > { %4101 = vmatpush1.bf16.msra.mxu0 %v5634_v21  ;;  %4142 = vmatpush1.bf16.msra.mxu1 %v5637_v23 }
 0x921   : > { %4102 = vmatprep.subr.bf16.mxu0 %v5642_v24  ;;  %4143 = vmatprep.subr.bf16.mxu1 %v5645_v26 }
 0x924   : > { %4103 = vmatpush1.bf16.msra.mxu0 %v5640_v27  ;;  %4144 = vmatpush1.bf16.msra.mxu1 %v5643_v28 }
 0x925   : > { %4104 = vmatprep.subr.bf16.mxu0 %v5648_v29  ;;  %4145 = vmatprep.subr.bf16.mxu1 %v5651_v32 }
 0x928   : > { %4105 = vmatpush1.bf16.msra.mxu0 %v5646_v33  ;;  %4146 = vmatpush1.bf16.msra.mxu1 %v5649_v34 }
 0x929   : > { %4106 = vmatprep.subr.bf16.mxu0 %v5654_v35  ;;  %4147 = vmatprep.subr.bf16.mxu1 %v5657_v4 }
 0x92c   : > { %4107 = vmatpush1.bf16.msra.mxu0 %v5652_v6  ;;  %4148 = vmatpush1.bf16.msra.mxu1 %v5655_v37 }
 0x92d   : > { %4108 = vmatprep.subr.bf16.mxu0 %v5660_v38  ;;  %4149 = vmatprep.subr.bf16.mxu1 %v5663_v39 }
 0x930   : > { %4109 = vmatpush1.bf16.msra.mxu0 %v5658_v40  ;;  %4150 = vmatpush1.bf16.msra.mxu1 %v5661_v41 }
 0x931   : > { %4110 = vmatprep.subr.bf16.mxu0 %v5666_v42  ;;  %4151 = vmatprep.subr.bf16.mxu1 %v5669_v43 }
 0x934   : > { %4111 = vmatpush1.bf16.msra.mxu0 %v5664_v45  ;;  %4152 = vmatpush1.bf16.msra.mxu1 %v5667_v46 }
 0x935   : > { %4112 = vmatprep.subr.bf16.mxu0 %v5672_v47  ;;  %4153 = vmatprep.subr.bf16.mxu1 %v5675_v48  ;;  %v5688_v48 = vld [vmem:[%s6940_s17 + $0x200] ss:$8 sps:$4 sm:$0xff]  }
 0x938   : > { %4113 = vmatpush1.bf16.msra.mxu0 %v5670_v49  ;;  %4154 = vmatpush1.bf16.msra.mxu1 %v5673_v50 }
 0x939   : > { %4114 = vmatprep.subr.bf16.mxu0 %v5678_v51  ;;  %4155 = vmatprep.subr.bf16.mxu1 %v5681_v52  ;;  %v5691_v51 = vld [vmem:[%s6940_s17 + $0x300] ss:$8 sps:$4 sm:$0xff]   ;;  %v5696_v52 = vld [vmem:[%s6940_s17 + $0x214] ss:$8 sps:$4 sm:$0xff]  }
 0x93c   : > { %4115 = vmatpush1.bf16.msra.mxu0 %v5676_v53  ;;  %4156 = vmatpush1.bf16.msra.mxu1 %v5679_v54  ;;  %v5699_v54 = vld [vmem:[%s6940_s17 + $0x314] ss:$8 sps:$4 sm:$0xff]  }
 0x93d   : > { %4116 = vmatprep.subr.bf16.mxu0 %v5684_v55  ;;  %4157 = vmatprep.subr.bf16.mxu1 %v5687_v56  ;;  %v5694_v55 = vld [vmem:[%s6940_s17 + $0x210] ss:$8 sps:$4 sm:$0xff]  }
 0x93e   : > { %v5697_v56 = vld [vmem:[%s6940_s17 + $0x310] ss:$8 sps:$4 sm:$0xff]  }
 0x940   : > { %4117 = vmatpush1.bf16.msra.mxu0 %v5682_v57  ;;  %4158 = vmatpush1.bf16.msra.mxu1 %v5685_v58  ;;  %v5702_v57 = vld [vmem:[%s6940_s17 + $0x224] ss:$8 sps:$4 sm:$0xff]  }
 0x941   : > { %4168 = vmatprep.subr.bf16.mxu0 %v5690_v59  ;;  %4209 = vmatprep.subr.bf16.mxu1 %v5693_v36  ;;  %v5705_v58 = vld [vmem:[%s6940_s17 + $0x324] ss:$8 sps:$4 sm:$0xff]   ;;  %v5700_v59 = vld [vmem:[%s6940_s17 + $0x220] ss:$8 sps:$4 sm:$0xff]  }
 0x942   : > { %v5703_v36 = vld [vmem:[%s6940_s17 + $0x320] ss:$8 sps:$4 sm:$0xff]  }
 0x996   : > { %v3104_v1 = vpop.f32.mrb[16].mxu0  ;;  %v3145_v2 = vpop.f32.mrb[16].mxu1 }
 0x997   : > { %v3105_v7 = vadd.f32 %v3104_v1, %v2393_v61  ;;  %v3146_v8 = vadd.f32 %v3145_v2, %v2401_v62  ;;  %v3106_v9 = vpop.f32.mrb[17].mxu0  ;;  %v3147_v10 = vpop.f32.mrb[17].mxu1  ;;  %v5708_v61 = vld [vmem:[%s6940_s17 + $0x234] ss:$8 sps:$4 sm:$0xff]   ;;  %v5714_v1 = vld [vmem:[%s6940_s17 + $0x244] ss:$8 sps:$4 sm:$0xff]  }
 0x998   : > { %v3107_v11 = vadd.f32 %v3106_v9, %v2397_v63  ;;  %v3148_v12 = vadd.f32 %v3147_v10, %v2405_v0  ;;  %v3108_v13 = vpop.f32.mrb[18].mxu0  ;;  %v3149_v14 = vpop.f32.mrb[18].mxu1  ;;  %v5711_v62 = vld [vmem:[%s6940_s17 + $0x334] ss:$8 sps:$4 sm:$0xff]   ;;  %v5706_v63 = vld [vmem:[%s6940_s17 + $0x230] ss:$8 sps:$4 sm:$0xff]  }
 0x999   : > { %v5052_v16 = vmul.f32 -1.702, %v3105_v7  ;;  %v5054_v20 = vmul.f32 -1.702, %v3146_v8  ;;  %v3109_v3 = vpop.f32.mrb[19].mxu0  ;;  %v3150_v21 = vpop.f32.mrb[19].mxu1 }
 0x99a   : > { %v5053_v23 = vmul.f32 -1.702, %v3107_v11  ;;  %v5055_v24 = vmul.f32 -1.702, %v3148_v12  ;;  %v5709_v0 = vld [vmem:[%s6940_s17 + $0x330] ss:$8 sps:$4 sm:$0xff]  }
 0x99b   : > { %v3250_v26 = vmul.f32 1.442695, %v5052_v16  ;;  %v3254_v27 = vmul.f32 1.442695, %v5054_v20  ;;  %v5717_v2 = vld [vmem:[%s6940_s17 + $0x344] ss:$8 sps:$4 sm:$0xff]  }
 0x99c   : > { %v3252_v28 = vmul.f32 1.442695, %v5053_v23  ;;  %v3256_v5 = vmul.f32 1.442695, %v5055_v24  ;;  %v5720_v9 = vld [vmem:[%s6940_s17 + $0x254] ss:$8 sps:$4 sm:$0xff]   ;;  %v2409_v24 = vrot.slane %v7405_v60, %v1142_v30 }
 0x99d   : > { %5796 = vpow2.f32 %v3250_v26  ;;  %v5723_v10 = vld [vmem:[%s6940_s17 + $0x354] ss:$8 sps:$4 sm:$0xff]   ;;  %v5726_v13 = vld [vmem:[%s6940_s17 + $0x264] ss:$8 sps:$4 sm:$0xff]   ;;  %v2416_v16 = vsub.s32 6, %v7056_v17  ;;  %v2420_v20 = vsub.s32 7, %v7056_v17 }
 0x99e   : > { %5798 = vpow2.f32 %v3254_v27  ;;  %v5729_v14 = vld [vmem:[%s6940_s17 + $0x364] ss:$8 sps:$4 sm:$0xff]   ;;  %v5724_v3 = vld [vmem:[%s6940_s17 + $0x260] ss:$8 sps:$4 sm:$0xff]   ;;  %v5732_v23 = vld [vmem:[%s6940_s17 + $0x274] ss:$8 sps:$4 sm:$0xff]  }
 0x99f   : > { %5800 = vpow2.f32 %v3252_v28  ;;  %v5727_v21 = vld [vmem:[%s6940_s17 + $0x360] ss:$8 sps:$4 sm:$0xff]   ;;  %v2417_v26 = vrot.slane %v7405_v60, %v2416_v16  ;;  %v5735_v27 = vld [vmem:[%s6940_s17 + $0x374] ss:$8 sps:$4 sm:$0xff]   ;;  %v2413_v28 = vrot.slane %v7405_v60, %v1146_v31  ;;  %v5738_v30 = vld [vmem:[%s6940_s17 + $0x284] ss:$8 sps:$4 sm:$0xff]  }
 0x9a0   : > { %5802 = vpow2.f32 %v3256_v5  ;;  %v2421_v5 = vrot.slane %v7405_v60, %v2420_v20  ;;  %v5741_v31 = vld [vmem:[%s6940_s17 + $0x384] ss:$8 sps:$4 sm:$0xff]   ;;  %v5763_v20 = vld [vmem:[%s6940_s17 + $0x3c0] ss:$8 sps:$4 sm:$0xff]  }
 0x9a7   : > { %v5797_v29 = vpop.eup %5796 }
 0x9a8   : > { %v5799_v32 = vpop.eup %5798  ;;  %v3266_v33 = vadd.f32 1.0, %v5797_v29  ;;  %v5730_v29 = vld [vmem:[%s6940_s17 + $0x270] ss:$8 sps:$4 sm:$0xff]  }
 0x9a9   : > { %v5801_v34 = vpop.eup %5800  ;;  %v3268_v35 = vadd.f32 1.0, %v5799_v32 }
 0x9aa   : > { %v5803_v4 = vpop.eup %5802  ;;  %5804 = vrcp.f32 %v3266_v33  ;;  %v3267_v6 = vadd.f32 1.0, %v5801_v34  ;;  %v5733_v34 = vld [vmem:[%s6940_s17 + $0x370] ss:$8 sps:$4 sm:$0xff]  }
 0x9ab   : > { %5806 = vrcp.f32 %v3268_v35  ;;  %v3269_v37 = vadd.f32 1.0, %v5803_v4 }
 0x9ac   : > { %5808 = vrcp.f32 %v3267_v6 }
 0x9ad   : > { %5810 = vrcp.f32 %v3269_v37 }
 0x9b4   : > { %v5805_v38 = vpop.eup %5804 }
 0x9b5   : > { %v5807_v39 = vpop.eup %5806  ;;  %v3290_v41 = vmul.f32 %v5805_v38, %v3105_v7  ;;  %v5712_v7 = vld [vmem:[%s6940_s17 + $0x240] ss:$8 sps:$4 sm:$0xff]  }
 0x9b6   : > { %v5809_v40 = vpop.eup %5808  ;;  %v3292_v43 = vmul.f32 %v5807_v39, %v3146_v8  ;;  %v5715_v8 = vld [vmem:[%s6940_s17 + $0x340] ss:$8 sps:$4 sm:$0xff]  }
 0x9b7   : > { %v5811_v42 = vpop.eup %5810  ;;  %v3291_v45 = vmul.f32 %v5809_v40, %v3107_v11  ;;  %v3298_v49 = vpack.c.bf16 %v3290_v41, %v3290_v41  ;;  %v5718_v11 = vld [vmem:[%s6940_s17 + $0x250] ss:$8 sps:$4 sm:$0xff]   ;;  %v5736_v41 = vld [vmem:[%s6940_s17 + $0x280] ss:$8 sps:$4 sm:$0xff]  }
 0x9b8   : > { %v3293_v46 = vmul.f32 %v5811_v42, %v3148_v12  ;;  %v3300_v53 = vpack.c.bf16 %v3292_v43, %v3292_v43  ;;  %v5721_v12 = vld [vmem:[%s6940_s17 + $0x350] ss:$8 sps:$4 sm:$0xff]   ;;  %v5739_v42 = vld [vmem:[%s6940_s17 + $0x380] ss:$8 sps:$4 sm:$0xff]  }
 0x9b9   : > { %v3299_v47 = vpack.c.bf16 %v3291_v45, %v3291_v45 }
 0x9ba   : > { %v3301_v50 = vpack.c.bf16 %v3293_v46, %v3293_v46 }
 0x9bb   : > { %4118 = vmatprep.mubr.bf16.mxu0 %v3299_v47 }
 0x9bc   : > { %4159 = vmatprep.mubr.bf16.mxu1 %v3301_v50  ;;  %4119 = vmatmul.mubr.bf16.vlgmr.msra.gmra.mrb[24].mxu0 %v3298_v49  ;;  %v5744_v50 = vld [vmem:[%s6940_s17 + $0x294] ss:$8 sps:$4 sm:$0xff]  }
 0x9bd   : > { %4160 = vmatmul.mubr.bf16.vlgmr.msra.gmra.mrb[24].mxu1 %v3300_v53  ;;  %4169 = vmatpush1.bf16.msra.mxu0 %v5688_v48  ;;  %v5747_v53 = vld [vmem:[%s6940_s17 + $0x394] ss:$8 sps:$4 sm:$0xff]  }
 0x9be   : > { %4210 = vmatpush1.bf16.msra.mxu1 %v5691_v51  ;;  %4170 = vmatprep.subr.bf16.mxu0 %v5696_v52 }
 0x9bf   : > { %4211 = vmatprep.subr.bf16.mxu1 %v5699_v54 }
 0x9c1   : > { %4171 = vmatpush1.bf16.msra.mxu0 %v5694_v55 }
 0x9c2   : > { %4212 = vmatpush1.bf16.msra.mxu1 %v5697_v56  ;;  %4172 = vmatprep.subr.bf16.mxu0 %v5702_v57  ;;  %v5742_v56 = vld [vmem:[%s6940_s17 + $0x290] ss:$8 sps:$4 sm:$0xff]  }
 0x9c3   : > { %4213 = vmatprep.subr.bf16.mxu1 %v5705_v58  ;;  %v5745_v57 = vld [vmem:[%s6940_s17 + $0x390] ss:$8 sps:$4 sm:$0xff]   ;;  %v5750_v58 = vld [vmem:[%s6940_s17 + $0x2a4] ss:$8 sps:$4 sm:$0xff]  }
 0x9c5   : > { %4173 = vmatpush1.bf16.msra.mxu0 %v5700_v59  ;;  %v5753_v59 = vld [vmem:[%s6940_s17 + $0x3a4] ss:$8 sps:$4 sm:$0xff]  }
 0x9c6   : > { %4214 = vmatpush1.bf16.msra.mxu1 %v5703_v36  ;;  %4174 = vmatprep.subr.bf16.mxu0 %v5708_v61  ;;  %v5748_v36 = vld [vmem:[%s6940_s17 + $0x2a0] ss:$8 sps:$4 sm:$0xff]  }
 0x9c7   : > { %4215 = vmatprep.subr.bf16.mxu1 %v5711_v62  ;;  %v5751_v61 = vld [vmem:[%s6940_s17 + $0x3a0] ss:$8 sps:$4 sm:$0xff]   ;;  %v5756_v62 = vld [vmem:[%s6940_s17 + $0x2b4] ss:$8 sps:$4 sm:$0xff]  }
 0x9c9   : > { %4175 = vmatpush1.bf16.msra.mxu0 %v5706_v63  ;;  %v5759_v63 = vld [vmem:[%s6940_s17 + $0x3b4] ss:$8 sps:$4 sm:$0xff]  }
 0x9ca   : > { %4216 = vmatpush1.bf16.msra.mxu1 %v5709_v0  ;;  %4176 = vmatprep.subr.bf16.mxu0 %v5714_v1  ;;  %v5754_v0 = vld [vmem:[%s6940_s17 + $0x2b0] ss:$8 sps:$4 sm:$0xff]  }
 0x9cb   : > { %4217 = vmatprep.subr.bf16.mxu1 %v5717_v2  ;;  %v5757_v1 = vld [vmem:[%s6940_s17 + $0x3b0] ss:$8 sps:$4 sm:$0xff]   ;;  %v5762_v2 = vld [vmem:[%s6940_s17 + $0x2c4] ss:$8 sps:$4 sm:$0xff]  }
 0x9cd   : > { %4177 = vmatpush1.bf16.msra.mxu0 %v5712_v7 }
 0x9ce   : > { %4218 = vmatpush1.bf16.msra.mxu1 %v5715_v8  ;;  %4178 = vmatprep.subr.bf16.mxu0 %v5720_v9  ;;  %v5765_v8 = vld [vmem:[%s6940_s17 + $0x3c4] ss:$8 sps:$4 sm:$0xff]  }
 0x9cf   : > { %4219 = vmatprep.subr.bf16.mxu1 %v5723_v10 }
 0x9d1   : > { %4179 = vmatpush1.bf16.msra.mxu0 %v5718_v11 }
 0x9d2   : > { %4220 = vmatpush1.bf16.msra.mxu1 %v5721_v12  ;;  %4180 = vmatprep.subr.bf16.mxu0 %v5726_v13  ;;  %v5760_v13 = vld [vmem:[%s6940_s17 + $0x2c0] ss:$8 sps:$4 sm:$0xff]  }
 0x9d3   : > { %4221 = vmatprep.subr.bf16.mxu1 %v5729_v14 }
 0x9d5   : > { %4181 = vmatpush1.bf16.msra.mxu0 %v5724_v3  ;;  %v5768_v3 = vld [vmem:[%s6940_s17 + $0x2d4] ss:$8 sps:$4 sm:$0xff]  }
 0x9d6   : > { %4222 = vmatpush1.bf16.msra.mxu1 %v5727_v21  ;;  %v3186_v32 = vpop.f32.mrb[20].mxu0  ;;  %v3227_v33 = vpop.f32.mrb[20].mxu1  ;;  %4182 = vmatprep.subr.bf16.mxu0 %v5732_v23  ;;  %v5771_v23 = vld [vmem:[%s6940_s17 + $0x3d4] ss:$8 sps:$4 sm:$0xff]  }
 0x9d7   : > { %v7458_v35 = vadd.f32 %v3186_v32, %v2409_v24  ;;  %v7460_v4 = vadd.f32 %v3227_v33, %v2417_v26  ;;  %v3188_v6 = vpop.f32.mrb[21].mxu0  ;;  %v3229_v37 = vpop.f32.mrb[21].mxu1  ;;  %4223 = vmatprep.subr.bf16.mxu1 %v5735_v27  ;;  %v5766_v24 = vld [vmem:[%s6940_s17 + $0x2d0] ss:$8 sps:$4 sm:$0xff]   ;;  %v5774_v27 = vld [vmem:[%s6940_s17 + $0x2e4] ss:$8 sps:$4 sm:$0xff]  }
 0x9d8   : > { %v7463_v60 = vadd.f32 %v3188_v6, %v2413_v28  ;;  %v7465_v38 = vadd.f32 %v3229_v37, %v2421_v5  ;;  %v3190_v39 = vpop.f32.mrb[22].mxu0  ;;  %v3231_v40 = vpop.f32.mrb[22].mxu1  ;;  %v5769_v26 = vld [vmem:[%s6940_s17 + $0x3d0] ss:$8 sps:$4 sm:$0xff]   ;;  %v5777_v28 = vld [vmem:[%s6940_s17 + $0x3e4] ss:$8 sps:$4 sm:$0xff]  }
 0x9d9   : > { %v5056_v43 = vmul.f32 -1.702, %v7458_v35  ;;  %v5058_v45 = vmul.f32 -1.702, %v7460_v4  ;;  %4183 = vmatpush1.bf16.msra.mxu0 %v5730_v29  ;;  %v3191_v46 = vpop.f32.mrb[23].mxu0  ;;  %v3232_v47 = vpop.f32.mrb[23].mxu1 }
 0x9da   : > { %v5057_v48 = vmul.f32 -1.702, %v7463_v60  ;;  %v5059_v49 = vmul.f32 -1.702, %v7465_v38  ;;  %4224 = vmatpush1.bf16.msra.mxu1 %v5733_v34  ;;  %4184 = vmatprep.subr.bf16.mxu0 %v5738_v30  ;;  %v5772_v5 = vld [vmem:[%s6940_s17 + $0x2e0] ss:$8 sps:$4 sm:$0xff]  }
 0x9db   : > { %v3258_v51 = vmul.f32 1.442695, %v5056_v43  ;;  %v3262_v52 = vmul.f32 1.442695, %v5058_v45  ;;  %4225 = vmatprep.subr.bf16.mxu1 %v5741_v31  ;;  %v5775_v29 = vld [vmem:[%s6940_s17 + $0x3e0] ss:$8 sps:$4 sm:$0xff]  }
 0x9dc   : > { %v3260_v54 = vmul.f32 1.442695, %v5057_v48  ;;  %v3264_v55 = vmul.f32 1.442695, %v5059_v49  ;;  %v5780_v32 = vld [vmem:[%s6940_s17 + $0x2f4] ss:$8 sps:$4 sm:$0xff]  }
 0x9dd   : > { %5812 = vpow2.f32 %v3258_v51  ;;  %4185 = vmatpush1.bf16.msra.mxu0 %v5736_v41  ;;  %v5783_v33 = vld [vmem:[%s6940_s17 + $0x3f4] ss:$8 sps:$4 sm:$0xff]   ;;  %v5778_v6 = vld [vmem:[%s6940_s17 + $0x2f0] ss:$8 sps:$4 sm:$0xff]  }
 0x9de   : > { %5814 = vpow2.f32 %v3262_v52  ;;  %4226 = vmatpush1.bf16.msra.mxu1 %v5739_v42  ;;  %4186 = vmatprep.subr.bf16.mxu0 %v5744_v50  ;;  %v5781_v39 = vld [vmem:[%s6940_s17 + $0x3f0] ss:$8 sps:$4 sm:$0xff]  }
 0x9df   : > { %5816 = vpow2.f32 %v3260_v54  ;;  %4227 = vmatprep.subr.bf16.mxu1 %v5747_v53 }
 0x9e0   : > { %5818 = vpow2.f32 %v3264_v55 }
 0x9e1   : > { %4187 = vmatpush1.bf16.msra.mxu0 %v5742_v56 }
 0x9e2   : > { %4228 = vmatpush1.bf16.msra.mxu1 %v5745_v57  ;;  %4188 = vmatprep.subr.bf16.mxu0 %v5750_v58 }
 0x9e3   : > { %4229 = vmatprep.subr.bf16.mxu1 %v5753_v59 }
 0x9e5   : > { %4189 = vmatpush1.bf16.msra.mxu0 %v5748_v36 }
 0x9e6   : > { %4230 = vmatpush1.bf16.msra.mxu1 %v5751_v61  ;;  %4190 = vmatprep.subr.bf16.mxu0 %v5756_v62 }
 0x9e7   : > { %v5813_v7 = vpop.eup %5812  ;;  %4231 = vmatprep.subr.bf16.mxu1 %v5759_v63 }
 0x9e8   : > { %v5815_v9 = vpop.eup %5814  ;;  %v3270_v10 = vadd.f32 1.0, %v5813_v7 }
 0x9e9   : > { %v5817_v11 = vpop.eup %5816  ;;  %v3272_v12 = vadd.f32 1.0, %v5815_v9  ;;  %4191 = vmatpush1.bf16.msra.mxu0 %v5754_v0 }
 0x9ea   : > { %v5819_v14 = vpop.eup %5818  ;;  %5820 = vrcp.f32 %v3270_v10  ;;  %v3271_v16 = vadd.f32 1.0, %v5817_v11  ;;  %4232 = vmatpush1.bf16.msra.mxu1 %v5757_v1  ;;  %4192 = vmatprep.subr.bf16.mxu0 %v5762_v2 }
 0x9eb   : > { %5822 = vrcp.f32 %v3272_v12  ;;  %v3273_v21 = vadd.f32 1.0, %v5819_v14  ;;  %4233 = vmatprep.subr.bf16.mxu1 %v5765_v8 }
 0x9ec   : > { %5824 = vrcp.f32 %v3271_v16 }
 0x9ed   : > { %5826 = vrcp.f32 %v3273_v21  ;;  %4193 = vmatpush1.bf16.msra.mxu0 %v5760_v13 }
 0x9ee   : > { %4234 = vmatpush1.bf16.msra.mxu1 %v5763_v20  ;;  %4194 = vmatprep.subr.bf16.mxu0 %v5768_v3 }
 0x9ef   : > { %4235 = vmatprep.subr.bf16.mxu1 %v5771_v23 }
 0x9f1   : > { %4195 = vmatpush1.bf16.msra.mxu0 %v5766_v24 }
 0x9f2   : > { %4236 = vmatpush1.bf16.msra.mxu1 %v5769_v26  ;;  %4196 = vmatprep.subr.bf16.mxu0 %v5774_v27 }
 0x9f3   : > { %4237 = vmatprep.subr.bf16.mxu1 %v5777_v28 }
 0x9f4   : > { %v5821_v34 = vpop.eup %5820 }
 0x9f5   : > { %v5823_v30 = vpop.eup %5822  ;;  %4197 = vmatpush1.bf16.msra.mxu0 %v5772_v5  ;;  %v3294_v31 = vmul.f32 %v5821_v34, %v7458_v35  ;;  %v3434_v35 = vld [vmem:[%s6967_s30] sm:$0x3] }
 0x9f6   : > { %v5825_v37 = vpop.eup %5824  ;;  %4238 = vmatpush1.bf16.msra.mxu1 %v5775_v29  ;;  %4198 = vmatprep.subr.bf16.mxu0 %v5780_v32  ;;  %v3296_v41 = vmul.f32 %v5823_v30, %v7460_v4  ;;  %v3439_v49 = vrot.slane %v3434_v35, %v7062_v19  ;;  %v3443_v4 = vrot.slane %v3434_v35, %v7059_v18  ;;  %v4258_v29 = vld [vmem:[%s7730_s19] sm:$0x3] (!%p5188_p3) }
 0x9f7   : > { %v5827_v40 = vpop.eup %5826  ;;  %v3295_v42 = vmul.f32 %v5825_v37, %v7463_v60  ;;  %4239 = vmatprep.subr.bf16.mxu1 %v5783_v33  ;;  %v3302_v46 = vpack.c.bf16 %v3294_v31, %v3294_v31  ;;  %v4259_v32 = vld [vmem:[%s7731_s13] sm:$0x3] (!%p5188_p3)  ;;  %v4284_v33 = vrot.slane (!%p5188_p3), %v4258_v29, %v7059_v18  ;;  %v4280_v34 = vrot.slane (!%p5188_p3), %v4258_v29, %v7062_v19 }
 0x9f8   : > { %v3297_v43 = vmul.f32 %v5827_v40, %v7465_v38  ;;  %v3304_v48 = vpack.c.bf16 %v3296_v41, %v3296_v41  ;;  %v4297_v37 = vrot.slane (!%p5188_p3), %v4259_v32, %v7059_v18 }
 0x9f9   : > { %v3303_v45 = vpack.c.bf16 %v3295_v42, %v3295_v42  ;;  %4199 = vmatpush1.bf16.msra.mxu0 %v5778_v6 }
 0x9fa   : > { %v3305_v47 = vpack.c.bf16 %v3297_v43, %v3297_v43  ;;  %4240 = vmatpush1.bf16.msra.mxu1 %v5781_v39  ;;  %v4293_v39 = vrot.slane (!%p5188_p3), %v4259_v32, %v7062_v19  ;;  %v6302_v19 = vmov (!%p5188_p3), 1966171168  }
 0x9fb   : > { %4200 = vmatprep.mubr.bf16.mxu0 %v3303_v45 }
 0x9fc   : > { %4241 = vmatprep.mubr.bf16.mxu1 %v3305_v47  ;;  %4201 = vmatmul.mubr.bf16.vlgmr.msra.gmra.mrb[28].mxu0 %v3302_v46 }
 0x9fd   : > { %4242 = vmatmul.mubr.bf16.vlgmr.msra.gmra.mrb[28].mxu1 %v3304_v48 }
 0xa8f   : > { %v4120_v50 = vpop.f32.mrb[24].mxu0 }
 0xa90   : > { %v4121_v60 = vadd.f32 %v4120_v50, %v3439_v49  ;;  %v4161_v51 = vpop.f32.mrb[24].mxu1  ;;  %v4122_v52 = vpop.f32.mrb[25].mxu0  ;;  %v4395_v50 = vunpack.c.l.s4 (!%p5188_p3), %v6302_v19 }
 0xa91   : > { %v4123_v38 = vadd.f32 %v4122_v52, %v3443_v4  ;;  %v4163_v53 = vpop.f32.mrb[25].mxu1  ;;  %v4124_v54 = vpop.f32.mrb[26].mxu0 }
 0xa92   : > { %v4162_v55 = vadd.f32 %v4161_v51, %v4121_v60  ;;  %v4165_v56 = vpop.f32.mrb[26].mxu1  ;;  %v4125_v57 = vpop.f32.mrb[27].mxu0  ;;  %v4396_v60 = vunpack.c.0.s8 (!%p5188_p3), %v4395_v50 }
 0xa93   : > { %v4164_v58 = vadd.f32 %v4163_v53, %v4123_v38  ;;  %v4166_v59 = vpop.f32.mrb[27].mxu1 }
 0xacf   : > { %v4202_v36 = vpop.f32.mrb[28].mxu0 }
 0xad0   : > { %v4203_v61 = vadd.f32 %v4202_v36, %v4162_v55  ;;  %v4243_v62 = vpop.f32.mrb[28].mxu1  ;;  %v4204_v63 = vpop.f32.mrb[29].mxu0  ;;  %v4399_v55 = vsub.s32 (!%p5188_p3), %v4396_v60, %v7056_v17 }
 0xad1   : > { %v4205_v0 = vadd.f32 %v4204_v63, %v4164_v58  ;;  %v4245_v1 = vpop.f32.mrb[29].mxu1  ;;  %v4206_v2 = vpop.f32.mrb[30].mxu0  ;;  %4257 = sbr.rel (%p5188_p3) target bundleno = 3314 (0xcf2), region = 132 }
 0xad2   : > { %v4244_v7 = vadd.f32 %v4243_v62, %v4203_v61  ;;  %v4247_v8 = vpop.f32.mrb[30].mxu1  ;;  %v4207_v9 = vpop.f32.mrb[31].mxu0 }
 0xad3   : > { %v4246_v10 = vadd.f32 %v4245_v1, %v4205_v0  ;;  %v4248_v11 = vpop.f32.mrb[31].mxu1 }
 0xad4   : > { %v4250_v12 = vadd.f32 %v4244_v7, %v7179_v22  ;;  %v4377_v22 = vsel (!%p5188_p3), %vm4376_vm4, %v7131_v44, 0.0 }
 0xad5   : > { %v4251_v13 = vadd.f32 %v4246_v10, %v7181_v25  ;;  %4378 = vadd.xlane.f32.xlu1 (!%p5188_p3), %v4377_v22  ;;  %v6301_v25 = vmov (!%p5188_p3), 0.0  }
 0xad6   : > { %4252 = vst [vmem:[#allocation2] sm:$0xff] %v4250_v12  ;;  %4369 = vmatprep.mubr.f32.mxu0 (!%p5188_p3), %v6301_v25 }
 0xad7   : > { %4253 = vst [vmem:[#allocation2 + $0x8] sm:$0xff] %v4251_v13  ;;  %v4260_v14 = vadd.f32 (!%p5188_p3), %v4251_v13, %v4250_v12 }
 0xad9   : > { %4261 = vadd.xlane.f32.xlu0 %v4260_v14 }
 0xb62   : > { %v4379_v45 = vpop.xlane.xlu1 %4378 }
 0xb63   : > { %v4380_v46 = vrot.slane %v4379_v45, 4 }
 0xb65   : > { %v4381_v47 = vadd.f32 %v4380_v46, %v4379_v45 }
 0xb66   : > { %v4262_v16 = vpop.xlane.xlu0 %4261 }
 0xb67   : > { %v4263_v20 = vmul.f32 0.00390625, %v4262_v16  ;;  %v4382_v48 = vrot.slane %v4381_v47, 2 }
 0xb69   : > { %v4264_v3 = vsub.f32 %v4250_v12, %v4263_v20  ;;  %v4265_v21 = vsub.f32 %v4251_v13, %v4263_v20  ;;  %v4383_v35 = vadd.f32 %v4382_v48, %v4381_v47 }
 0xb6b   : > { %v4266_v23 = vmul.f32 %v4264_v3, %v4264_v3  ;;  %v4267_v24 = vmul.f32 %v4265_v21, %v4265_v21  ;;  %v4384_v49 = vrot.slane %v4383_v35, 1 }
 0xb6d   : > { %v4268_v26 = vadd.f32 %v4267_v24, %v4266_v23  ;;  %v4385_v4 = vadd.f32 %v4384_v49, %v4383_v35 }
 0xb6f   : > { %4269 = vadd.xlane.f32.xlu0 %v4268_v26  ;;  %5240 = vpush %v4385_v4 }
 0xba0   : > { %s5241_s8 = spop %5240 }
 0xba1   : > { %v4387_v18 = vstv %s5241_s8 }
 0xbfc   : > { %v4270_v27 = vpop.xlane.xlu0 %4269 }
 0xbfd   : > { %v4271_v28 = vmul.f32 0.00390625, %v4270_v27 }
 0xbff   : > { %v4272_v5 = vadd.f32 1e-05, %v4271_v28 }
 0xc01   : > { %5830 = vrsqrt.f32 %v4272_v5 }
 0xc02   : > { %5832 = vrcp.f32 %v4387_v18 }
 0xc0b   : > { %v5831_v30 = vpop.eup %5830 }
 0xc0c   : > { %v4275_v6 = vmul.f32 %v5831_v30, %v4265_v21  ;;  %v4274_v31 = vmul.f32 %v5831_v30, %v4264_v3  ;;  %v5833_v51 = vpop.eup %5832 }
 0xc0e   : > { %v4288_v40 = vmul.f32 %v4284_v33, %v4275_v6  ;;  %v4287_v41 = vmul.f32 %v4280_v34, %v4274_v31 }
 0xc10   : > { %v4301_v42 = vadd.f32 %v4297_v37, %v4288_v40  ;;  %v4300_v43 = vadd.f32 %v4293_v39, %v4287_v41 }
 0xc12   : > { %4305 = vmatprep.subr.mxu0 %v4301_v42 }
 0xc13   : > { %4306 = vmatpush1.msra.mxu0 %v4300_v43 }
 0xc14   : > { %5189 = vmatmul.mubr.msk.f32.vlgmr.msra.gmra.mrb[0].mxu0 %vm1802_vm3, %v7131_v44 }
 0xce7   : > { %v4371_v52 = vpop.f32.mrb[0].mxu0 }
 0xce8   : > { %v4389_v38 = vmul.f32 %v5833_v51, %v4371_v52  ;;  %v4373_v53 = vpop.f32.mrb[1].mxu0 }
 0xce9   : > { %v4390_v54 = vmul.f32 %v5833_v51, %v4373_v53 }
 0xceb   : > { %v4393_v44 = vcombine.low %v4389_v38, %v4390_v54 }
 0xced   : > { %v4400_v56 = vrot.slane %v4393_v44, %v4399_v55 }
 0xcef   : > { %v4407_v57 = vrot.slane %v4400_v56, %v4399_v55 }
 0xcf1   : > { %4413 = vst.msk [vmem:[%s6969_s29] sm:$0x3] %vm4411_vm5, %v4407_v57 }
 0xcf2 PF: > { %s7732_s23 = sld [smem:[#allocation34_spill]]  ;;  %s7733_s16 = sld [smem:[#allocation45_spill]] }
 0xcf3   : > { %s7734_s15 = sld [smem:[#allocation63_spill]]  ;;  %s4429_s22 = sshll.u32 %s6969_s29, 4  ;;  %s4430_s22 = int_to_ptr.vmem [resolvable:$true] %s4429_s22 }
 0xcf4   : > { %s4415_s3 = scalar_lea.sflag [#allocation5], %s6895_s21  ;;  %s6134_s20 = scalar_lea.vmem %s4430_s22, 32 }
 0xcf5   : > { %p6135_p9 = scmp.ne.s32.totalorder %s4430_s22, %s6134_s20  ;;  %s6303_s0 = smov [#allocation20]  }
 0xcf6   : > { %s6138_s18 = sshll.u32 %s6303_s0, 4  ;;  %s6139_s18 = int_to_ptr.vmem [resolvable:$false] %s6138_s18 }
 0xcf7   : > { %s6140_s5 = scalar_lea.vmem %s6139_s18, 64  ;;  %p6141_p13 = scmp.lt.s32.totalorder %s4430_s22, %s6139_s18 }
 0xcf8   : > { %s5203_s27 = sshll.u32 %s7732_s23, 5  ;;  %p7735_p2 = scmp.ne.s32.totalorder %s7733_s16, 0 }
 0xcf9   : > { %s7531_s9 = scalar_lea.hbm %s7734_s15, %s5203_s27  ;;  %p6142_p5 = scmp.lt.s32.totalorder %s6140_s5, %s6134_s20 }
 0xcfa   : > { %p6136_p0 = pnand %p6135_p9, %p7735_p2 }
 0xcfb   : > { %p6143_p10 = por %p6142_p5, %p6141_p13 }
 0xcfc   : > { %p6137_p4 = pneg %p6136_p0 }
 0xcfe   : > { %p6144_p1 = pnand %p6143_p10, %p6137_p4 }
 0xd00   : > { %6147 = shalt.err (!%p6144_p1)
}
 0xd01   : > { %s6148_s29 = scalar_lea.hbm %s7531_s9, 32  ;;  %s6152_s24 = scalar_lea.hbm %s7734_s15, 64 }
 0xd02   : > { %p6149_p8 = scmp.ne.s32.totalorder %s7531_s9, %s6148_s29  ;;  %p6153_p12 = scmp.lt.u32.totalorder %s7531_s9, %s7734_s15 }
 0xd03   : > { %p6154_p11 = scmp.lt.u32.totalorder %s6152_s24, %s6148_s29  ;;  %p6156_p9 = scmp.lt.u32.totalorder %s6148_s29, %s7531_s9 }
 0xd04   : > { %p6150_p7 = pnand %p6149_p8, %p7735_p2 }
 0xd05   : > { %p6155_p3 = por %p6154_p11, %p6153_p12 }
 0xd06   : > { %p6151_p6 = pneg %p6150_p7 }
 0xd07   : > { %p6157_p0 = por %p6156_p9, %p6155_p3 }
 0xd09   : > { %p6158_p4 = pnand %p6157_p0, %p6151_p6 }
 0xd0b   : > { %6161 = shalt.err (!%p6158_p4)
}
 0xd0c   : > { %5262 = dma.vmem_to_hbm [thread:$0]  (%p7735_p2), %s4430_s22, 32, %s7531_s9, %s4415_s3  }
 0xd0d PF: > { %s7736_s2 = sld [smem:[#allocation37_spill]]  ;;  %s7737_s12 = sld [smem:[#allocation31_spill]] }
 0xd0e   : > { %s7738_s14 = sld [smem:[#allocation46_spill]] }
 0xd13   : > { %p5300_p13 = scmp.ge.s32.totalorder %s7736_s2, 2  ;;  %s4441_s7 = sand.u32 1, %s7737_s12  }
 0xd14   : > { %p7739_p5 = scmp.ne.s32.totalorder %s7738_s14, 0  ;;  %s4442_s30 = scalar_lea.sflag [#allocation5], %s4441_s7 }
 0xd16   : > { %p5296_p10 = pnand %p5300_p13, %p7739_p5 }
 0xd18   : > { %6235 = dma.done.wait (!%p5296_p10), %s4442_s30, 32  }
 0xd19   : > { %6237 = vsyncadd (!%p5296_p10), %s4442_s30, 4294967264  ;;  %s47_s0 = sadd.s32 1, %s7736_s2   ;;  %s7740_s21 = sld [smem:[#allocation29_spill]] }
 0xd1a   : > { %p44_p1 = scmp.ge.s32.totalorder %s47_s0, 6   ;;  %s7741_s22 = sld [smem:[#allocation30_spill]] }
 0xd1b   : > { %s7742_s23 = sld [smem:[#allocation42_spill]]  ;;  %s7743_s28 = sld [smem:[#allocation32_spill]] }
 0xd1c   : > { %s7744_s26 = sld [smem:[#allocation43_spill]]  ;;  %s7745_s27 = sld [smem:[#allocation35_spill]] }
 0xd1d   : > { %s7746_s19 = sld [smem:[#allocation36_spill]]  ;;  %s7747_s29 = sld [smem:[#allocation39_spill]] }
 0xd1e   : > { %s7748_s30 = sld [smem:[#allocation40_spill]]  ;;  %s7749_s24 = smov %s6256_s25 }
 0xd1f   :  { %46 = sbr.rel (!%p44_p1) target bundleno = 37 (0x25), region = 258 }
 0xd21   : > { %s7750_s25 = smov %s7743_s28 }
 0xd23   : > { %s7751_s28 = smov %s7746_s19 }
 0xd26   :  { %4447 = vsyncpa [#allocation4], 1 }
 0xd27   :  { %4449 = vsyncpa [#allocation4 + $0x1], 1 }
 0xd28   :  { %4450 = vsyncpa [#allocation7], 1 }
 0xd29   :  { %4452 = vsyncpa [#allocation7 + $0x1], 1 }
 0xd2a   :  { %4453 = vsyncpa [#allocation10], 1 }
 0xd2b   :  { %4455 = vsyncpa [#allocation10 + $0x1], 1 }
 0xd2c   :  { %4456 = vsyncpa [#allocation13], 1 }
 0xd2d   :  { %4458 = vsyncpa [#allocation13 + $0x1], 1 }
 0xd2e   :  { %4459 = vsyncpa [#allocation16], 1 }
 0xd2f   :  { %4461 = vsyncpa [#allocation16 + $0x1], 1 }
 0xd30   :  { %4462 = vsyncpa [#allocation19], 1 }
 0xd31   :  { %4464 = vsyncpa [#allocation19 + $0x1], 1 }
 0xd32   :  { %4465 = vsyncpa [#allocation5], 1 }
 0xd33   :  { %4467 = vsyncpa [#allocation5 + $0x1], 1 }

</bundles_post_ra>
